<compile_context>
chip_gen: v5e
topology: v5e:2x2
jax: 0.10.0
libtpu: 0.0.40
codegen_flags: <defaults>
</compile_context>

<pallas_src>
import math
import functools

import jax
import jax.numpy as jnp
from jax.experimental import pallas as pl
from jax.experimental.pallas import tpu as pltpu


def _round_up(x, m):
    return ((x + m - 1) // m) * m


def _cross_attn_kernel(qhat_ref, tgt_ref, kin_t_ref, mem_ref, wvo_ref, cvec_ref,
                       out_ref, m_sc, l_sc, acc_sc,
                       *, nhead, lq_blk, lk_blk, lk_valid, mask_tail, ln_eps):
    ki = pl.program_id(2)
    nk = pl.num_programs(2)

    @pl.when(ki == 0)
    def _init():
        m_sc[...] = jnp.full(m_sc.shape, -jnp.inf, jnp.float32)
        l_sc[...] = jnp.zeros(l_sc.shape, jnp.float32)
        acc_sc[...] = jnp.zeros(acc_sc.shape, jnp.float32)

    # Scores for all (head, query) rows at once: (H*lq_blk, lk_blk), f32 accumulation.
    # kin_t is pre-transposed to (E, lk_blk) so the MXU consumes it directly.
    s = jnp.dot(qhat_ref[...], kin_t_ref[...], preferred_element_type=jnp.float32)

    if mask_tail:
        # Key axis was padded to nk*lk_blk; mask padded columns (exact: exp -> 0).
        col = jax.lax.broadcasted_iota(jnp.int32, s.shape, 1)
        s = jnp.where(col < (lk_valid - ki * lk_blk), s, -1e30)

    # Online (flash-style) softmax update.
    m_prev = m_sc[...]
    m_new = jnp.maximum(m_prev, jnp.max(s, axis=-1, keepdims=True))
    alpha = jnp.exp(m_prev - m_new)
    p = jnp.exp(s - m_new)
    l_sc[...] = alpha * l_sc[...] + jnp.sum(p, axis=-1, keepdims=True)
    acc_sc[...] = alpha * acc_sc[...] + jnp.dot(
        p.astype(jnp.bfloat16), mem_ref[...], preferred_element_type=jnp.float32)
    m_sc[...] = m_new

    @pl.when(ki == nk - 1)
    def _finalize():
        # Exact reciprocal: cold path (once per slab), tightens numerics for free.
        o = (acc_sc[...] * pl.reciprocal(l_sc[...], approx=False)
             ).astype(jnp.bfloat16)                                    # (H*lq_blk, E)
        # Folded value/out projection: attn = sum_h o_h @ (Wv_h Wo_h) + (bv@Wo^T + bo).
        attn = cvec_ref[0:1, :]
        for h in range(nhead):          # static unroll; slices are sublane-aligned
            attn = attn + jnp.dot(o[h * lq_blk:(h + 1) * lq_blk, :], wvo_ref[h],
                                  preferred_element_type=jnp.float32)
        # Residual (dropout = 0) + LayerNorm over E, in f32.
        x = tgt_ref[...] + attn
        mu = jnp.mean(x, axis=-1, keepdims=True)
        var = jnp.mean((x - mu) ** 2, axis=-1, keepdims=True)
        y = (x - mu) * jax.lax.rsqrt(var + ln_eps)
        y = y * cvec_ref[1:2, :] + cvec_ref[2:3, :]
        out_ref[...] = y.astype(out_ref.dtype)


def cross_attention_layer(tgt, memory, query_pos, pos, params, *,
                          nhead, ln_eps=1e-5, lk_tile=512, num_q_blocks=None):
    """tgt/query_pos: (Lq, N, E); memory/pos: (Lk, N, E).  Returns (Lq, N, E).

    lk_tile: key-tile length (512 default; 1024 on v5e/v6e, keep <=512 on v7x).
    num_q_blocks: parallel q-slabs (auto: 2 when batch==1 so v7x's 2nd core has work).
    """
    Lq, N, E = tgt.shape
    Lk = memory.shape[0]
    assert E % nhead == 0
    hd = E // nhead
    if N > 1:
        assert E % 128 == 0, "per-batch column blocks of the value stream need E % 128"
    scale = 1.0 / math.sqrt(hd)

    # ---- q tiling (second "parallel" grid axis; feeds v7x's 2 TensorCores) ----
    if num_q_blocks is None:
        num_q_blocks = 2 if (N == 1 and Lq >= 16) else 1
    lq_blk = _round_up(-(-Lq // num_q_blocks), 8)          # sublane-aligned head slabs
    nq = -(-Lq // lq_blk)
    lq_pad = nq * lq_blk

    # ---- key tiling (flash loop; tail tile padded + masked in-kernel) ----
    if _round_up(Lk, 8) <= lk_tile:
        lk_blk, nk = _round_up(Lk, 8), 1
    else:
        assert lk_tile % 128 == 0, "lk_tile must be a multiple of 128"
        lk_blk = lk_tile
        nk = -(-Lk // lk_blk)
    lk_pad = nk * lk_blk
    mask_tail = lk_pad != Lk

    # ---- fold weights once per call (tiny (E,E)-sized work, f32) ----
    wq_h = params["wq"].T.reshape(E, nhead, hd)      # WqT_h[e, d]
    wk_h = params["wk"].T.reshape(E, nhead, hd)
    wv_h = params["wv"].T.reshape(E, nhead, hd)
    wo_h = params["wo"].T.reshape(nhead, hd, E)      # WoT_h[d, f]
    wqk = scale * jnp.einsum("ehd,fhd->hef", wq_h, wk_h)            # G_h   (H, E, E)
    bqk = scale * jnp.einsum("hd,ehd->he", params["bq"].reshape(nhead, hd), wk_h)
    wvo = jnp.einsum("ehd,hdf->hef", wv_h, wo_h).astype(jnp.bfloat16)  # M_h (H, E, E)
    b_out = params["bv"] @ params["wo"].T + params["bo"]
    cvec = jnp.stack([b_out, params["ln_w"], params["ln_b"]], axis=0)  # (3, E)
    # NOTE: bk (key bias) is a softmax row-constant -> dropped exactly.

    # ---- hoist folded-Q projection out of the kernel; head-major, padded slabs ----
    q_in = tgt + query_pos                                            # (Lq, N, E)
    qhat = jnp.einsum("qnf,hfe->nhqe", q_in, wqk) + bqk[None, :, None, :]
    qhat = jnp.pad(qhat, ((0, 0), (0, 0), (0, lq_pad - Lq), (0, 0)))
    qhat = qhat.reshape(N, nhead, nq, lq_blk, E)
    qhat = jnp.transpose(qhat, (0, 2, 1, 3, 4)).reshape(N, nq, nhead * lq_blk, E)
    qhat = qhat.astype(jnp.bfloat16)                                  # (N, nq, H*lq_blk, E)

    tgt_p = jnp.pad(tgt, ((0, lq_pad - Lq), (0, 0), (0, 0)))
    tgt_s = jnp.transpose(tgt_p, (1, 0, 2)).reshape(N, nq, lq_blk, E)

    # ---- bf16 key/value streams, padded to whole key tiles (halves HBM bytes) ----
    kin = memory + pos
    if mask_tail:
        kin = jnp.pad(kin, ((0, lk_pad - Lk), (0, 0), (0, 0)))
        mem_p = jnp.pad(memory, ((0, lk_pad - Lk), (0, 0), (0, 0)))
    else:
        mem_p = memory
    kin_t = jnp.transpose(kin.astype(jnp.bfloat16), (1, 2, 0))        # (N, E, Lk_pad)
    mem_b = mem_p.astype(jnp.bfloat16).reshape(lk_pad, N * E)         # view, no transpose

    kernel = functools.partial(_cross_attn_kernel, nhead=nhead, lq_blk=lq_blk,
                               lk_blk=lk_blk, lk_valid=Lk, mask_tail=mask_tail,
                               ln_eps=ln_eps)

    out = pl.pallas_call(
        kernel,
        out_shape=jax.ShapeDtypeStruct((N, nq, lq_blk, E), tgt.dtype),
        grid_spec=pltpu.PrefetchScalarGridSpec(
            num_scalar_prefetch=0,
            grid=(N, nq, nk),
            in_specs=[
                pl.BlockSpec((None, None, nhead * lq_blk, E),
                             lambda n, q, k: (n, q, 0, 0)),            # qhat (bf16)
                pl.BlockSpec((None, None, lq_blk, E),
                             lambda n, q, k: (n, q, 0, 0)),            # tgt slab (f32)
                pl.BlockSpec((None, E, lk_blk),
                             lambda n, q, k: (n, 0, k)),               # (mem+pos)^T bf16
                pl.BlockSpec((lk_blk, E),
                             lambda n, q, k: (k, n)),                  # memory bf16
                pl.BlockSpec((nhead, E, E), lambda n, q, k: (0, 0, 0)),  # M (bf16)
                pl.BlockSpec((3, E), lambda n, q, k: (0, 0)),          # [b_out;gamma;beta]
            ],
            out_specs=pl.BlockSpec((None, None, lq_blk, E),
                                   lambda n, q, k: (n, q, 0, 0)),
            scratch_shapes=[
                pltpu.VMEM((nhead * lq_blk, 1), jnp.float32),   # running max
                pltpu.VMEM((nhead * lq_blk, 1), jnp.float32),   # running sum
                pltpu.VMEM((nhead * lq_blk, E), jnp.float32),   # output accumulator
            ],
        ),
        compiler_params=pltpu.CompilerParams(
            dimension_semantics=("parallel", "parallel", "arbitrary")),
    )(qhat, tgt_s, kin_t, mem_b, wvo, cvec)

    out = out.reshape(N, lq_pad, E)
    return jnp.transpose(out, (1, 0, 2))[:Lq]


def _xavier_uniform(key, shape):
    fan_out, fan_in = shape
    a = math.sqrt(6.0 / (fan_in + fan_out))
    return jax.random.uniform(key, shape, jnp.float32, minval=-a, maxval=a)


def init_params(key, d_model):
    # Mirrors CrossAttentionLayer._reset_parameters: xavier_uniform on every param
    # with dim > 1; biases stay at nn defaults (zeros); LayerNorm weight=1 / bias=0.
    ks = jax.random.split(key, 4)
    E = d_model
    return {
        "wq": _xavier_uniform(ks[0], (E, E)),
        "wk": _xavier_uniform(ks[1], (E, E)),
        "wv": _xavier_uniform(ks[2], (E, E)),
        "wo": _xavier_uniform(ks[3], (E, E)),
        "bq": jnp.zeros((E,), jnp.float32),
        "bk": jnp.zeros((E,), jnp.float32),
        "bv": jnp.zeros((E,), jnp.float32),
        "bo": jnp.zeros((E,), jnp.float32),
        "ln_w": jnp.ones((E,), jnp.float32),
        "ln_b": jnp.zeros((E,), jnp.float32),
    }


def _reference(tgt, memory, query_pos, pos, params, *, nhead, ln_eps=1e-5):
    # Pure-JAX f32 reference of forward_post (dropout=0, no masks).
    Lq, N, E = tgt.shape
    hd = E // nhead
    q = tgt + query_pos
    k = memory + pos
    v = memory

    def proj(x, w, b):  # torch linear: x @ W^T + b
        return jnp.einsum("lne,fe->lnf", x, w) + b

    q = proj(q, params["wq"], params["bq"])
    k = proj(k, params["wk"], params["bk"])
    v = proj(v, params["wv"], params["bv"])

    def split(x):  # (L, N, E) -> (N, H, L, hd)
        L = x.shape[0]
        return jnp.transpose(x.reshape(L, N, nhead, hd), (1, 2, 0, 3))

    qh, kh, vh = split(q), split(k), split(v)
    s = jnp.einsum("nhqd,nhkd->nhqk", qh, kh) / math.sqrt(hd)
    p = jax.nn.softmax(s, axis=-1)
    o = jnp.einsum("nhqk,nhkd->nhqd", p, vh)
    o = jnp.transpose(o, (2, 0, 1, 3)).reshape(Lq, N, E)
    o = jnp.einsum("lne,fe->lnf", o, params["wo"]) + params["bo"]

    x = tgt + o
    mu = jnp.mean(x, axis=-1, keepdims=True)
    var = jnp.mean((x - mu) ** 2, axis=-1, keepdims=True)
    return (x - mu) / jnp.sqrt(var + ln_eps) * params["ln_w"] + params["ln_b"]


if __name__ == "__main__":
    # Mask2Former's actual config is d_model=256, nhead=8; keep shapes small here
    # but exercise every code path: padded q slabs, multi-q-block parallel axis,
    # multi-tile flash key loop, and masked key-tail padding.
    d_model, nhead = 256, 8
    key = jax.random.PRNGKey(0)
    k_params, k_data = jax.random.split(key)
    params = init_params(k_params, d_model)

    configs = [
        # (batch, Lq, Lk, kernel kwargs)
        (2, 8, 32, {}),                                          # single tile, no pads
        (1, 20, 200, dict(lk_tile=128, num_q_blocks=2)),         # q-split + masked tail
        (2, 100, 196, dict(lk_tile=128)),                        # Lq%8!=0, 2 key tiles
    ]
    for i, (batch, n_q, n_kv, kw) in enumerate(configs):
        kk = jax.random.fold_in(k_data, i)
        k_t, k_m, k_qp, k_pp = jax.random.split(kk, 4)
        tgt = jax.random.normal(k_t, (n_q, batch, d_model), jnp.float32)
        memory = jax.random.normal(k_m, (n_kv, batch, d_model), jnp.float32)
        query_pos = jax.random.normal(k_qp, (n_q, batch, d_model), jnp.float32)
        pos = jax.random.normal(k_pp, (n_kv, batch, d_model), jnp.float32)

        out = cross_attention_layer(tgt, memory, query_pos, pos, params,
                                    nhead=nhead, **kw)
        out = jax.block_until_ready(out)

        ref = _reference(tgt, memory, query_pos, pos, params, nhead=nhead)
        assert out.shape == (n_q, batch, d_model)
        max_err = float(jnp.max(jnp.abs(out - ref)))
        # bf16 MXU operands vs an all-f32 reference -> loosened tolerance.
        assert jnp.allclose(out, ref, atol=5e-2, rtol=5e-2), \
            f"config {i}: max err {max_err}"

    print("KERNEL_OK")
</pallas_src>

<mosaic_0001>
module attributes {stable_mosaic.version = 11 : i64} {
  func.func @_cross_attn_kernel(%arg0: i32, %arg1: i32, %arg2: i32, %arg3: memref<1x1x64x256xbf16, #tpu.memory_space<vmem>>, %arg4: memref<1x1x8x256xf32, #tpu.memory_space<vmem>>, %arg5: memref<1x256x32xbf16, #tpu.memory_space<vmem>>, %arg6: memref<32x256xbf16, #tpu.memory_space<vmem>>, %arg7: memref<8x256x256xbf16, #tpu.memory_space<vmem>>, %arg8: memref<3x256xf32, #tpu.memory_space<vmem>>, %arg9: memref<1x1x8x256xf32, #tpu.memory_space<vmem>>, %arg10: memref<64x1xf32, #tpu.memory_space<vmem>>, %arg11: memref<64x1xf32, #tpu.memory_space<vmem>>, %arg12: memref<64x256xf32, #tpu.memory_space<vmem>>) attributes {dimension_semantics = [#tpu.dimension_semantics<parallel>, #tpu.dimension_semantics<parallel>, #tpu.dimension_semantics<arbitrary>], iteration_bounds = array<i64: 2, 1, 1>, scalar_prefetch = 0 : i64, scratch_operands = 3 : i64, tpu.core_type = #tpu.core_type<tc>, window_params = [{transform_indices = @transform_0, window_bounds = array<i64: 1, 1, 64, 256>}, {transform_indices = @transform_1, window_bounds = array<i64: 1, 1, 8, 256>}, {transform_indices = @transform_2, window_bounds = array<i64: 1, 256, 32>}, {transform_indices = @transform_3, window_bounds = array<i64: 32, 256>}, {pipeline_mode = #tpu.pipeline_mode<synchronous>, transform_indices = @transform_4, window_bounds = array<i64: 8, 256, 256>}, {pipeline_mode = #tpu.pipeline_mode<synchronous>, transform_indices = @transform_5, window_bounds = array<i64: 3, 256>}, {transform_indices = @transform_6, window_bounds = array<i64: 1, 1, 8, 256>}]} {
    %c0_i32 = arith.constant 0 : i32
    %0 = arith.cmpi eq, %arg2, %c0_i32 : i32
    %1 = arith.extui %0 : i1 to i32
    %c0_i32_0 = arith.constant 0 : i32
    %2 = arith.cmpi ne, %1, %c0_i32_0 : i32
    scf.if %2 {
      %cst_26 = arith.constant 0xFF800000 : f32
      %35 = vector.broadcast %cst_26 : f32 to vector<64x1xf32>
      %c0_27 = arith.constant 0 : index
      %c0_28 = arith.constant 0 : index
      %36 = vector.load %arg10[%c0_27, %c0_28] : memref<64x1xf32, #tpu.memory_space<vmem>>, vector<64x1xf32>
      tpu.vector_store %arg10[%c0_27, %c0_28], %35 {strides = array<i32>} : memref<64x1xf32, #tpu.memory_space<vmem>>, vector<64x1xf32>,
      %cst_29 = arith.constant 0.000000e+00 : f32
      %37 = vector.broadcast %cst_29 : f32 to vector<64x1xf32>
      %c0_30 = arith.constant 0 : index
      %c0_31 = arith.constant 0 : index
      %38 = vector.load %arg11[%c0_30, %c0_31] : memref<64x1xf32, #tpu.memory_space<vmem>>, vector<64x1xf32>
      tpu.vector_store %arg11[%c0_30, %c0_31], %37 {strides = array<i32>} : memref<64x1xf32, #tpu.memory_space<vmem>>, vector<64x1xf32>,
      %cst_32 = arith.constant 0.000000e+00 : f32
      %39 = vector.broadcast %cst_32 : f32 to vector<64x256xf32>
      %c0_33 = arith.constant 0 : index
      %c0_34 = arith.constant 0 : index
      %40 = vector.load %arg12[%c0_33, %c0_34] : memref<64x256xf32, #tpu.memory_space<vmem>>, vector<64x256xf32>
      tpu.vector_store %arg12[%c0_33, %c0_34], %39 {strides = array<i32>} : memref<64x256xf32, #tpu.memory_space<vmem>>, vector<64x256xf32>,
    } else {
    }
    %c0 = arith.constant 0 : index
    %c0_1 = arith.constant 0 : index
    %c0_2 = arith.constant 0 : index
    %c0_3 = arith.constant 0 : index
    %3 = vector.load %arg3[%c0, %c0_1, %c0_2, %c0_3] : memref<1x1x64x256xbf16, #tpu.memory_space<vmem>>, vector<1x1x64x256xbf16>
    %4 = vector.shape_cast %3 : vector<1x1x64x256xbf16> to vector<64x256xbf16>
    %c0_4 = arith.constant 0 : index
    %c0_5 = arith.constant 0 : index
    %c0_6 = arith.constant 0 : index
    %5 = vector.load %arg5[%c0_4, %c0_5, %c0_6] : memref<1x256x32xbf16, #tpu.memory_space<vmem>>, vector<1x256x32xbf16>
    %6 = vector.shape_cast %5 : vector<1x256x32xbf16> to vector<256x32xbf16>
    %cst = arith.constant dense<0.000000e+00> : vector<64x32xf32>
    %7 = tpu.matmul %4, %6, %cst {dimension_numbers = #tpu.dot_dimension_numbers<[1], [0], [0], [1], [0, 0, 1, 1], [], []>} : vector<64x256xbf16>, vector<256x32xbf16>, vector<64x32xf32> -> vector<64x32xf32>
    %c0_7 = arith.constant 0 : index
    %c0_8 = arith.constant 0 : index
    %8 = vector.load %arg10[%c0_7, %c0_8] : memref<64x1xf32, #tpu.memory_space<vmem>>, vector<64x1xf32>
    %cst_9 = arith.constant dense<0xFF800000> : vector<64xf32>
    %9 = vector.multi_reduction <maximumf>, %7, %cst_9 [1] : vector<64x32xf32> to vector<64xf32>
    %10 = vector.shape_cast %9 : vector<64xf32> to vector<64x1xf32>
    %11 = arith.maximumf %8, %10 : vector<64x1xf32>
    %12 = arith.subf %8, %11 : vector<64x1xf32>
    %13 = math.exp %12 : vector<64x1xf32>
    %14 = vector.broadcast %11 : vector<64x1xf32> to vector<64x32xf32>
    %15 = arith.subf %7, %14 : vector<64x32xf32>
    %16 = math.exp %15 : vector<64x32xf32>
    %c0_10 = arith.constant 0 : index
    %c0_11 = arith.constant 0 : index
    %17 = vector.load %arg11[%c0_10, %c0_11] : memref<64x1xf32, #tpu.memory_space<vmem>>, vector<64x1xf32>
    %18 = arith.mulf %13, %17 : vector<64x1xf32>
    %cst_12 = arith.constant dense<0.000000e+00> : vector<64xf32>
    %19 = vector.multi_reduction <add>, %16, %cst_12 [1] : vector<64x32xf32> to vector<64xf32>
    %20 = vector.shape_cast %19 : vector<64xf32> to vector<64x1xf32>
    %21 = arith.addf %18, %20 : vector<64x1xf32>
    %c0_13 = arith.constant 0 : index
    %c0_14 = arith.constant 0 : index
    %22 = vector.load %arg11[%c0_13, %c0_14] : memref<64x1xf32, #tpu.memory_space<vmem>>, vector<64x1xf32>
    tpu.vector_store %arg11[%c0_13, %c0_14], %21 {strides = array<i32>} : memref<64x1xf32, #tpu.memory_space<vmem>>, vector<64x1xf32>,
    %c0_15 = arith.constant 0 : index
    %c0_16 = arith.constant 0 : index
    %23 = vector.load %arg12[%c0_15, %c0_16] : memref<64x256xf32, #tpu.memory_space<vmem>>, vector<64x256xf32>
    %24 = vector.broadcast %13 : vector<64x1xf32> to vector<64x256xf32>
    %25 = arith.mulf %24, %23 : vector<64x256xf32>
    %26 = arith.truncf %16 : vector<64x32xf32> to vector<64x32xbf16>
    %c0_17 = arith.constant 0 : index
    %c0_18 = arith.constant 0 : index
    %27 = vector.load %arg6[%c0_17, %c0_18] : memref<32x256xbf16, #tpu.memory_space<vmem>>, vector<32x256xbf16>
    %cst_19 = arith.constant dense<0.000000e+00> : vector<64x256xf32>
    %28 = tpu.matmul %26, %27, %cst_19 {dimension_numbers = #tpu.dot_dimension_numbers<[1], [0], [0], [1], [0, 0, 1, 1], [], []>} : vector<64x32xbf16>, vector<32x256xbf16>, vector<64x256xf32> -> vector<64x256xf32>
    %29 = arith.addf %25, %28 : vector<64x256xf32>
    %c0_20 = arith.constant 0 : index
    %c0_21 = arith.constant 0 : index
    %30 = vector.load %arg12[%c0_20, %c0_21] : memref<64x256xf32, #tpu.memory_space<vmem>>, vector<64x256xf32>
    tpu.vector_store %arg12[%c0_20, %c0_21], %29 {strides = array<i32>} : memref<64x256xf32, #tpu.memory_space<vmem>>, vector<64x256xf32>,
    %c0_22 = arith.constant 0 : index
    %c0_23 = arith.constant 0 : index
    %31 = vector.load %arg10[%c0_22, %c0_23] : memref<64x1xf32, #tpu.memory_space<vmem>>, vector<64x1xf32>
    tpu.vector_store %arg10[%c0_22, %c0_23], %11 {strides = array<i32>} : memref<64x1xf32, #tpu.memory_space<vmem>>, vector<64x1xf32>,
    %c0_i32_24 = arith.constant 0 : i32
    %32 = arith.cmpi eq, %arg2, %c0_i32_24 : i32
    %33 = arith.extui %32 : i1 to i32
    %c0_i32_25 = arith.constant 0 : i32
    %34 = arith.cmpi ne, %33, %c0_i32_25 : i32
    scf.if %34 {
      %c0_26 = arith.constant 0 : index
      %c0_27 = arith.constant 0 : index
      %35 = vector.load %arg12[%c0_26, %c0_27] : memref<64x256xf32, #tpu.memory_space<vmem>>, vector<64x256xf32>
      %c0_28 = arith.constant 0 : index
      %c0_29 = arith.constant 0 : index
      %36 = vector.load %arg11[%c0_28, %c0_29] : memref<64x1xf32, #tpu.memory_space<vmem>>, vector<64x1xf32>
      %37 = tpu.reciprocal %36 : vector<64x1xf32> -> vector<64x1xf32>
      %38 = vector.broadcast %37 : vector<64x1xf32> to vector<64x256xf32>
      %39 = arith.mulf %35, %38 : vector<64x256xf32>
      %40 = arith.truncf %39 : vector<64x256xf32> to vector<64x256xbf16>
      %c0_30 = arith.constant 0 : index
      %c0_31 = arith.constant 0 : index
      %41 = vector.load %arg8[%c0_30, %c0_31] : memref<3x256xf32, #tpu.memory_space<vmem>>, vector<1x256xf32>
      %42 = vector.extract_strided_slice %40 {offsets = [0, 0], sizes = [8, 256], strides = [1, 1]} : vector<64x256xbf16> to vector<8x256xbf16>
      %c0_32 = arith.constant 0 : index
      %c0_33 = arith.constant 0 : index
      %c0_34 = arith.constant 0 : index
      %43 = vector.load %arg7[%c0_32, %c0_33, %c0_34] : memref<8x256x256xbf16, #tpu.memory_space<vmem>>, vector<1x256x256xbf16>
      %44 = vector.shape_cast %43 : vector<1x256x256xbf16> to vector<256x256xbf16>
      %cst_35 = arith.constant dense<0.000000e+00> : vector<8x256xf32>
      %45 = tpu.matmul %42, %44, %cst_35 {dimension_numbers = #tpu.dot_dimension_numbers<[1], [0], [0], [1], [0, 0, 1, 1], [], []>} : vector<8x256xbf16>, vector<256x256xbf16>, vector<8x256xf32> -> vector<8x256xf32>
      %46 = vector.broadcast %41 : vector<1x256xf32> to vector<8x256xf32>
      %47 = arith.addf %46, %45 : vector<8x256xf32>
      %48 = vector.extract_strided_slice %40 {offsets = [8, 0], sizes = [8, 256], strides = [1, 1]} : vector<64x256xbf16> to vector<8x256xbf16>
      %c1 = arith.constant 1 : index
      %c0_36 = arith.constant 0 : index
      %c0_37 = arith.constant 0 : index
      %49 = vector.load %arg7[%c1, %c0_36, %c0_37] : memref<8x256x256xbf16, #tpu.memory_space<vmem>>, vector<1x256x256xbf16>
      %50 = vector.shape_cast %49 : vector<1x256x256xbf16> to vector<256x256xbf16>
      %cst_38 = arith.constant dense<0.000000e+00> : vector<8x256xf32>
      %51 = tpu.matmul %48, %50, %cst_38 {dimension_numbers = #tpu.dot_dimension_numbers<[1], [0], [0], [1], [0, 0, 1, 1], [], []>} : vector<8x256xbf16>, vector<256x256xbf16>, vector<8x256xf32> -> vector<8x256xf32>
      %52 = arith.addf %47, %51 : vector<8x256xf32>
      %53 = vector.extract_strided_slice %40 {offsets = [16, 0], sizes = [8, 256], strides = [1, 1]} : vector<64x256xbf16> to vector<8x256xbf16>
      %c2 = arith.constant 2 : index
      %c0_39 = arith.constant 0 : index
      %c0_40 = arith.constant 0 : index
      %54 = vector.load %arg7[%c2, %c0_39, %c0_40] : memref<8x256x256xbf16, #tpu.memory_space<vmem>>, vector<1x256x256xbf16>
      %55 = vector.shape_cast %54 : vector<1x256x256xbf16> to vector<256x256xbf16>
      %cst_41 = arith.constant dense<0.000000e+00> : vector<8x256xf32>
      %56 = tpu.matmul %53, %55, %cst_41 {dimension_numbers = #tpu.dot_dimension_numbers<[1], [0], [0], [1], [0, 0, 1, 1], [], []>} : vector<8x256xbf16>, vector<256x256xbf16>, vector<8x256xf32> -> vector<8x256xf32>
      %57 = arith.addf %52, %56 : vector<8x256xf32>
      %58 = vector.extract_strided_slice %40 {offsets = [24, 0], sizes = [8, 256], strides = [1, 1]} : vector<64x256xbf16> to vector<8x256xbf16>
      %c3 = arith.constant 3 : index
      %c0_42 = arith.constant 0 : index
      %c0_43 = arith.constant 0 : index
      %59 = vector.load %arg7[%c3, %c0_42, %c0_43] : memref<8x256x256xbf16, #tpu.memory_space<vmem>>, vector<1x256x256xbf16>
      %60 = vector.shape_cast %59 : vector<1x256x256xbf16> to vector<256x256xbf16>
      %cst_44 = arith.constant dense<0.000000e+00> : vector<8x256xf32>
      %61 = tpu.matmul %58, %60, %cst_44 {dimension_numbers = #tpu.dot_dimension_numbers<[1], [0], [0], [1], [0, 0, 1, 1], [], []>} : vector<8x256xbf16>, vector<256x256xbf16>, vector<8x256xf32> -> vector<8x256xf32>
      %62 = arith.addf %57, %61 : vector<8x256xf32>
      %63 = vector.extract_strided_slice %40 {offsets = [32, 0], sizes = [8, 256], strides = [1, 1]} : vector<64x256xbf16> to vector<8x256xbf16>
      %c4 = arith.constant 4 : index
      %c0_45 = arith.constant 0 : index
      %c0_46 = arith.constant 0 : index
      %64 = vector.load %arg7[%c4, %c0_45, %c0_46] : memref<8x256x256xbf16, #tpu.memory_space<vmem>>, vector<1x256x256xbf16>
      %65 = vector.shape_cast %64 : vector<1x256x256xbf16> to vector<256x256xbf16>
      %cst_47 = arith.constant dense<0.000000e+00> : vector<8x256xf32>
      %66 = tpu.matmul %63, %65, %cst_47 {dimension_numbers = #tpu.dot_dimension_numbers<[1], [0], [0], [1], [0, 0, 1, 1], [], []>} : vector<8x256xbf16>, vector<256x256xbf16>, vector<8x256xf32> -> vector<8x256xf32>
      %67 = arith.addf %62, %66 : vector<8x256xf32>
      %68 = vector.extract_strided_slice %40 {offsets = [40, 0], sizes = [8, 256], strides = [1, 1]} : vector<64x256xbf16> to vector<8x256xbf16>
      %c5 = arith.constant 5 : index
      %c0_48 = arith.constant 0 : index
      %c0_49 = arith.constant 0 : index
      %69 = vector.load %arg7[%c5, %c0_48, %c0_49] : memref<8x256x256xbf16, #tpu.memory_space<vmem>>, vector<1x256x256xbf16>
      %70 = vector.shape_cast %69 : vector<1x256x256xbf16> to vector<256x256xbf16>
      %cst_50 = arith.constant dense<0.000000e+00> : vector<8x256xf32>
      %71 = tpu.matmul %68, %70, %cst_50 {dimension_numbers = #tpu.dot_dimension_numbers<[1], [0], [0], [1], [0, 0, 1, 1], [], []>} : vector<8x256xbf16>, vector<256x256xbf16>, vector<8x256xf32> -> vector<8x256xf32>
      %72 = arith.addf %67, %71 : vector<8x256xf32>
      %73 = vector.extract_strided_slice %40 {offsets = [48, 0], sizes = [8, 256], strides = [1, 1]} : vector<64x256xbf16> to vector<8x256xbf16>
      %c6 = arith.constant 6 : index
      %c0_51 = arith.constant 0 : index
      %c0_52 = arith.constant 0 : index
      %74 = vector.load %arg7[%c6, %c0_51, %c0_52] : memref<8x256x256xbf16, #tpu.memory_space<vmem>>, vector<1x256x256xbf16>
      %75 = vector.shape_cast %74 : vector<1x256x256xbf16> to vector<256x256xbf16>
      %cst_53 = arith.constant dense<0.000000e+00> : vector<8x256xf32>
      %76 = tpu.matmul %73, %75, %cst_53 {dimension_numbers = #tpu.dot_dimension_numbers<[1], [0], [0], [1], [0, 0, 1, 1], [], []>} : vector<8x256xbf16>, vector<256x256xbf16>, vector<8x256xf32> -> vector<8x256xf32>
      %77 = arith.addf %72, %76 : vector<8x256xf32>
      %78 = vector.extract_strided_slice %40 {offsets = [56, 0], sizes = [8, 256], strides = [1, 1]} : vector<64x256xbf16> to vector<8x256xbf16>
      %c7 = arith.constant 7 : index
      %c0_54 = arith.constant 0 : index
      %c0_55 = arith.constant 0 : index
      %79 = vector.load %arg7[%c7, %c0_54, %c0_55] : memref<8x256x256xbf16, #tpu.memory_space<vmem>>, vector<1x256x256xbf16>
      %80 = vector.shape_cast %79 : vector<1x256x256xbf16> to vector<256x256xbf16>
      %cst_56 = arith.constant dense<0.000000e+00> : vector<8x256xf32>
      %81 = tpu.matmul %78, %80, %cst_56 {dimension_numbers = #tpu.dot_dimension_numbers<[1], [0], [0], [1], [0, 0, 1, 1], [], []>} : vector<8x256xbf16>, vector<256x256xbf16>, vector<8x256xf32> -> vector<8x256xf32>
      %82 = arith.addf %77, %81 : vector<8x256xf32>
      %c0_57 = arith.constant 0 : index
      %c0_58 = arith.constant 0 : index
      %c0_59 = arith.constant 0 : index
      %c0_60 = arith.constant 0 : index
      %83 = vector.load %arg4[%c0_57, %c0_58, %c0_59, %c0_60] : memref<1x1x8x256xf32, #tpu.memory_space<vmem>>, vector<1x1x8x256xf32>
      %84 = vector.shape_cast %83 : vector<1x1x8x256xf32> to vector<8x256xf32>
      %85 = arith.addf %84, %82 : vector<8x256xf32>
      %cst_61 = arith.constant dense<0.000000e+00> : vector<8xf32>
      %86 = vector.multi_reduction <add>, %85, %cst_61 [1] : vector<8x256xf32> to vector<8xf32>
      %87 = vector.shape_cast %86 : vector<8xf32> to vector<8x1xf32>
      %cst_62 = arith.constant 2.560000e+02 : f32
      %88 = vector.broadcast %cst_62 : f32 to vector<8x1xf32>
      %89 = arith.divf %87, %88 : vector<8x1xf32>
      %90 = vector.broadcast %89 : vector<8x1xf32> to vector<8x256xf32>
      %91 = arith.subf %85, %90 : vector<8x256xf32>
      %92 = arith.mulf %91, %91 : vector<8x256xf32>
      %cst_63 = arith.constant dense<0.000000e+00> : vector<8xf32>
      %93 = vector.multi_reduction <add>, %92, %cst_63 [1] : vector<8x256xf32> to vector<8xf32>
      %94 = vector.shape_cast %93 : vector<8xf32> to vector<8x1xf32>
      %cst_64 = arith.constant 2.560000e+02 : f32
      %95 = vector.broadcast %cst_64 : f32 to vector<8x1xf32>
      %96 = arith.divf %94, %95 : vector<8x1xf32>
      %97 = vector.broadcast %89 : vector<8x1xf32> to vector<8x256xf32>
      %98 = arith.subf %85, %97 : vector<8x256xf32>
      %cst_65 = arith.constant 9.99999974E-6 : f32
      %99 = vector.broadcast %cst_65 : f32 to vector<8x1xf32>
      %100 = arith.addf %96, %99 : vector<8x1xf32>
      %101 = math.rsqrt %100 : vector<8x1xf32>
      %102 = vector.broadcast %101 : vector<8x1xf32> to vector<8x256xf32>
      %103 = arith.mulf %98, %102 : vector<8x256xf32>
      %c1_66 = arith.constant 1 : index
      %c0_67 = arith.constant 0 : index
      %104 = vector.load %arg8[%c1_66, %c0_67] : memref<3x256xf32, #tpu.memory_space<vmem>>, vector<1x256xf32>
      %105 = vector.broadcast %104 : vector<1x256xf32> to vector<8x256xf32>
      %106 = arith.mulf %103, %105 : vector<8x256xf32>
      %c2_68 = arith.constant 2 : index
      %c0_69 = arith.constant 0 : index
      %107 = vector.load %arg8[%c2_68, %c0_69] : memref<3x256xf32, #tpu.memory_space<vmem>>, vector<1x256xf32>
      %108 = vector.broadcast %107 : vector<1x256xf32> to vector<8x256xf32>
      %109 = arith.addf %106, %108 : vector<8x256xf32>
      %c0_70 = arith.constant 0 : index
      %c0_71 = arith.constant 0 : index
      %c0_72 = arith.constant 0 : index
      %c0_73 = arith.constant 0 : index
      %110 = vector.load %arg9[%c0_70, %c0_71, %c0_72, %c0_73] : memref<1x1x8x256xf32, #tpu.memory_space<vmem>>, vector<1x1x8x256xf32>
      %111 = vector.shape_cast %110 : vector<1x1x8x256xf32> to vector<8x256xf32>
      %112 = vector.shape_cast %109 : vector<8x256xf32> to vector<1x1x8x256xf32>
      tpu.vector_store %arg9[%c0_70, %c0_71, %c0_72, %c0_73], %112 {strides = array<i32>} : memref<1x1x8x256xf32, #tpu.memory_space<vmem>>, vector<1x1x8x256xf32>,
    } else {
    }
    return
  }
  func.func @transform_0(%arg0: i32, %arg1: i32, %arg2: i32) -> (i32, i32, i32, i32) {
    %c0_i32 = arith.constant 0 : i32
    %c0_i32_0 = arith.constant 0 : i32
    %c0_i32_1 = arith.constant 0 : i32
    return %arg0, %arg1, %c0_i32, %c0_i32_0 : i32, i32, i32, i32
  }
  func.func @transform_1(%arg0: i32, %arg1: i32, %arg2: i32) -> (i32, i32, i32, i32) {
    %c0_i32 = arith.constant 0 : i32
    %c0_i32_0 = arith.constant 0 : i32
    %c0_i32_1 = arith.constant 0 : i32
    return %arg0, %arg1, %c0_i32, %c0_i32_0 : i32, i32, i32, i32
  }
  func.func @transform_2(%arg0: i32, %arg1: i32, %arg2: i32) -> (i32, i32, i32) {
    %c0_i32 = arith.constant 0 : i32
    %c0_i32_0 = arith.constant 0 : i32
    return %arg0, %c0_i32, %arg2 : i32, i32, i32
  }
  func.func @transform_3(%arg0: i32, %arg1: i32, %arg2: i32) -> (i32, i32) {
    %c0_i32 = arith.constant 0 : i32
    return %arg2, %arg0 : i32, i32
  }
  func.func @transform_4(%arg0: i32, %arg1: i32, %arg2: i32) -> (i32, i32, i32) {
    %c0_i32 = arith.constant 0 : i32
    %c0_i32_0 = arith.constant 0 : i32
    %c0_i32_1 = arith.constant 0 : i32
    %c0_i32_2 = arith.constant 0 : i32
    return %c0_i32, %c0_i32_0, %c0_i32_1 : i32, i32, i32
  }
  func.func @transform_5(%arg0: i32, %arg1: i32, %arg2: i32) -> (i32, i32) {
    %c0_i32 = arith.constant 0 : i32
    %c0_i32_0 = arith.constant 0 : i32
    %c0_i32_1 = arith.constant 0 : i32
    return %c0_i32, %c0_i32_0 : i32, i32
  }
  func.func @transform_6(%arg0: i32, %arg1: i32, %arg2: i32) -> (i32, i32, i32, i32) {
    %c0_i32 = arith.constant 0 : i32
    %c0_i32_0 = arith.constant 0 : i32
    %c0_i32_1 = arith.constant 0 : i32
    return %arg0, %arg1, %c0_i32, %c0_i32_0 : i32, i32, i32, i32
  }
}

</mosaic_0001>

<bundles_post_ra>
// kernel: tpu_custom_call.1
= control target key start
LH: loop header
LB: loop body
LE: loop exit
PB: predicated region body
PF: predicated region fallthrough
CT: control target
= control target key end

     0   :  { %11 = vsyncpa [#allocation7], 0  ;;  %s5832_s0 = inlined_call_operand.vmem [shape: bf16[2,1,64,256], index: 0, kind: input, shape index: {}]   ;;  %s5833_s1 = inlined_call_operand.vmem [shape: f32[2,1,8,256], index: 1, kind: input, shape index: {}]   ;;  %s5834_s2 = inlined_call_operand.vmem [shape: bf16[2,256,32], index: 2, kind: input, shape index: {}]   ;;  %s5835_s3 = inlined_call_operand.vmem [shape: bf16[32,512], index: 3, kind: input, shape index: {}]   ;;  %s5836_s4 = inlined_call_operand.hbm [shape: bf16[8,256,256], index: 4, kind: input, shape index: {}]   ;;  %s5837_s5 = inlined_call_operand.vmem [shape: f32[3,256], index: 5, kind: input, shape index: {}]   ;;  %s5838_s6 = inlined_call_operand.hbm [shape: f32[2,1,8,256], index: 6, kind: output, shape index: {}]  }
   0x1   :  { %12 = vsyncpa [#allocation8], 0 }
   0x2   :  { %14 = vsyncpa [#allocation8 + $0x1], 0  ;;  %s5320_s21 = smov 0   ;;  %s5322_s22 = smov 0  }
   0x3   :  { %s5324_s23 = smov 0   ;;  %s5326_s24 = smov 0  }
   0x4   :  { %s5328_s25 = smov 0   ;;  %s5330_s26 = smov 0  }
   0x5 LB: > { %s3579_s27 = sadd.s32 4294967295, %s5276_s26   ;;  %s3580_s28 = sadd.s32 4294967294, %s5276_s26   ;;  %s5276_s26 = sphi %s5330_s26, %s20_s26   ;;  %s5272_s25 = sphi %s5328_s25, %s5852_s25   ;;  %s5268_s24 = sphi %s5326_s24, %s5851_s24   ;;  %s5264_s23 = sphi %s5324_s23, %s5850_s23   ;;  %s5260_s22 = sphi %s5322_s22, %s5849_s22   ;;  %s5256_s21 = sphi %s5320_s21, %s5848_s21  }
   0x6   : > { %s39_s29 = sadd.s32 1, %s5272_s25  ;;  %s132_s30 = sadd.s32 1, %s5264_s23 }
   0x7   : > { %p41_p0 = scmp.ge.s32.totalorder %s39_s29, 2  ;;  %p139_p1 = scmp.ne.s32.totalorder %s5264_s23, %s5260_s22 }
   0x8   : > { %p140_p2 = scmp.eq.s32.totalorder %s5276_s26, 0  ;;  %p213_p3 = scmp.eq.s32.totalorder %s3579_s27, 1 }
   0x9   : > { %s5854_s29 = smov (%p41_p0, %s39_s29), 0  ;;  %p218_p6 = scmp.ne.s32.totalorder %s5260_s22, %s5256_s21 }
   0xa   : > { %p5359_p4 = por %p140_p2, %p139_p1  ;;  %p5363_p5 = por %p213_p3, %p139_p1 }
   0xb   : > { %s128_s9 = ssub.s32 %s5272_s25, %s5854_s29  ;;  %p219_p8 = scmp.eq.s32.totalorder %s3580_s28, 1 }
   0xc   : > { %p130_p7 = scmp.eq.s32.totalorder %s128_s9, 0  ;;  %p3581_p9 = scmp.ge.s32.totalorder %s5276_s26, 1 }
   0xd   : > { %p226_p10 = scmp.lt.s32.totalorder %s5276_s26, 3  ;;  %p5376_p11 = por %p219_p8, %p218_p6 }
   0xe   : > { %s5374_s10 = scalar_select %p130_p7, %s5264_s23, %s132_s30  }
   0xf   : > { %p5380_p12 = pnand %p3581_p9, %p226_p10  ;;  %p5384_p13 = scmp.eq.s32.totalorder %s3579_s27, 0 }
  0x10   : > { %s237_s16 = sshll.u32 %s5836_s4, 4  ;;  %s5278_s17 = smov [#allocation6]   ;;  %s238_s16 = int_to_ptr.hbm [resolvable:$true] %s237_s16 }
  0x11   : > { %p5043_p0 = pneg %p5380_p12  ;;  %s239_s18 = sshll.u32 %s5278_s17, 4  ;;  %s240_s18 = int_to_ptr.vmem [resolvable:$true] %s239_s18 }
  0x12   : > { %s5279_s19 = smov 128   ;;  %s5280_s20 = smov 8  }
  0x13   : > { %p5044_p1 = pnand %p5384_p13, %p5043_p0  ;;  %p3583_p2 = scmp.ge.s32.totalorder %s5276_s26, 2 }
  0x15   : > { %5046 = dma.hbm_to_vmem [thread:$0]  (!%p5044_p1), %s238_s16, 32768, %s240_s18, [#allocation7], %s5279_s19, %s5279_s19, %s5280_s20  }
  0x16   : > { %252 = sbr.rel (%p3583_p2) target bundleno = 35 (0x23), region = 24 }
  0x1b   : > { %290 = sbr.rel (!%p5359_p4) target bundleno = 35 (0x23), region = 40  ;;  %s292_s27 = sand.u32 (%p5359_p4), 1, %s5264_s23  }
  0x1c   : > { %s4748_s28 = sshll.u32 (%p5359_p4), %s5272_s25, 3  ;;  %s3584_s30 = sshll.u32 (%p5359_p4), %s292_s27, 5 }
  0x1d   : > { %s300_s15 = scalar_lea.vmem (%p5359_p4), %s5835_s3, %s4748_s28  ;;  %s294_s16 = scalar_lea.vmem (%p5359_p4), [#allocation5], %s3584_s30 }
  0x1e   : > { %v335_v0 = vld [vmem:[%s300_s15] sm:$0xff] (%p5359_p4)  ;;  %v337_v1 = vld [vmem:[%s300_s15 + $0x10] sm:$0xff] (%p5359_p4) }
  0x1f   : > { %v339_v2 = vld [vmem:[%s300_s15 + $0x20] sm:$0xff] (%p5359_p4)  ;;  %336 = vst [vmem:[%s294_s16] sm:$0xff] (%p5359_p4), %v335_v0  ;;  %v341_v3 = vld [vmem:[%s300_s15 + $0x30] sm:$0xff] (%p5359_p4) }
  0x20   : > { %338 = vst [vmem:[%s294_s16 + $0x8] sm:$0xff] %v337_v1 }
  0x21   : > { %340 = vst [vmem:[%s294_s16 + $0x10] sm:$0xff] %v339_v2 }
  0x22   : > { %342 = vst [vmem:[%s294_s16 + $0x18] sm:$0xff] %v341_v3 }
  0x23 PF: > { %351 = sbr.rel (%p5380_p12) target bundleno = 1326 (0x52e), region = 78  ;;  %s5408_s7 = sand.u32 (!%p5380_p12), 1, %s5260_s22  }
  0x24   : > { %s3588_s17 = sshll.u32 (!%p5380_p12), %s5408_s7, 5 }
  0x25   : > { %s5411_s18 = scalar_lea.vmem (!%p5380_p12), [#allocation5], %s3588_s17 }
  0x28   : > { %5247 = dma.done.wait (%p5384_p13), [#allocation7], 32768  }
  0x29   : > { %5249 = vsyncadd (%p5384_p13), [#allocation7], 4294934528  ;;  %p414_p3 = scmp.lt.s32.totalorder %s5268_s24, 1  ;;  %vm722_vm0 = vcmask 261120   ;;  %vm447_vm1 = vcmask 7168   ;;  %v5281_v59 = vmov -inf  }
  0x2a   : > { %448 = vst.msk [vmem:[#allocation2] sm:$0xff] %vm447_vm1, %v5281_v59 }
  0x2b   : > { %s5419_s19 = scalar_select %p414_p3, %s5268_s24, 1  ;;  %449 = vst.msk [vmem:[#allocation2 + $0x8] sm:$0xff] %vm447_vm1, %v5281_v59 }
  0x2c   : > { %450 = vst.msk [vmem:[#allocation2 + $0x10] sm:$0xff] %vm447_vm1, %v5281_v59 }
  0x2d   : > { %s4751_s12 = sshll.u32 %s5419_s19, 7  ;;  %s4749_s13 = sshll.u32 %s5419_s19, 6  ;;  %451 = vst.msk [vmem:[#allocation2 + $0x18] sm:$0xff] %vm447_vm1, %v5281_v59 }
  0x2e   : > { %s5425_s28 = scalar_lea.vmem %s5834_s2, %s4751_s12  ;;  %s5445_s14 = scalar_lea.vmem %s5832_s0, %s4749_s13  ;;  %452 = vst.msk [vmem:[#allocation2 + $0x20] sm:$0xff] %vm447_vm1, %v5281_v59 }
  0x2f   : > { %v4767_v4 = vld [vmem:[%s5425_s28 + $0x38] sm:$0xff]  ;;  %v4766_v6 = vld [vmem:[%s5425_s28 + $0x30] sm:$0xff]  ;;  %v4765_v8 = vld [vmem:[%s5425_s28 + $0x28] sm:$0xff]  ;;  %453 = vst.msk [vmem:[#allocation2 + $0x28] sm:$0xff] %vm447_vm1, %v5281_v59  ;;  %s4750_s17 = sshll.u32 %s5419_s19, 4  ;;  %s5036_s13 = sshll.u32 %s5268_s24, 4 }
  0x30   : > { %v4775_v5 = vld [vmem:[%s5425_s28 + $0x78] sm:$0xff]  ;;  %656 = vmatpush.bf16.msra.mxu0 %v4767_v4  ;;  %v4774_v7 = vld [vmem:[%s5425_s28 + $0x70] sm:$0xff]  ;;  %v4773_v9 = vld [vmem:[%s5425_s28 + $0x68] sm:$0xff]  ;;  %454 = vst.msk [vmem:[#allocation2 + $0x30] sm:$0xff] %vm447_vm1, %v5281_v59  ;;  %s431_s20 = scalar_lea.vmem %s5833_s1, %s4750_s17  ;;  %s3420_s16 = scalar_lea.hbm %s5838_s6, %s5036_s13 }
  0x31   : > { %685 = vmatpush.bf16.msra.mxu1 %v4775_v5  ;;  %v4764_v10 = vld [vmem:[%s5425_s28 + $0x20] sm:$0xff]  ;;  %v4763_v12 = vld [vmem:[%s5425_s28 + $0x18] sm:$0xff]  ;;  %v4762_v14 = vld [vmem:[%s5425_s28 + $0x10] sm:$0xff]  ;;  %455 = vst.msk [vmem:[#allocation2 + $0x38] sm:$0xff] %vm447_vm1, %v5281_v59  ;;  %s3407_s12 = scalar_lea.sflag [#allocation8], %s5408_s7 }
  0x32   : > { %v4772_v11 = vld [vmem:[%s5425_s28 + $0x60] sm:$0xff]  ;;  %v4771_v13 = vld [vmem:[%s5425_s28 + $0x58] sm:$0xff]  ;;  %v4770_v15 = vld [vmem:[%s5425_s28 + $0x50] sm:$0xff] }
  0x33   : > { %v4761_v16 = vld [vmem:[%s5425_s28 + $0x8] sm:$0xff]  ;;  %v4760_v18 = vld [vmem:[%s5425_s28] sm:$0xff]  ;;  %v3607_v26 = vld [vmem:[%s5445_s14 + $0x10] sm:$0xf] }
  0x34   : > { %657 = vmatpush.bf16.msra.mxu0 %v4766_v6  ;;  %v4769_v17 = vld [vmem:[%s5425_s28 + $0x48] sm:$0xff]  ;;  %v4768_v19 = vld [vmem:[%s5425_s28 + $0x40] sm:$0xff]  ;;  %v4755_v27 = vld [vmem:[%s5445_s14 + $0x14] sm:$0xf0]  ;;  %s3590_s28 = sshll.u32 %s5408_s7, 4 }
  0x35   : > { %686 = vmatpush.bf16.msra.mxu1 %v4774_v7  ;;  %v3599_v20 = vld [vmem:[%s5445_s14] sm:$0xf]  ;;  %v4753_v21 = vld [vmem:[%s5445_s14 + $0x4] sm:$0xf0]  ;;  %v4752_v22 = vld [vmem:[%s5445_s14 + $0x4] sm:$0xf]  ;;  %v3608_v30 = vor.u32 %v4755_v27, %v3607_v26 }
  0x36   : > { %v3601_v23 = vld [vmem:[%s5445_s14 + $0x8] sm:$0xf0]  ;;  %v3600_v24 = vor.u32 %v4753_v21, %v3599_v20  ;;  %v4754_v28 = vld [vmem:[%s5445_s14 + $0x14] sm:$0xf]  ;;  %v3609_v29 = vld [vmem:[%s5445_s14 + $0x18] sm:$0xf0] }
  0x37   : > { %v3604_v25 = vor.u32 %v4752_v22, %v3601_v23  ;;  %v3612_v31 = vor.u32 %v4754_v28, %v3609_v29  ;;  %v3615_v32 = vld [vmem:[%s5445_s14 + $0x20] sm:$0xf]  ;;  %v4757_v33 = vld [vmem:[%s5445_s14 + $0x24] sm:$0xf0]  ;;  %v4756_v34 = vld [vmem:[%s5445_s14 + $0x24] sm:$0xf] }
  0x38   : > { %658 = vmatpush.bf16.msra.mxu0 %v4765_v8  ;;  %v3617_v35 = vld [vmem:[%s5445_s14 + $0x28] sm:$0xf0]  ;;  %v3616_v36 = vor.u32 %v4757_v33, %v3615_v32  ;;  %v3623_v38 = vld [vmem:[%s5445_s14 + $0x30] sm:$0xf]  ;;  %v4759_v39 = vld [vmem:[%s5445_s14 + $0x34] sm:$0xf0] }
  0x39   : > { %687 = vmatpush.bf16.msra.mxu1 %v4773_v9  ;;  %v3620_v37 = vor.u32 %v4756_v34, %v3617_v35  ;;  %v4758_v40 = vld [vmem:[%s5445_s14 + $0x34] sm:$0xf]  ;;  %v3625_v41 = vld [vmem:[%s5445_s14 + $0x38] sm:$0xf0]  ;;  %v3624_v42 = vor.u32 %v4759_v39, %v3623_v38  ;;  %v5282_v9 = vmov 0   ;;  %v5549_v27 = vld [vmem:[#allocation2 + $0x20] sm:$0xff] }
  0x3a   : > { %v3628_v43 = vor.u32 %v4758_v40, %v3625_v41  ;;  %5109 = vset.pattern.permute.xlu2 %v5282_v9  ;;  %5110 = vset.pattern.permute.xlu0 %v5282_v9  ;;  %v5539_v23 = vld [vmem:[#allocation2 + $0x18] sm:$0xff]  ;;  %v5569_v35 = vld [vmem:[#allocation2 + $0x30] sm:$0xff]  ;;  %s413_s24 = scalar_lea.vmem [#allocation9], %s3590_s28  ;;  %s5214_s28 = scalar_lea.hbm %s5838_s6, 32 }
  0x3b   : > { %5111 = vset.pattern.permute.xlu1 %v5282_v9  ;;  %s3422_s17 = sshll.u32 %s413_s24, 4  ;;  %s3423_s17 = int_to_ptr.vmem [resolvable:$true] %s3422_s17 }
  0x3c   : > { %659 = vmatpush.bf16.msra.mxu0 %v4764_v10  ;;  %v5283_v10 = vmov 0.0  }
  0x3d   : > { %688 = vmatpush.bf16.msra.mxu1 %v4772_v11  ;;  %456 = vst.msk [vmem:[#allocation3] sm:$0xff] %vm447_vm1, %v5283_v10  ;;  %v5509_v11 = vld [vmem:[#allocation2] sm:$0xff] }
  0x3e   : > { %457 = vst.msk [vmem:[#allocation3 + $0x8] sm:$0xff] %vm447_vm1, %v5283_v10 }
  0x3f   : > { %458 = vst.msk [vmem:[#allocation3 + $0x10] sm:$0xff] %vm447_vm1, %v5283_v10 }
  0x40   : > { %660 = vmatpush.bf16.msra.mxu0 %v4763_v12  ;;  %459 = vst.msk [vmem:[#allocation3 + $0x18] sm:$0xff] %vm447_vm1, %v5283_v10 }
  0x41   : > { %689 = vmatpush.bf16.msra.mxu1 %v4771_v13  ;;  %460 = vst.msk [vmem:[#allocation3 + $0x20] sm:$0xff] %vm447_vm1, %v5283_v10 }
  0x42   : > { %461 = vst.msk [vmem:[#allocation3 + $0x28] sm:$0xff] %vm447_vm1, %v5283_v10 }
  0x43   : > { %462 = vst.msk [vmem:[#allocation3 + $0x30] sm:$0xff] %vm447_vm1, %v5283_v10 }
  0x44   : > { %661 = vmatpush.bf16.msra.mxu0 %v4762_v14  ;;  %463 = vst.msk [vmem:[#allocation3 + $0x38] sm:$0xff] %vm447_vm1, %v5283_v10 }
  0x45   : > { %690 = vmatpush.bf16.msra.mxu1 %v4770_v15  ;;  %v5519_v15 = vld [vmem:[#allocation2 + $0x8] sm:$0xff] }
  0x48   : > { %662 = vmatpush.bf16.msra.mxu0 %v4761_v16 }
  0x49   : > { %691 = vmatpush.bf16.msra.mxu1 %v4769_v17 }
  0x4c   : > { %663 = vmatpush.bf16.msra.mxu0 %v4760_v18 }
  0x4d   : > { %692 = vmatpush.bf16.msra.mxu1 %v4768_v19  ;;  %v5529_v19 = vld [vmem:[#allocation2 + $0x10] sm:$0xff] }
  0x4f   : > { %664 = vmatmul.bf16.vlgmr.msra.gmra.mxu0 %v3600_v24 }
  0x50   : > { %693 = vmatmul.bf16.vlgmr.msra.gmra.mxu1 %v3604_v25 }
  0x5f   : > { %669 = vmatmul.bf16.gmra.mxu0 %v3608_v30 }
  0x60   : > { %698 = vmatmul.bf16.gmra.mxu1 %v3612_v31  ;;  %v5559_v31 = vld [vmem:[#allocation2 + $0x28] sm:$0xff] }
  0x6f   : > { %674 = vmatmul.bf16.gmra.mxu0 %v3616_v36 }
  0x70   : > { %703 = vmatmul.bf16.gmra.mxu1 %v3620_v37 }
  0x7f   : > { %679 = vmatmul.bf16.gmra.mxu0 %v3624_v42 }
  0x80   : > { %708 = vmatmul.bf16.gmra.mxu1 %v3628_v43  ;;  %v3703_v43 = vld [vmem:[%s5411_s18 + $0x10] sm:$0xf] }
  0xcc   : > { %v665_v44 = vpop.f32.mrf.mxu0 }
  0xcd   : > { %v694_v45 = vpop.f32.mrf.mxu1 }
  0xce   : > { %v5465_v46 = vadd.f32 %v694_v45, %v665_v44  ;;  %v4779_v44 = vld [vmem:[%s5411_s18 + $0x14] sm:$0xf0]  ;;  %v4778_v45 = vld [vmem:[%s5411_s18 + $0x14] sm:$0xf] }
  0xd0   : > { %v723_v47 = vsel %vm722_vm0, %v5465_v46, -inf }
  0xd1   : > { %724 = vmax.xlane.f32.xlu0 %v723_v47  ;;  %v3704_v47 = vor.u32 %v4779_v44, %v3703_v43 }
  0xd3   : > { %1018 = vmatpush.bf16.msra.mxu2 %v3704_v47 }
  0xd4   : > { %v667_v48 = vpop.f32.mrf.mxu0 }
  0xd5   : > { %v696_v49 = vpop.f32.mrf.mxu1 }
  0xd6   : > { %v5469_v50 = vadd.f32 %v696_v49, %v667_v48  ;;  %v3705_v48 = vld [vmem:[%s5411_s18 + $0x18] sm:$0xf0] }
  0xd7   : > { %v3708_v49 = vor.u32 %v4778_v45, %v3705_v48 }
  0xd8   : > { %v726_v51 = vsel %vm722_vm0, %v5469_v50, -inf }
  0xd9   : > { %727 = vmax.xlane.f32.xlu0 %v726_v51  ;;  %1047 = vmatpush.bf16.msra.mxu3 %v3708_v49  ;;  %v3695_v51 = vld [vmem:[%s5411_s18] sm:$0xf]  ;;  %v5610_v49 = vld [vmem:[#allocation2 + $0x38] sm:$0xff] }
  0xdc   : > { %v670_v52 = vpop.f32.mrf.mxu0 }
  0xdd   : > { %v699_v53 = vpop.f32.mrf.mxu1 }
  0xde   : > { %v5473_v54 = vadd.f32 %v699_v53, %v670_v52  ;;  %v4777_v52 = vld [vmem:[%s5411_s18 + $0x4] sm:$0xf0]  ;;  %v4776_v53 = vld [vmem:[%s5411_s18 + $0x4] sm:$0xf] }
  0xe0   : > { %v729_v55 = vsel %vm722_vm0, %v5473_v54, -inf }
  0xe1   : > { %730 = vmax.xlane.f32.xlu1 %v729_v55  ;;  %v3696_v55 = vor.u32 %v4777_v52, %v3695_v51 }
  0xe3   : > { %1019 = vmatpush.bf16.msra.mxu2 %v3696_v55 }
  0xe4   : > { %v672_v56 = vpop.f32.mrf.mxu0 }
  0xe5   : > { %v701_v57 = vpop.f32.mrf.mxu1 }
  0xe6   : > { %v5477_v58 = vadd.f32 %v701_v57, %v672_v56  ;;  %v3697_v56 = vld [vmem:[%s5411_s18 + $0x8] sm:$0xf0]  ;;  %s3424_s18 = sshll.u32 %s3420_s16, 4  ;;  %s3425_s18 = int_to_ptr.hbm [resolvable:$true] %s3424_s18 }
  0xe7   : > { %v3700_v57 = vor.u32 %v4776_v53, %v3697_v56 }
  0xe8   : > { %v732_v60 = vsel %vm722_vm0, %v5477_v58, -inf }
  0xe9   : > { %733 = vmax.xlane.f32.xlu1 %v732_v60  ;;  %1048 = vmatpush.bf16.msra.mxu3 %v3700_v57 }
  0xec   : > { %v675_v61 = vpop.f32.mrf.mxu0 }
  0xed   : > { %v704_v62 = vpop.f32.mrf.mxu1 }
  0xee   : > { %v5488_v63 = vadd.f32 %v704_v62, %v675_v61 }
  0xf0   : > { %v735_v0 = vsel %vm722_vm0, %v5488_v63, -inf }
  0xf1   : > { %736 = vmax.xlane.f32.xlu0 %v735_v0 }
  0xf4   : > { %v677_v1 = vpop.f32.mrf.mxu0 }
  0xf5   : > { %v706_v2 = vpop.f32.mrf.mxu1 }
  0xf6   : > { %v5493_v3 = vadd.f32 %v706_v2, %v677_v1 }
  0xf8   : > { %v738_v4 = vsel %vm722_vm0, %v5493_v3, -inf }
  0xf9   : > { %739 = vmax.xlane.f32.xlu1 %v738_v4 }
  0xfc   : > { %v680_v5 = vpop.f32.mrf.mxu0 }
  0xfd   : > { %v709_v6 = vpop.f32.mrf.mxu1 }
  0xfe   : > { %v5497_v7 = vadd.f32 %v709_v6, %v680_v5 }
 0x100   : > { %v741_v8 = vsel %vm722_vm0, %v5497_v7, -inf }
 0x101   : > { %742 = vmax.xlane.f32.xlu1 %v741_v8 }
 0x104   : > { %v682_v39 = vpop.f32.mrf.mxu0 }
 0x105   : > { %v711_v40 = vpop.f32.mrf.mxu1 }
 0x106   : > { %v5579_v41 = vadd.f32 %v711_v40, %v682_v39 }
 0x108   : > { %v744_v42 = vsel %vm722_vm0, %v5579_v41, -inf }
 0x144   : > { %v725_v12 = vpop.xlane.xlu0 %724 }
 0x145   : > { %v5512_v13 = vmax.f32 %v5509_v11, %v725_v12 }
 0x147   : > { %v755_v14 = vsub.f32 %v5509_v11, %v5512_v13  ;;  %1102 = vst.msk [vmem:[#allocation2] sm:$0xff] %vm447_vm1, %v5512_v13  ;;  %781 = vperm.xlu2 %5109, %v5512_v13  }
 0x14c   : > { %v728_v16 = vpop.xlane.xlu0 %727 }
 0x14d   : > { %v5522_v17 = vmax.f32 %v5519_v15, %v728_v16 }
 0x14f   : > { %v756_v18 = vsub.f32 %v5519_v15, %v5522_v17  ;;  %1103 = vst.msk [vmem:[#allocation2 + $0x8] sm:$0xff] %vm447_vm1, %v5522_v17  ;;  %786 = vperm.xlu2 %5109, %v5522_v17  }
 0x151   : > { %v765_v11 = vmul.f32 1.442695, %v756_v18 }
 0x154   : > { %v731_v20 = vpop.xlane.xlu1 %730 }
 0x155   : > { %v5532_v21 = vmax.f32 %v5529_v19, %v731_v20 }
 0x157   : > { %v757_v22 = vsub.f32 %v5529_v19, %v5532_v21  ;;  %1104 = vst.msk [vmem:[#allocation2 + $0x10] sm:$0xff] %vm447_vm1, %v5532_v21  ;;  %791 = vperm.xlu2 %5109, %v5532_v21  }
 0x15c   : > { %v734_v24 = vpop.xlane.xlu1 %733 }
 0x15d   : > { %v5542_v25 = vmax.f32 %v5539_v23, %v734_v24 }
 0x15f   : > { %v758_v26 = vsub.f32 %v5539_v23, %v5542_v25  ;;  %1105 = vst.msk [vmem:[#allocation2 + $0x18] sm:$0xff] %vm447_vm1, %v5542_v25  ;;  %796 = vperm.xlu0 %5110, %v5542_v25  }
 0x164   : > { %v737_v28 = vpop.xlane.xlu0 %736 }
 0x165   : > { %v5552_v29 = vmax.f32 %v5549_v27, %v737_v28 }
 0x167   : > { %v759_v30 = vsub.f32 %v5549_v27, %v5552_v29  ;;  %1106 = vst.msk [vmem:[#allocation2 + $0x20] sm:$0xff] %vm447_vm1, %v5552_v29  ;;  %801 = vperm.xlu1 %5111, %v5552_v29   ;;  %v847_v29 = vld [vmem:[#allocation3 + $0x20] sm:$0xff] }
 0x16c   : > { %v740_v32 = vpop.xlane.xlu1 %739 }
 0x16d   : > { %v5562_v33 = vmax.f32 %v5559_v31, %v740_v32 }
 0x16f   : > { %v760_v34 = vsub.f32 %v5559_v31, %v5562_v33  ;;  %1107 = vst.msk [vmem:[#allocation2 + $0x28] sm:$0xff] %vm447_vm1, %v5562_v33  ;;  %806 = vperm.xlu1 %5111, %v5562_v33   ;;  %v3719_v31 = vld [vmem:[#allocation6] sm:$0xf]  ;;  %v4781_v33 = vld [vmem:[#allocation6 + $0x4] sm:$0xf0] }
 0x174   : > { %v743_v36 = vpop.xlane.xlu1 %742 }
 0x175   : > { %v5572_v37 = vmax.f32 %v5569_v35, %v743_v36 }
 0x177   : > { %v761_v38 = vsub.f32 %v5569_v35, %v5572_v37  ;;  %1108 = vst.msk [vmem:[#allocation2 + $0x30] sm:$0xff] %vm447_vm1, %v5572_v37  ;;  %811 = vperm.xlu1 %5111, %v5572_v37  }
 0x180   : > { %745 = vmax.xlane.f32.xlu2 %v744_v42 }
 0x1a1   : > { %v782_v59 = vpop.permute.xlu2 %781 }
 0x1a2   : > { %v819_v60 = vsub.f32 %v5465_v46, %v782_v59 }
 0x1a4   : > { %v827_v61 = vmul.f32 1.442695, %v819_v60 }
 0x1a6   : > { %5112 = vpow2.f32 %v827_v61  ;;  %v844_v61 = vld [vmem:[#allocation3 + $0x8] sm:$0xff] }
 0x1a9   : > { %v787_v62 = vpop.permute.xlu2 %786 }
 0x1aa   : > { %v820_v0 = vsub.f32 %v5469_v50, %v787_v62 }
 0x1ac   : > { %v5113_v1 = vpop.eup %5112  ;;  %v829_v2 = vmul.f32 1.442695, %v820_v0 }
 0x1ad   : > { %v859_v4 = vsel %vm722_vm0, %v5113_v1, 0.0 }
 0x1ae   : > { %5114 = vpow2.f32 %v829_v2  ;;  %860 = vadd.xlane.f32.xlu0 %v859_v4  ;;  %v767_v4 = vmul.f32 1.442695, %v757_v22 }
 0x1b1   : > { %v792_v46 = vpop.permute.xlu2 %791 }
 0x1b2   : > { %v821_v9 = vsub.f32 %v5473_v54, %v792_v46 }
 0x1b4   : > { %v5115_v5 = vpop.eup %5114  ;;  %v831_v10 = vmul.f32 1.442695, %v821_v9 }
 0x1b5   : > { %v862_v6 = vsel %vm722_vm0, %v5115_v5, 0.0  ;;  %v972_v8 = vpack.c.bf16 %v5115_v5, %v5113_v1 }
 0x1b6   : > { %863 = vadd.xlane.f32.xlu1 %v862_v6  ;;  %5116 = vpow2.f32 %v831_v10 }
 0x1b7   : > { %3709 = vmatmul.msk.bf16.vlgmr.msra.gmra.mxu2 %vm722_vm0, %v972_v8  ;;  %3713 = vmatmul.msk.bf16.vlgmr.msra.gmra.mxu3 %vm722_vm0, %v972_v8 }
 0x1bc   : > { %v5117_v28 = vpop.eup %5116 }
 0x1bd   : > { %v865_v53 = vsel %vm722_vm0, %v5117_v28, 0.0 }
 0x1d1   : > { %v797_v50 = vpop.permute.xlu0 %796 }
 0x1d2   : > { %v822_v12 = vsub.f32 %v5477_v58, %v797_v50 }
 0x1d4   : > { %v833_v16 = vmul.f32 1.442695, %v822_v12 }
 0x1d6   : > { %5118 = vpow2.f32 %v833_v16 }
 0x1d9   : > { %v802_v20 = vpop.permute.xlu1 %801 }
 0x1da   : > { %v823_v24 = vsub.f32 %v5488_v63, %v802_v20  ;;  %v763_v63 = vmul.f32 1.442695, %v755_v14  ;;  %v843_v14 = vld [vmem:[#allocation3] sm:$0xff] }
 0x1dc   : > { %v5119_v32 = vpop.eup %5118  ;;  %v835_v36 = vmul.f32 1.442695, %v823_v24 }
 0x1dd   : > { %v868_v39 = vsel %vm722_vm0, %v5119_v32, 0.0  ;;  %v973_v40 = vpack.c.bf16 %v5119_v32, %v5117_v28 }
 0x1de   : > { %5120 = vpow2.f32 %v835_v36  ;;  %869 = vadd.xlane.f32.xlu0 %v868_v39  ;;  %v769_v39 = vmul.f32 1.442695, %v758_v26 }
 0x1df   : > { %3710 = vmatmul.msk.bf16.gmra.mxu2 %vm722_vm0, %v973_v40  ;;  %3714 = vmatmul.msk.bf16.gmra.mxu3 %vm722_vm0, %v973_v40 }
 0x1e1   : > { %v807_v54 = vpop.permute.xlu1 %806 }
 0x1e2   : > { %v824_v58 = vsub.f32 %v5493_v3, %v807_v54 }
 0x1e4   : > { %v5121_v42 = vpop.eup %5120  ;;  %v837_v43 = vmul.f32 1.442695, %v824_v58  ;;  %v771_v58 = vmul.f32 1.442695, %v759_v30 }
 0x1e5   : > { %v871_v44 = vsel %vm722_vm0, %v5121_v42, 0.0 }
 0x1e6   : > { %5122 = vpow2.f32 %v837_v43  ;;  %872 = vadd.xlane.f32.xlu1 %v871_v44  ;;  %v846_v44 = vld [vmem:[#allocation3 + $0x18] sm:$0xff] }
 0x1e7   : > { %5124 = vpow2.f32 %v763_v63 }
 0x1e8   : > { %5126 = vpow2.f32 %v765_v11 }
 0x1e9   : > { %v812_v56 = vpop.permute.xlu1 %811 }
 0x1ec   : > { %v5123_v45 = vpop.eup %5122 }
 0x1ed   : > { %v974_v47 = vpack.c.bf16 %v5123_v45, %v5121_v42  ;;  %v5125_v48 = vpop.eup %5124  ;;  %v874_v13 = vsel %vm722_vm0, %v5123_v45, 0.0  ;;  %v825_v42 = vsub.f32 %v5497_v7, %v812_v56 }
 0x1ee   : > { %v851_v55 = vmul.f32 %v5125_v48, %v843_v14  ;;  %v5127_v60 = vpop.eup %5126  ;;  %v4795_v14 = vld [vmem:[#allocation6 + $0x74] sm:$0xf0] }
 0x1ef   : > { %3711 = vmatmul.msk.bf16.gmra.mxu2 %vm722_vm0, %v974_v47  ;;  %3715 = vmatmul.msk.bf16.gmra.mxu3 %vm722_vm0, %v974_v47  ;;  %v852_v62 = vmul.f32 %v5127_v60, %v844_v61  ;;  %v839_v63 = vmul.f32 1.442695, %v825_v42  ;;  %v3825_v42 = vld [vmem:[#allocation6 + $0xd8] sm:$0xf0] }
 0x1f2   : > { %918 = vperm.xlu0 %5110, %v5125_v48  }
 0x1f3   : > { %v746_v3 = vpop.xlane.xlu2 %745 }
 0x1f4   : > { %v5613_v51 = vmax.f32 %v5610_v49, %v746_v3 }
 0x1f6   : > { %v762_v52 = vsub.f32 %v5610_v49, %v5613_v51  ;;  %1109 = vst.msk [vmem:[#allocation2 + $0x38] sm:$0xff] %vm447_vm1, %v5613_v51  ;;  %816 = vperm.xlu2 %5109, %v5613_v51   ;;  %v4869_v51 = vld [vmem:[#allocation6 + $0x2c4] sm:$0xf0] }
 0x21c   : > { %875 = vadd.xlane.f32.xlu0 %v874_v13  ;;  %v3775_v13 = vld [vmem:[#allocation6 + $0x70] sm:$0xf] }
 0x21d   : > { %v3776_v56 = vor.u32 %v4795_v14, %v3775_v13  ;;  %v4787_v13 = vld [vmem:[#allocation6 + $0x34] sm:$0xf0]  ;;  %v3807_v14 = vld [vmem:[#allocation6 + $0xb0] sm:$0xf] }
 0x21f   : > { %866 = vadd.xlane.f32.xlu2 %v865_v53  ;;  %v3839_v53 = vld [vmem:[#allocation6 + $0xf0] sm:$0xf]  ;;  %1513 = vmatpush.bf16.msrb.mxu2 %v3776_v56  ;;  %v4786_v56 = vld [vmem:[#allocation6 + $0x34] sm:$0xf] }
 0x221   : > { %v861_v57 = vpop.xlane.xlu0 %860 }
 0x222   : > { %v883_v59 = vadd.f32 %v861_v57, %v851_v55  ;;  %v4811_v57 = vld [vmem:[#allocation6 + $0xf4] sm:$0xf0] }
 0x224   : > { %892 = vst.msk [vmem:[#allocation3] sm:$0xff] %vm447_vm1, %v883_v59  ;;  %v3777_v59 = vld [vmem:[#allocation6 + $0x78] sm:$0xf0] }
 0x229   : > { %v864_v0 = vpop.xlane.xlu1 %863 }
 0x22a   : > { %v884_v15 = vadd.f32 %v864_v0, %v852_v62  ;;  %v3840_v62 = vor.u32 %v4811_v57, %v3839_v53  ;;  %v3745_v57 = vld [vmem:[#allocation6 + $0x38] sm:$0xf0] }
 0x22b   : > { %v1129_v17 = vld [vmem:[#allocation3] sm:$0xff] }
 0x22c   : > { %893 = vst.msk [vmem:[#allocation3 + $0x8] sm:$0xff] %vm447_vm1, %v884_v15  ;;  %5128 = vrcp.f32 %v1129_v17  ;;  %v1148_v6 = vand.u32 2147483648, %v1129_v17  ;;  %v1146_v46 = vand.u32 2147483647, %v1129_v17  ;;  %vm1142_vm3 = vweird.f32 %v1129_v17  ;;  %v4810_v15 = vld [vmem:[#allocation6 + $0xf4] sm:$0xf]  ;;  %1526 = vmatpush.bf16.msrb.mxu3 %v3840_v62 }
 0x22e   : > { %v1149_v50 = vor.u32 1.1754944e-38, %v1148_v6  ;;  %vm1147_vm5 = vcmp.eq.f32.partialorder %v1146_v46, 8.507059e+37  ;;  %v4792_v46 = vld [vmem:[#allocation6 + $0x64] sm:$0xf] }
 0x232   : > { %v5129_v18 = vpop.eup %5128 }
 0x233   : > { %v1138_v1 = vmul.f32 %v5129_v18, %v1129_v17  ;;  %v1130_v2 = vld [vmem:[#allocation3 + $0x8] sm:$0xff]  ;;  %vm1143_vm2 = vweird.f32 %v5129_v18  ;;  %v3841_v17 = vld [vmem:[#allocation6 + $0xf8] sm:$0xf0] }
 0x234   : > { %5130 = vrcp.f32 %v1130_v2  ;;  %vm1144_vm4 = vmor %vm1142_vm3, %vm1143_vm2  ;;  %v1162_v22 = vand.u32 2147483648, %v1130_v2  ;;  %v1160_v28 = vand.u32 2147483647, %v1130_v2  ;;  %vm1156_vm7 = vweird.f32 %v1130_v2 }
 0x235   : > { %v1139_v5 = vsub.f32 1.0, %v1138_v1  ;;  %5132 = vpow2.f32 %v767_v4  ;;  %v4793_v4 = vld [vmem:[#allocation6 + $0x64] sm:$0xf0] }
 0x236   : > { %v1163_v36 = vor.u32 1.1754944e-38, %v1162_v22  ;;  %vm1161_vm9 = vcmp.eq.f32.partialorder %v1160_v28, 8.507059e+37  ;;  %5134 = vpow2.f32 %v769_v39  ;;  %v4791_v22 = vld [vmem:[#allocation6 + $0x54] sm:$0xf0]  ;;  %v3761_v39 = vld [vmem:[#allocation6 + $0x58] sm:$0xf0] }
 0x237   : > { %923 = vperm.xlu2 %5109, %v5127_v60   ;;  %v1140_v8 = vmul.f32 %v5129_v18, %v1139_v5  ;;  %5136 = vpow2.f32 %v771_v58  ;;  %v3831_v5 = vld [vmem:[#allocation6 + $0xe0] sm:$0xf]  ;;  %v4806_v58 = vld [vmem:[#allocation6 + $0xd4] sm:$0xf] }
 0x238   : > { %5138 = vpow2.f32 %v839_v63  ;;  %v3751_v63 = vld [vmem:[#allocation6 + $0x40] sm:$0xf] }
 0x239   : > { %v1141_v9 = vadd.f32 %v5129_v18, %v1140_v8  ;;  %v4809_v8 = vld [vmem:[#allocation6 + $0xe4] sm:$0xf0] }
 0x23a   : > { %v5131_v10 = vpop.eup %5130 }
 0x23b   : > { %v1145_v12 = vsel %vm1144_vm4, %v5129_v18, %v1141_v9  ;;  %v1152_v16 = vmul.f32 %v5131_v10, %v1130_v2  ;;  %v5630_v21 = vpop.eup %5132  ;;  %vm1157_vm6 = vweird.f32 %v5131_v10  ;;  %v3844_v18 = vor.u32 %v4810_v15, %v3841_v17  ;;  %v3767_v2 = vld [vmem:[#allocation6 + $0x60] sm:$0xf]  ;;  %v3769_v9 = vld [vmem:[#allocation6 + $0x68] sm:$0xf0]  ;;  %v4785_v15 = vld [vmem:[#allocation6 + $0x24] sm:$0xf0] }
 0x23c   : > { %v1150_v20 = vsel %vm1147_vm5, %v1149_v50, %v1145_v12  ;;  %vm1158_vm8 = vmor %vm1156_vm7, %vm1157_vm6  ;;  %v5640_v43 = vpop.eup %5134  ;;  %v3768_v6 = vor.u32 %v4793_v4, %v3767_v2  ;;  %v3772_v50 = vor.u32 %v4792_v46, %v3769_v9  ;;  %v4808_v12 = vld [vmem:[#allocation6 + $0xe4] sm:$0xf]  ;;  %v3799_v17 = vld [vmem:[#allocation6 + $0xa0] sm:$0xf]  ;;  %v773_v9 = vmul.f32 1.442695, %v760_v34 }
 0x23d   : > { %1251 = vperm.xlu1 %5111, %v1150_v20   ;;  %v1153_v19 = vsub.f32 1.0, %v1152_v16  ;;  %v854_v23 = vmul.f32 %v5640_v43, %v846_v44  ;;  %v5137_v27 = vpop.eup %5136  ;;  %1552 = vmatpush.bf16.msrb.mxu1 %v3844_v18  ;;  %v3833_v16 = vld [vmem:[#allocation6 + $0xe8] sm:$0xf0]  ;;  %v3828_v44 = vor.u32 %v4806_v58, %v3825_v42  ;;  %v4784_v2 = vld [vmem:[#allocation6 + $0x24] sm:$0xf] }
 0x23e   : > { %v855_v7 = vmul.f32 %v5137_v27, %v847_v29  ;;  %v5139_v3 = vpop.eup %5138  ;;  %1514 = vmatpush.bf16.msrb.mxu2 %v3768_v6  ;;  %v3836_v20 = vor.u32 %v4808_v12, %v3833_v16  ;;  %v3737_v4 = vld [vmem:[#allocation6 + $0x28] sm:$0xf0]  ;;  %v4783_v12 = vld [vmem:[#allocation6 + $0x14] sm:$0xf0]  ;;  %v3791_v16 = vld [vmem:[#allocation6 + $0x90] sm:$0xf] }
 0x23f   : > { %928 = vperm.xlu2 %5109, %v5630_v21   ;;  %v1154_v24 = vmul.f32 %v5131_v10, %v1153_v19  ;;  %v877_v1 = vsel %vm722_vm0, %v5139_v3, 0.0  ;;  %v3759_v19 = vld [vmem:[#allocation6 + $0x50] sm:$0xf]  ;;  %v3740_v6 = vor.u32 %v4784_v2, %v3737_v4  ;;  %v3801_v46 = vld [vmem:[#allocation6 + $0xa8] sm:$0xf0] }
 0x240   : > { %v3760_v28 = vor.u32 %v4791_v22, %v3759_v19  ;;  %v4799_v19 = vld [vmem:[#allocation6 + $0x94] sm:$0xf0]  ;;  %v4782_v22 = vld [vmem:[#allocation6 + $0x14] sm:$0xf]  ;;  %v3783_v34 = vld [vmem:[#allocation6 + $0x80] sm:$0xf] }
 0x241   : > { %v1155_v32 = vadd.f32 %v5131_v10, %v1154_v24  ;;  %v3823_v24 = vld [vmem:[#allocation6 + $0xd0] sm:$0xf]  ;;  %1553 = vmatpush.bf16.msrb.mxu1 %v3836_v20  ;;  %v4797_v58 = vld [vmem:[#allocation6 + $0x84] sm:$0xf0]  ;;  %v4780_v42 = vld [vmem:[#allocation6 + $0x4] sm:$0xf] }
 0x242   : > { %1515 = vmatpush.bf16.msrb.mxu2 %v3760_v28  ;;  %v3792_v28 = vor.u32 %v4799_v19, %v3791_v16  ;;  %v3961_v2 = vld [vmem:[#allocation6 + $0x1e8] sm:$0xf0]  ;;  %v4822_v19 = vld [vmem:[#allocation6 + $0x154] sm:$0xf] }
 0x243   : > { %v1159_v40 = vsel %vm1158_vm8, %v5131_v10, %v1155_v32  ;;  %v3832_v10 = vor.u32 %v4809_v8, %v3831_v5  ;;  %v4807_v32 = vld [vmem:[#allocation6 + $0xd4] sm:$0xf0]  ;;  %v4800_v8 = vld [vmem:[#allocation6 + $0xa4] sm:$0xf] }
 0x244   : > { %v1164_v54 = vsel %vm1161_vm9, %v1163_v36, %v1159_v40  ;;  %v4790_v36 = vld [vmem:[#allocation6 + $0x54] sm:$0xf]  ;;  %v3824_v40 = vor.u32 %v4807_v32, %v3823_v24  ;;  %v3729_v24 = vld [vmem:[#allocation6 + $0x18] sm:$0xf0] }
 0x245   : > { %1256 = vperm.xlu1 %5111, %v1164_v54   ;;  %1527 = vmatpush.bf16.msrb.mxu3 %v3832_v10  ;;  %v3764_v54 = vor.u32 %v4790_v36, %v3761_v39  ;;  %v3804_v10 = vor.u32 %v4800_v8, %v3801_v46  ;;  %v3732_v32 = vor.u32 %v4782_v22, %v3729_v24  ;;  %v4798_v36 = vld [vmem:[#allocation6 + $0x94] sm:$0xf]  ;;  %v3793_v39 = vld [vmem:[#allocation6 + $0x98] sm:$0xf0] }
 0x246   : > { %1554 = vmatpush.bf16.msrb.mxu1 %v3828_v44  ;;  %v3721_v44 = vld [vmem:[#allocation6 + $0x8] sm:$0xf0]  ;;  %v845_v8 = vld [vmem:[#allocation3 + $0x10] sm:$0xff]  ;;  %v3889_v22 = vld [vmem:[#allocation6 + $0x158] sm:$0xf0] }
 0x247   : > { %v853_v24 = vmul.f32 %v5630_v21, %v845_v8  ;;  %v3929_v8 = vld [vmem:[#allocation6 + $0x1a8] sm:$0xf0] }
 0x249   : > { %1528 = vmatpush.bf16.msrb.mxu3 %v3824_v40  ;;  %v3796_v40 = vor.u32 %v4798_v36, %v3793_v39  ;;  %v4838_v36 = vld [vmem:[#allocation6 + $0x1d4] sm:$0xf]  ;;  %v3953_v39 = vld [vmem:[#allocation6 + $0x1d8] sm:$0xf0] }
 0x250   : > { %v817_v45 = vpop.permute.xlu2 %816 }
 0x251   : > { %v826_v25 = vsub.f32 %v5579_v41, %v817_v45  ;;  %v870_v26 = vpop.xlane.xlu0 %869  ;;  %v4794_v41 = vld [vmem:[#allocation6 + $0x74] sm:$0xf]  ;;  %v4789_v45 = vld [vmem:[#allocation6 + $0x44] sm:$0xf0] }
 0x252   : > { %v886_v47 = vadd.f32 %v870_v26, %v854_v23  ;;  %v3780_v0 = vor.u32 %v4794_v41, %v3777_v59  ;;  %v3815_v23 = vld [vmem:[#allocation6 + $0xc0] sm:$0xf]  ;;  %v4805_v26 = vld [vmem:[#allocation6 + $0xc4] sm:$0xf0]  ;;  %v3748_v59 = vor.u32 %v4786_v56, %v3745_v57  ;;  %v3969_v56 = vld [vmem:[#allocation6 + $0x1f8] sm:$0xf0] }
 0x253   : > { %v841_v48 = vmul.f32 1.442695, %v826_v25  ;;  %v3752_v25 = vor.u32 %v4789_v45, %v3751_v63  ;;  %v3784_v45 = vor.u32 %v4797_v58, %v3783_v34  ;;  %v3895_v57 = vld [vmem:[#allocation6 + $0x160] sm:$0xf]  ;;  %v4821_v34 = vld [vmem:[#allocation6 + $0x144] sm:$0xf0] }
 0x254   : > { %895 = vst.msk [vmem:[#allocation3 + $0x18] sm:$0xff] %vm447_vm1, %v886_v47  ;;  %1539 = vmatpush.bf16.msrb.mxu0 %v3780_v0  ;;  %v4788_v47 = vld [vmem:[#allocation6 + $0x44] sm:$0xf]  ;;  %v3735_v0 = vld [vmem:[#allocation6 + $0x20] sm:$0xf] }
 0x255   : > { %5140 = vpow2.f32 %v841_v48  ;;  %v3753_v48 = vld [vmem:[#allocation6 + $0x48] sm:$0xf0]  ;;  %1516 = vmatpush.bf16.msrb.mxu2 %v3752_v25  ;;  %v3736_v18 = vor.u32 %v4785_v15, %v3735_v0  ;;  %v4796_v25 = vld [vmem:[#allocation6 + $0x84] sm:$0xf]  ;;  %v4841_v0 = vld [vmem:[#allocation6 + $0x1e4] sm:$0xf0] }
 0x256   : > { %v3756_v29 = vor.u32 %v4788_v47, %v3753_v48  ;;  %5142 = vpow2.f32 %v773_v9  ;;  %v3903_v47 = vld [vmem:[#allocation6 + $0x170] sm:$0xf]  ;;  %v4824_v15 = vld [vmem:[#allocation6 + $0x164] sm:$0xf] }
 0x257   : > { %v3887_v9 = vld [vmem:[#allocation6 + $0x150] sm:$0xf] }
 0x258   : > { %1540 = vmatpush.bf16.msrb.mxu0 %v3772_v50  ;;  %v3727_v50 = vld [vmem:[#allocation6 + $0x10] sm:$0xf] }
 0x259   : > { %v873_v30 = vpop.xlane.xlu1 %872  ;;  %v3728_v20 = vor.u32 %v4783_v12, %v3727_v50  ;;  %v3951_v50 = vld [vmem:[#allocation6 + $0x1d0] sm:$0xf] }
 0x25a   : > { %v887_v11 = vadd.f32 %v873_v30, %v855_v7  ;;  %v4804_v7 = vld [vmem:[#allocation6 + $0xc4] sm:$0xf]  ;;  %v3817_v30 = vld [vmem:[#allocation6 + $0xc8] sm:$0xf0] }
 0x25b   : > { %v5141_v55 = vpop.eup %5140 }
 0x25c   : > { %896 = vst.msk [vmem:[#allocation3 + $0x20] sm:$0xff] %vm447_vm1, %v887_v11  ;;  %v880_v60 = vsel %vm722_vm0, %v5141_v55, 0.0  ;;  %v975_v61 = vpack.c.bf16 %v5141_v55, %v5139_v3  ;;  %1541 = vmatpush.bf16.msrb.mxu0 %v3764_v54  ;;  %v3820_v3 = vor.u32 %v4804_v7, %v3817_v30  ;;  %v3743_v11 = vld [vmem:[#allocation6 + $0x30] sm:$0xf]  ;;  %v4803_v55 = vld [vmem:[#allocation6 + $0xb4] sm:$0xf0]  ;;  %v3720_v54 = vor.u32 %v4781_v33, %v3719_v31 }
 0x25d   : > { %881 = vadd.xlane.f32.xlu0 %v880_v60  ;;  %v3744_v53 = vor.u32 %v4787_v13, %v3743_v11  ;;  %v3808_v41 = vor.u32 %v4803_v55, %v3807_v14  ;;  %v4802_v60 = vld [vmem:[#allocation6 + $0xb4] sm:$0xf]  ;;  %v4843_v7 = vld [vmem:[#allocation6 + $0x1f4] sm:$0xf0]  ;;  %v848_v30 = vld [vmem:[#allocation3 + $0x28] sm:$0xff]  ;;  %v3956_v31 = vor.u32 %v4838_v36, %v3953_v39 }
 0x25e   : > { %3712 = vmatmul.msk.bf16.gmra.mxu2 %vm722_vm0, %v975_v61  ;;  %3716 = vmatmul.msk.bf16.gmra.mxu3 %vm722_vm0, %v975_v61  ;;  %v3809_v61 = vld [vmem:[#allocation6 + $0xb8] sm:$0xf0]  ;;  %v4826_v13 = vld [vmem:[#allocation6 + $0x174] sm:$0xf]  ;;  %v3879_v33 = vld [vmem:[#allocation6 + $0x140] sm:$0xf] }
 0x25f   : > { %1555 = vmatpush.bf16.msrb.mxu1 %v3820_v3  ;;  %1517 = vmatpush.bf16.msrb.mxu2 %v3744_v53  ;;  %v3812_v62 = vor.u32 %v4802_v60, %v3809_v61  ;;  %v3905_v14 = vld [vmem:[#allocation6 + $0x178] sm:$0xf0]  ;;  %v4842_v53 = vld [vmem:[#allocation6 + $0x1f4] sm:$0xf]  ;;  %v3880_v58 = vor.u32 %v4821_v34, %v3879_v33 }
 0x260   : > { %1542 = vmatpush.bf16.msrb.mxu0 %v3756_v29  ;;  %v3967_v29 = vld [vmem:[#allocation6 + $0x1f0] sm:$0xf]  ;;  %v3908_v55 = vor.u32 %v4826_v13, %v3905_v14  ;;  %v3972_v60 = vor.u32 %v4842_v53, %v3969_v56  ;;  %v3873_v13 = vld [vmem:[#allocation6 + $0x138] sm:$0xf0]  ;;  %v4834_v56 = vld [vmem:[#allocation6 + $0x1b4] sm:$0xf] }
 0x261   : > { %v3968_v11 = vor.u32 %v4843_v7, %v3967_v29  ;;  %v4819_v29 = vld [vmem:[#allocation6 + $0x134] sm:$0xf0]  ;;  %v3935_v7 = vld [vmem:[#allocation6 + $0x1b0] sm:$0xf]  ;;  %v3921_v39 = vld [vmem:[#allocation6 + $0x198] sm:$0xf0] }
 0x263   : > { %1556 = vmatpush.bf16.msrb.mxu1 %v3812_v62  ;;  %1518 = vmatpush.bf16.msrb.mxu2 %v3736_v18  ;;  %v3959_v62 = vld [vmem:[#allocation6 + $0x1e0] sm:$0xf]  ;;  %v3897_v18 = vld [vmem:[#allocation6 + $0x168] sm:$0xf0] }
 0x264   : > { %1543 = vmatpush.bf16.msrb.mxu0 %v3748_v59  ;;  %v5653_v63 = vpop.permute.xlu0 %918  ;;  %v5655_v59 = vpop.eup %5142  ;;  %v3900_v4 = vor.u32 %v4824_v15, %v3897_v18  ;;  %v4833_v18 = vld [vmem:[#allocation6 + $0x1a4] sm:$0xf0] }
 0x267   : > { %1557 = vmatpush.bf16.msrb.mxu1 %v3804_v10  ;;  %1519 = vmatpush.bf16.msrb.mxu2 %v3728_v20  ;;  %v4823_v10 = vld [vmem:[#allocation6 + $0x154] sm:$0xf0] }
 0x268   : > { %1544 = vmatpush.bf16.msrb.mxu0 %v3740_v6  ;;  %v856_v6 = vmul.f32 %v5655_v59, %v848_v30  ;;  %v3888_v16 = vor.u32 %v4823_v10, %v3887_v9  ;;  %v4839_v20 = vld [vmem:[#allocation6 + $0x1d4] sm:$0xf0] }
 0x269   : > { %v4815_v9 = vld [vmem:[#allocation6 + $0x114] sm:$0xf0] }
 0x26b   : > { %1558 = vmatpush.bf16.msrb.mxu1 %v3796_v40  ;;  %1520 = vmatpush.bf16.msrb.mxu2 %v3720_v54 }
 0x26c   : > { %1545 = vmatpush.bf16.msrb.mxu0 %v3732_v32  ;;  %v3892_v32 = vor.u32 %v4822_v19, %v3889_v22 }
 0x26f   : > { %878 = vadd.xlane.f32.xlu1 %v877_v1  ;;  %v4801_v1 = vld [vmem:[#allocation6 + $0xa4] sm:$0xf0] }
 0x270   : > { %v3800_v5 = vor.u32 %v4801_v1, %v3799_v17  ;;  %v3960_v17 = vor.u32 %v4841_v0, %v3959_v62  ;;  %v4840_v1 = vld [vmem:[#allocation6 + $0x1e4] sm:$0xf]  ;;  %v5664_v62 = vld [vmem:[#allocation3 + $0x18] sm:$0xff] }
 0x271   : > { %938 = vperm.xlu0 %5110, %v5137_v27   ;;  %v3816_v27 = vor.u32 %v4805_v26, %v3815_v23  ;;  %v3724_v23 = vor.u32 %v4780_v42, %v3721_v44  ;;  %v3785_v26 = vld [vmem:[#allocation6 + $0x88] sm:$0xf0]  ;;  %v3943_v42 = vld [vmem:[#allocation6 + $0x1c0] sm:$0xf]  ;;  %v4837_v44 = vld [vmem:[#allocation6 + $0x1c4] sm:$0xf0]  ;;  %vm1184_vm4 = vweird.f32 %v5664_v62 }
 0x272   : > { %v3788_v48 = vor.u32 %v4796_v25, %v3785_v26  ;;  %v3944_v21 = vor.u32 %v4837_v44, %v3943_v42  ;;  %v4836_v25 = vld [vmem:[#allocation6 + $0x1c4] sm:$0xf]  ;;  %v3945_v26 = vld [vmem:[#allocation6 + $0x1c8] sm:$0xf0]  ;;  %v4813_v42 = vld [vmem:[#allocation6 + $0x104] sm:$0xf0] }
 0x273   : > { %1529 = vmatpush.bf16.msrb.mxu3 %v3816_v27  ;;  %v4827_v27 = vld [vmem:[#allocation6 + $0x174] sm:$0xf0]  ;;  %1546 = vmatpush.bf16.msrb.mxu0 %v3724_v23  ;;  %v3881_v23 = vld [vmem:[#allocation6 + $0x148] sm:$0xf0]  ;;  %v3911_v44 = vld [vmem:[#allocation6 + $0x180] sm:$0xf] }
 0x274   : > { %v3904_v3 = vor.u32 %v4827_v27, %v3903_v47  ;;  %1559 = vmatpush.bf16.msrb.mxu1 %v3788_v48  ;;  %v3948_v48 = vor.u32 %v4836_v25, %v3945_v26  ;;  %v3871_v27 = vld [vmem:[#allocation6 + $0x130] sm:$0xf]  ;;  %v4829_v25 = vld [vmem:[#allocation6 + $0x184] sm:$0xf0]  ;;  %v4812_v26 = vld [vmem:[#allocation6 + $0x104] sm:$0xf] }
 0x275   : > { %v3872_v30 = vor.u32 %v4819_v29, %v3871_v27  ;;  %v3912_v29 = vor.u32 %v4829_v25, %v3911_v44  ;;  %v4095_v44 = vld [vmem:[#allocation6 + $0x2f0] sm:$0xf] }
 0x276   : > { %1772 = vmatpush.bf16.msra.mxu2 %v3904_v3  ;;  %v4835_v3 = vld [vmem:[#allocation6 + $0x1b4] sm:$0xf0] }
 0x277   : > { %1530 = vmatpush.bf16.msrb.mxu3 %v3808_v41  ;;  %v4825_v41 = vld [vmem:[#allocation6 + $0x164] sm:$0xf0]  ;;  %1798 = vmatpush.bf16.msra.mxu0 %v3908_v55  ;;  %v3936_v53 = vor.u32 %v4835_v3, %v3935_v7  ;;  %v4828_v7 = vld [vmem:[#allocation6 + $0x184] sm:$0xf] }
 0x278   : > { %v3896_v61 = vor.u32 %v4825_v41, %v3895_v57  ;;  %1811 = vmatpush.bf16.msra.mxu1 %v3972_v60  ;;  %v3937_v57 = vld [vmem:[#allocation6 + $0x1b8] sm:$0xf0]  ;;  %v3863_v60 = vld [vmem:[#allocation6 + $0x120] sm:$0xf] }
 0x279   : > { %v3940_v41 = vor.u32 %v4834_v56, %v3937_v57 }
 0x27a   : > { %1773 = vmatpush.bf16.msra.mxu2 %v3896_v61  ;;  %v4817_v61 = vld [vmem:[#allocation6 + $0x124] sm:$0xf0] }
 0x27b   : > { %1531 = vmatpush.bf16.msrb.mxu3 %v3800_v5  ;;  %v3964_v5 = vor.u32 %v4840_v1, %v3961_v2  ;;  %1799 = vmatpush.bf16.msra.mxu0 %v3900_v4  ;;  %v3864_v15 = vor.u32 %v4817_v61, %v3863_v60  ;;  %v4816_v1 = vld [vmem:[#allocation6 + $0x124] sm:$0xf]  ;;  %v3865_v2 = vld [vmem:[#allocation6 + $0x128] sm:$0xf0] }
 0x27d   : > { %1812 = vmatpush.bf16.msra.mxu1 %v3964_v5  ;;  %v3868_v5 = vor.u32 %v4816_v1, %v3865_v2 }
 0x27e   : > { %1774 = vmatpush.bf16.msra.mxu2 %v3888_v16  ;;  %v3919_v16 = vld [vmem:[#allocation6 + $0x190] sm:$0xf] }
 0x27f   : > { %1532 = vmatpush.bf16.msrb.mxu3 %v3792_v28  ;;  %v3952_v28 = vor.u32 %v4839_v20, %v3951_v50  ;;  %1800 = vmatpush.bf16.msra.mxu0 %v3892_v32  ;;  %v4831_v20 = vld [vmem:[#allocation6 + $0x194] sm:$0xf0]  ;;  %v4830_v32 = vld [vmem:[#allocation6 + $0x194] sm:$0xf] }
 0x280   : > { %v3920_v22 = vor.u32 %v4831_v20, %v3919_v16 }
 0x281   : > { %1813 = vmatpush.bf16.msra.mxu1 %v3956_v31  ;;  %v5671_v31 = vld [vmem:[#allocation3 + $0x20] sm:$0xff] }
 0x282   : > { %1775 = vmatpush.bf16.msra.mxu2 %v3880_v58  ;;  %v3924_v58 = vor.u32 %v4830_v32, %v3921_v39  ;;  %v1190_v39 = vand.u32 2147483648, %v5664_v62  ;;  %vm1198_vm8 = vweird.f32 %v5671_v31  ;;  %v4081_v32 = vld [vmem:[#allocation6 + $0x2d8] sm:$0xf0] }
 0x283   : > { %1533 = vmatpush.bf16.msrb.mxu3 %v3784_v45  ;;  %v4820_v45 = vld [vmem:[#allocation6 + $0x144] sm:$0xf] }
 0x284   : > { %v3884_v47 = vor.u32 %v4820_v45, %v3881_v23 }
 0x285   : > { %1814 = vmatpush.bf16.msra.mxu1 %v3948_v48 }
 0x286   : > { %1801 = vmatpush.bf16.msra.mxu0 %v3884_v47  ;;  %1776 = vmatpush.bf16.msra.mxu2 %v3872_v30  ;;  %v3849_v47 = vld [vmem:[#allocation6 + $0x108] sm:$0xf0] }
 0x287   : > { %1785 = vmatpush.bf16.msra.mxu3 %v3968_v11  ;;  %v4818_v11 = vld [vmem:[#allocation6 + $0x134] sm:$0xf]  ;;  %v3913_v30 = vld [vmem:[#allocation6 + $0x188] sm:$0xf0] }
 0x288   : > { %v3876_v55 = vor.u32 %v4818_v11, %v3873_v13  ;;  %v3852_v11 = vor.u32 %v4812_v26, %v3849_v47  ;;  %v3916_v13 = vor.u32 %v4828_v7, %v3913_v30  ;;  %v4875_v47 = vld [vmem:[#allocation6 + $0x2f4] sm:$0xf0]  ;;  %v4874_v7 = vld [vmem:[#allocation6 + $0x2f4] sm:$0xf]  ;;  %v4097_v30 = vld [vmem:[#allocation6 + $0x2f8] sm:$0xf0] }
 0x289   : > { %1815 = vmatpush.bf16.msra.mxu1 %v3940_v41 }
 0x28a   : > { %1802 = vmatpush.bf16.msra.mxu0 %v3876_v55  ;;  %1777 = vmatpush.bf16.msra.mxu2 %v3864_v15  ;;  %v956_v15 = vmul.f32 0.0, %v5653_v63 }
 0x28b   : > { %1786 = vmatpush.bf16.msra.mxu3 %v3960_v17  ;;  %v3927_v17 = vld [vmem:[#allocation6 + $0x1a0] sm:$0xf] }
 0x28c   : > { %v3928_v4 = vor.u32 %v4833_v18, %v3927_v17 }
 0x28e   : > { %1803 = vmatpush.bf16.msra.mxu0 %v3868_v5 }
 0x28f   : > { %v876_v46 = vpop.xlane.xlu0 %875  ;;  %1787 = vmatpush.bf16.msra.mxu3 %v3952_v28  ;;  %v3857_v28 = vld [vmem:[#allocation6 + $0x118] sm:$0xf0] }
 0x290   : > { %v888_v12 = vadd.f32 %v876_v46, %v856_v6  ;;  %v4832_v6 = vld [vmem:[#allocation6 + $0x1a4] sm:$0xf]  ;;  %v3855_v46 = vld [vmem:[#allocation6 + $0x110] sm:$0xf] }
 0x291   : > { %v3932_v50 = vor.u32 %v4832_v6, %v3929_v8  ;;  %v1050_v6 = vpop.f32.mrf.mxu3 }
 0x292   : > { %897 = vst.msk [vmem:[#allocation3 + $0x28] sm:$0xff] %vm447_vm1, %v888_v12  ;;  %v867_v40 = vpop.xlane.xlu2 %866  ;;  %v3856_v12 = vor.u32 %v4815_v9, %v3855_v46  ;;  %v1071_v9 = vadd.f32 %v1050_v6, %v956_v15 }
 0x293   : > { %v885_v54 = vadd.f32 %v867_v40, %v853_v24  ;;  %1788 = vmatpush.bf16.msra.mxu3 %v3944_v21  ;;  %v4814_v24 = vld [vmem:[#allocation6 + $0x114] sm:$0xf]  ;;  %1816 = vmatpush.bf16.msra.mxu1 %v3932_v50  ;;  %v3847_v40 = vld [vmem:[#allocation6 + $0x100] sm:$0xf] }
 0x294   : > { %v3860_v36 = vor.u32 %v4814_v24, %v3857_v28  ;;  %1778 = vmatpush.bf16.msra.mxu2 %v3856_v12  ;;  %v3848_v23 = vor.u32 %v4813_v42, %v3847_v40  ;;  %v4859_v42 = vld [vmem:[#allocation6 + $0x274] sm:$0xf0] }
 0x295   : > { %894 = vst.msk [vmem:[#allocation3 + $0x10] sm:$0xff] %vm447_vm1, %v885_v54 }
 0x296   : > { %1804 = vmatpush.bf16.msra.mxu0 %v3860_v36  ;;  %v1188_v36 = vand.u32 2147483647, %v5664_v62 }
 0x297   : > { %1789 = vmatpush.bf16.msra.mxu3 %v3936_v53  ;;  %1817 = vmatpush.bf16.msra.mxu1 %v3924_v58  ;;  %v4031_v58 = vld [vmem:[#allocation6 + $0x270] sm:$0xf] }
 0x298   : > { %1779 = vmatpush.bf16.msra.mxu2 %v3848_v23  ;;  %v4032_v26 = vor.u32 %v4859_v42, %v4031_v58  ;;  %vm1189_vm6 = vcmp.eq.f32.partialorder %v1188_v36, 8.507059e+37  ;;  %v777_v36 = vmul.f32 1.442695, %v762_v52  ;;  %v4007_v58 = vld [vmem:[#allocation6 + $0x240] sm:$0xf] }
 0x299   : > { %v5661_v14 = vld [vmem:[#allocation3 + $0x28] sm:$0xff]  ;;  %v4852_v52 = vld [vmem:[#allocation6 + $0x244] sm:$0xf] }
 0x29a   : > { %5144 = vrcp.f32 %v5661_v14  ;;  %v1218_v54 = vand.u32 2147483648, %v5661_v14  ;;  %v1216_v27 = vand.u32 2147483647, %v5661_v14  ;;  %vm1212_vm11 = vweird.f32 %v5661_v14  ;;  %1805 = vmatpush.bf16.msra.mxu0 %v3852_v11  ;;  %v924_v12 = vpop.permute.xlu2 %923  ;;  %v4853_v42 = vld [vmem:[#allocation6 + $0x244] sm:$0xf0] }
 0x29b   : > { %1790 = vmatpush.bf16.msra.mxu3 %v3928_v4  ;;  %1818 = vmatpush.bf16.msra.mxu1 %v3916_v13  ;;  %v1021_v4 = vpop.f32.mrf.mxu2  ;;  %v4008_v49 = vor.u32 %v4853_v42, %v4007_v58  ;;  %v4223_v58 = vld [vmem:[#allocation6 + $0x3f0] sm:$0xf] }
 0x29c   : > { %v5666_v0 = vld [vmem:[#allocation3 + $0x10] sm:$0xff]  ;;  %v1219_v57 = vor.u32 1.1754944e-38, %v1218_v54  ;;  %vm1217_vm14 = vcmp.eq.f32.partialorder %v1216_v27, 8.507059e+37  ;;  %v1070_v46 = vadd.f32 %v1021_v4, %v956_v15  ;;  %v4033_v27 = vld [vmem:[#allocation6 + $0x278] sm:$0xf0] }
 0x29d   : > { %5146 = vrcp.f32 %v5666_v0  ;;  %v1176_v55 = vand.u32 2147483648, %v5666_v0  ;;  %v1174_v60 = vand.u32 2147483647, %v5666_v0  ;;  %vm1170_vm15 = vweird.f32 %v5666_v0  ;;  %v4025_v15 = vld [vmem:[#allocation6 + $0x268] sm:$0xf0] }
 0x29e   : > { %5148 = vrcp.f32 %v5664_v62  ;;  %v4089_v4 = vld [vmem:[#allocation6 + $0x2e8] sm:$0xf0] }
 0x29f   : > { %1791 = vmatpush.bf16.msra.mxu3 %v3920_v22  ;;  %5150 = vrcp.f32 %v5671_v31  ;;  %v1177_v18 = vor.u32 1.1754944e-38, %v1176_v55  ;;  %vm1175_vm2 = vcmp.eq.f32.partialorder %v1174_v60, 8.507059e+37  ;;  %v958_v22 = vmul.f32 0.0, %v924_v12  ;;  %v4857_v55 = vld [vmem:[#allocation6 + $0x264] sm:$0xf0] }
 0x2a0   : > { %v5145_v10 = vpop.eup %5144  ;;  %v4871_v12 = vld [vmem:[#allocation6 + $0x2d4] sm:$0xf0]  ;;  %5152 = vpow2.f32 %v777_v36 }
 0x2a1   : > { %v1208_v19 = vmul.f32 %v5145_v10, %v5661_v14  ;;  %vm1213_vm10 = vweird.f32 %v5145_v10 }
 0x2a2   : > { %vm1214_vm12 = vmor %vm1212_vm11, %vm1213_vm10 }
 0x2a3   : > { %v5147_v33 = vpop.eup %5146  ;;  %v1209_v34 = vsub.f32 1.0, %v1208_v19  ;;  %1792 = vmatpush.bf16.msra.mxu3 %v3912_v29 }
 0x2a4   : > { %v5674_v45 = vpop.eup %5148  ;;  %v1166_v21 = vmul.f32 %v5147_v33, %v5666_v0  ;;  %vm1171_vm13 = vweird.f32 %v5147_v33 }
 0x2a5   : > { %v1210_v48 = vmul.f32 %v5145_v10, %v1209_v34  ;;  %v1180_v56 = vmul.f32 %v5674_v45, %v5664_v62  ;;  %vm1172_vm0 = vmor %vm1170_vm15, %vm1171_vm13  ;;  %v5687_v2 = vpop.eup %5150  ;;  %vm1185_vm3 = vweird.f32 %v5674_v45 }
 0x2a6   : > { %v1167_v3 = vsub.f32 1.0, %v1166_v21  ;;  %v1194_v16 = vmul.f32 %v5687_v2, %v5671_v31  ;;  %vm5695_vm5 = vmor %vm1184_vm4, %vm1185_vm3  ;;  %v1052_v21 = vpop.f32.mrf.mxu3  ;;  %vm1199_vm7 = vweird.f32 %v5687_v2 }
 0x2a7   : > { %v1211_v53 = vadd.f32 %v5145_v10, %v1210_v48  ;;  %v1181_v1 = vsub.f32 1.0, %v1180_v56  ;;  %v4858_v48 = vld [vmem:[#allocation6 + $0x274] sm:$0xf]  ;;  %v1073_v29 = vadd.f32 %v1052_v21, %v958_v22  ;;  %v4873_v56 = vld [vmem:[#allocation6 + $0x2e4] sm:$0xf0]  ;;  %vm5716_vm9 = vmor %vm1198_vm8, %vm1199_vm7 }
 0x2a8   : > { %v1168_v41 = vmul.f32 %v5147_v33, %v1167_v3  ;;  %v1195_v40 = vsub.f32 1.0, %v1194_v16  ;;  %v4023_v3 = vld [vmem:[#allocation6 + $0x260] sm:$0xf]  ;;  %v4036_v13 = vor.u32 %v4858_v48, %v4033_v27  ;;  %v4854_v16 = vld [vmem:[#allocation6 + $0x254] sm:$0xf] }
 0x2a9   : > { %v1215_v61 = vsel %vm1214_vm12, %v5145_v10, %v1211_v53  ;;  %v1182_v10 = vmul.f32 %v5674_v45, %v1181_v1  ;;  %v4100_v53 = vor.u32 %v4874_v7, %v4097_v30  ;;  %v4024_v60 = vor.u32 %v4857_v55, %v4023_v3  ;;  %v4009_v21 = vld [vmem:[#allocation6 + $0x248] sm:$0xf0]  ;;  %v4063_v7 = vld [vmem:[#allocation6 + $0x2b0] sm:$0xf]  ;;  %v4867_v3 = vld [vmem:[#allocation6 + $0x2b4] sm:$0xf0] }
 0x2aa   : > { %v1220_v14 = vsel %vm1217_vm14, %v1219_v57, %v1215_v61  ;;  %v1169_v17 = vadd.f32 %v5147_v33, %v1168_v41  ;;  %v1196_v11 = vmul.f32 %v5687_v2, %v1195_v40  ;;  %v4856_v61 = vld [vmem:[#allocation6 + $0x264] sm:$0xf]  ;;  %v4064_v55 = vor.u32 %v4867_v3, %v4063_v7  ;;  %v4889_v7 = vld [vmem:[#allocation6 + $0x364] sm:$0xf0] }
 0x2ab   : > { %1276 = vperm.xlu1 %5111, %v1220_v14   ;;  %v1183_v19 = vadd.f32 %v5674_v45, %v1182_v10  ;;  %v4872_v14 = vld [vmem:[#allocation6 + $0x2e4] sm:$0xf]  ;;  %v4028_v1 = vor.u32 %v4856_v61, %v4025_v15  ;;  %v4855_v10 = vld [vmem:[#allocation6 + $0x254] sm:$0xf0]  ;;  %v4055_v61 = vld [vmem:[#allocation6 + $0x2a0] sm:$0xf] }
 0x2ac   : > { %v1173_v5 = vsel %vm1172_vm0, %v5147_v33, %v1169_v17  ;;  %v1023_v33 = vpop.f32.mrf.mxu2  ;;  %v1191_v17 = vor.u32 1.1754944e-38, %v1190_v39  ;;  %v850_v15 = vld [vmem:[#allocation3 + $0x38] sm:$0xff] }
 0x2ad   : > { %v1178_v8 = vsel %vm1175_vm2, %v1177_v18, %v1173_v5  ;;  %v1187_v25 = vsel %vm5695_vm5, %v5674_v45, %v1183_v19  ;;  %v1072_v62 = vadd.f32 %v1023_v33, %v958_v22  ;;  %v4087_v45 = vld [vmem:[#allocation6 + $0x2e0] sm:$0xf]  ;;  %v4092_v5 = vor.u32 %v4872_v14, %v4089_v4  ;;  %v4057_v4 = vld [vmem:[#allocation6 + $0x2a8] sm:$0xf0] }
 0x2ae   : > { %1261 = vperm.xlu2 %5109, %v1178_v8   ;;  %v4088_v18 = vor.u32 %v4873_v56, %v4087_v45  ;;  %v1192_v6 = vsel %vm1189_vm6, %v1191_v17, %v1187_v25  ;;  %v1204_v8 = vand.u32 2147483648, %v5671_v31  ;;  %v1202_v19 = vand.u32 2147483647, %v5671_v31  ;;  %v4866_v56 = vld [vmem:[#allocation6 + $0x2b4] sm:$0xf] }
 0x2af   : > { %v1252_v63 = vpop.permute.xlu1 %1251  ;;  %v4012_v25 = vor.u32 %v4852_v52, %v4009_v21  ;;  %v4865_v17 = vld [vmem:[#allocation6 + $0x2a4] sm:$0xf0] }
 0x2b0   : > { %v1289_v50 = vmul.f32 %v1252_v63, %v1070_v46  ;;  %v1290_v0 = vmul.f32 %v1252_v63, %v1071_v9  ;;  %v1197_v9 = vadd.f32 %v5687_v2, %v1196_v11  ;;  %v4015_v63 = vld [vmem:[#allocation6 + $0x250] sm:$0xf]  ;;  %v1205_v40 = vor.u32 1.1754944e-38, %v1204_v8  ;;  %v4850_v11 = vld [vmem:[#allocation6 + $0x234] sm:$0xf] }
 0x2b1   : > { %vm1203_vm10 = vcmp.eq.f32.partialorder %v1202_v19, 8.507059e+37  ;;  %v4056_v37 = vor.u32 %v4865_v17, %v4055_v61  ;;  %v4143_v61 = vld [vmem:[#allocation6 + $0x350] sm:$0xf]  ;;  %v4903_v17 = vld [vmem:[#allocation6 + $0x3d4] sm:$0xf0] }
 0x2b2   : > { %v1305_v20 = vpack.c.bf16 %v1290_v0, %v1289_v50  ;;  %v4079_v50 = vld [vmem:[#allocation6 + $0x2d0] sm:$0xf]  ;;  %v4016_v0 = vor.u32 %v4855_v10, %v4015_v63  ;;  %v1201_v31 = vsel %vm5716_vm9, %v5687_v2, %v1197_v9  ;;  %v4863_v63 = vld [vmem:[#allocation6 + $0x294] sm:$0xf0]  ;;  %v4846_v10 = vld [vmem:[#allocation6 + $0x214] sm:$0xf] }
 0x2b3   : > { %v4080_v22 = vor.u32 %v4871_v12, %v4079_v50  ;;  %v1206_v48 = vsel %vm1203_vm10, %v1205_v40, %v1201_v31  ;;  %v4047_v9 = vld [vmem:[#allocation6 + $0x290] sm:$0xf]  ;;  %v3985_v50 = vld [vmem:[#allocation6 + $0x218] sm:$0xf0]  ;;  %v4862_v12 = vld [vmem:[#allocation6 + $0x294] sm:$0xf] }
 0x2b4   : > { %v1347_v24 = vunpack.c.l.b16 %v1305_v20  ;;  %v1348_v28 = vunpack.c.h.b16 %v1305_v20  ;;  %v4017_v20 = vld [vmem:[#allocation6 + $0x258] sm:$0xf0]  ;;  %v3988_v39 = vor.u32 %v4846_v10, %v3985_v50  ;;  %v4861_v40 = vld [vmem:[#allocation6 + $0x284] sm:$0xf0]  ;;  %v4891_v31 = vld [vmem:[#allocation6 + $0x374] sm:$0xf0] }
 0x2b5   : > { %v4199_v10 = vld [vmem:[#allocation6 + $0x3c0] sm:$0xf] }
 0x2b6   : > { %933 = vperm.xlu2 %5109, %v5640_v43   ;;  %v1349_v34 = vpack.c.b16 %v1347_v24, %v1347_v24  ;;  %v1350_v54 = vpack.c.b16 %v1348_v28, %v1348_v28  ;;  %v4096_v43 = vor.u32 %v4875_v47, %v4095_v44  ;;  %v4020_v24 = vor.u32 %v4854_v16, %v4017_v20  ;;  %v4870_v28 = vld [vmem:[#allocation6 + $0x2d4] sm:$0xf]  ;;  %v4071_v44 = vld [vmem:[#allocation6 + $0x2c0] sm:$0xf]  ;;  %v4073_v47 = vld [vmem:[#allocation6 + $0x2c8] sm:$0xf0] }
 0x2b7   : > { %v1257_v23 = vpop.permute.xlu1 %1256  ;;  %v4084_v33 = vor.u32 %v4870_v28, %v4081_v32  ;;  %v4049_v16 = vld [vmem:[#allocation6 + $0x298] sm:$0xf0]  ;;  %v4845_v28 = vld [vmem:[#allocation6 + $0x204] sm:$0xf0]  ;;  %v4039_v32 = vld [vmem:[#allocation6 + $0x280] sm:$0xf] }
 0x2b8   : > { %1521 = vmatmul.bf16.vlgmr.msrb.gmra.mxu2 %v1349_v34  ;;  %1534 = vmatmul.bf16.vlgmr.msrb.gmra.mxu3 %v1350_v54  ;;  %v1291_v57 = vmul.f32 %v1257_v23, %v1072_v62  ;;  %v1292_v41 = vmul.f32 %v1257_v23, %v1073_v29  ;;  %v4072_v23 = vor.u32 %v4869_v51, %v4071_v44  ;;  %v3999_v29 = vld [vmem:[#allocation6 + $0x230] sm:$0xf]  ;;  %v4907_v44 = vld [vmem:[#allocation6 + $0x3f4] sm:$0xf0]  ;;  %v4161_v51 = vld [vmem:[#allocation6 + $0x378] sm:$0xf0] }
 0x2b9   : > { %1547 = vmatmul.bf16.vlgmr.msrb.gmra.mxu0 %v1349_v34  ;;  %1560 = vmatmul.bf16.vlgmr.msrb.gmra.mxu1 %v1350_v54  ;;  %v4052_v42 = vor.u32 %v4862_v12, %v4049_v16  ;;  %v4040_v21 = vor.u32 %v4861_v40, %v4039_v32  ;;  %v4884_v12 = vld [vmem:[#allocation6 + $0x344] sm:$0xf]  ;;  %v4137_v16 = vld [vmem:[#allocation6 + $0x348] sm:$0xf0] }
 0x2ba   : > { %2026 = vmatpush.bf16.msrb.mxu2 %v4032_v26  ;;  %2039 = vmatpush.bf16.msrb.mxu3 %v4096_v43  ;;  %v1306_v46 = vpack.c.bf16 %v1292_v41, %v1291_v57  ;;  %v4868_v26 = vld [vmem:[#allocation6 + $0x2c4] sm:$0xf]  ;;  %v4851_v43 = vld [vmem:[#allocation6 + $0x234] sm:$0xf0]  ;;  %v4065_v57 = vld [vmem:[#allocation6 + $0x2b8] sm:$0xf0]  ;;  %v4140_v32 = vor.u32 %v4884_v12, %v4137_v16 }
 0x2bb   : > { %2052 = vmatpush.bf16.msrb.mxu0 %v4036_v13  ;;  %2065 = vmatpush.bf16.msrb.mxu1 %v4100_v53  ;;  %v4076_v62 = vor.u32 %v4868_v26, %v4073_v47  ;;  %v4000_v30 = vor.u32 %v4851_v43, %v3999_v29  ;;  %v4001_v13 = vld [vmem:[#allocation6 + $0x238] sm:$0xf0]  ;;  %v775_v53 = vmul.f32 1.442695, %v761_v38  ;;  %v3991_v41 = vld [vmem:[#allocation6 + $0x220] sm:$0xf]  ;;  %v4068_v14 = vor.u32 %v4866_v56, %v4065_v57 }
 0x2bc   : > { %v1606_v34 = vunpack.c.l.b16 %v1306_v46  ;;  %v1607_v54 = vunpack.c.h.b16 %v1306_v46  ;;  %v4004_v45 = vor.u32 %v4850_v11, %v4001_v13  ;;  %v4864_v38 = vld [vmem:[#allocation6 + $0x2a4] sm:$0xf]  ;;  %v4847_v46 = vld [vmem:[#allocation6 + $0x214] sm:$0xf0]  ;;  %v4151_v43 = vld [vmem:[#allocation6 + $0x360] sm:$0xf] }
 0x2bd   : > { %5154 = vpow2.f32 %v775_v53  ;;  %v4905_v11 = vld [vmem:[#allocation6 + $0x3e4] sm:$0xf0]  ;;  %v4888_v13 = vld [vmem:[#allocation6 + $0x364] sm:$0xf]  ;;  %v4153_v53 = vld [vmem:[#allocation6 + $0x368] sm:$0xf0] }
 0x2be   : > { %1266 = vperm.xlu2 %5109, %v1192_v6   ;;  %2027 = vmatpush.bf16.msrb.mxu2 %v4024_v60  ;;  %v1608_v27 = vpack.c.b16 %v1606_v34, %v1606_v34  ;;  %v1609_v2 = vpack.c.b16 %v1607_v54, %v1607_v54  ;;  %v4849_v60 = vld [vmem:[#allocation6 + $0x224] sm:$0xf0]  ;;  %v5726_v6 = vpop.eup %5152  ;;  %v4159_v54 = vld [vmem:[#allocation6 + $0x370] sm:$0xf]  ;;  %v4904_v56 = vld [vmem:[#allocation6 + $0x3e4] sm:$0xf] }
 0x2bf   : > { %2040 = vmatpush.bf16.msrb.mxu3 %v4088_v18  ;;  %2053 = vmatpush.bf16.msrb.mxu0 %v4028_v1  ;;  %v4848_v18 = vld [vmem:[#allocation6 + $0x224] sm:$0xf]  ;;  %v3993_v1 = vld [vmem:[#allocation6 + $0x228] sm:$0xf0]  ;;  %v3992_v35 = vor.u32 %v4849_v60, %v3991_v41  ;;  %v858_v20 = vmul.f32 %v5726_v6, %v850_v15  ;;  %v4160_v47 = vor.u32 %v4891_v31, %v4159_v54  ;;  %v4887_v15 = vld [vmem:[#allocation6 + $0x354] sm:$0xf0] }
 0x2c0   : > { %2066 = vmatpush.bf16.msrb.mxu1 %v4092_v5  ;;  %v3983_v5 = vld [vmem:[#allocation6 + $0x210] sm:$0xf]  ;;  %v3996_v8 = vor.u32 %v4848_v18, %v3993_v1  ;;  %v4217_v57 = vld [vmem:[#allocation6 + $0x3e8] sm:$0xf0]  ;;  %v4156_v60 = vor.u32 %v4888_v13, %v4153_v53  ;;  %v4886_v18 = vld [vmem:[#allocation6 + $0x354] sm:$0xf] }
 0x2c1   : > { %v3984_v19 = vor.u32 %v4847_v46, %v3983_v5  ;;  %v4145_v1 = vld [vmem:[#allocation6 + $0x358] sm:$0xf0]  ;;  %v849_v5 = vld [vmem:[#allocation3 + $0x30] sm:$0xff] }
 0x2c2   : > { %2028 = vmatpush.bf16.msrb.mxu2 %v4016_v0  ;;  %v4060_v0 = vor.u32 %v4864_v38, %v4057_v4  ;;  %v4902_v38 = vld [vmem:[#allocation6 + $0x3d4] sm:$0xf]  ;;  %v4209_v4 = vld [vmem:[#allocation6 + $0x3d8] sm:$0xf0]  ;;  %v4148_v46 = vor.u32 %v4886_v18, %v4145_v1  ;;  %v4175_v13 = vld [vmem:[#allocation6 + $0x390] sm:$0xf] }
 0x2c3   : > { %2041 = vmatpush.bf16.msrb.mxu3 %v4080_v22  ;;  %2054 = vmatpush.bf16.msrb.mxu0 %v4020_v24  ;;  %v4048_v22 = vor.u32 %v4863_v63, %v4047_v9  ;;  %v3975_v24 = vld [vmem:[#allocation6 + $0x200] sm:$0xf]  ;;  %v4885_v63 = vld [vmem:[#allocation6 + $0x344] sm:$0xf0]  ;;  %v4212_v50 = vor.u32 %v4902_v38, %v4209_v4  ;;  %v4876_v4 = vld [vmem:[#allocation6 + $0x304] sm:$0xf] }
 0x2c4   : > { %2067 = vmatpush.bf16.msrb.mxu1 %v4084_v33  ;;  %v4844_v33 = vld [vmem:[#allocation6 + $0x204] sm:$0xf]  ;;  %v3976_v52 = vor.u32 %v4845_v28, %v3975_v24  ;;  %v4135_v9 = vld [vmem:[#allocation6 + $0x340] sm:$0xf]  ;;  %v4877_v1 = vld [vmem:[#allocation6 + $0x304] sm:$0xf0] }
 0x2c5   : > { %v4103_v18 = vld [vmem:[#allocation6 + $0x300] sm:$0xf]  ;;  %v4893_v38 = vld [vmem:[#allocation6 + $0x384] sm:$0xf0] }
 0x2c6   : > { %1271 = vperm.xlu2 %5109, %v1206_v48   ;;  %2029 = vmatpush.bf16.msrb.mxu2 %v4008_v49  ;;  %v4890_v49 = vld [vmem:[#allocation6 + $0x374] sm:$0xf] }
 0x2c7   : > { %2042 = vmatpush.bf16.msrb.mxu3 %v4072_v23  ;;  %2055 = vmatpush.bf16.msrb.mxu0 %v4012_v25  ;;  %v4860_v23 = vld [vmem:[#allocation6 + $0x284] sm:$0xf]  ;;  %v4041_v25 = vld [vmem:[#allocation6 + $0x288] sm:$0xf0]  ;;  %v4906_v48 = vld [vmem:[#allocation6 + $0x3f4] sm:$0xf]  ;;  %v4164_v29 = vor.u32 %v4890_v49, %v4161_v51 }
 0x2c8   : > { %1780 = vmatmul.bf16.vlgmr.msra.gmra.mxu2 %v1608_v27  ;;  %1793 = vmatmul.bf16.vlgmr.msra.gmra.mxu3 %v1609_v2  ;;  %v4044_v3 = vor.u32 %v4860_v23, %v4041_v25  ;;  %v4119_v23 = vld [vmem:[#allocation6 + $0x320] sm:$0xf]  ;;  %v4881_v25 = vld [vmem:[#allocation6 + $0x324] sm:$0xf0] }
 0x2c9   : > { %1806 = vmatmul.bf16.vlgmr.msra.gmra.mxu0 %v1608_v27  ;;  %1819 = vmatmul.bf16.vlgmr.msra.gmra.mxu1 %v1609_v2  ;;  %v4225_v27 = vld [vmem:[#allocation6 + $0x3f8] sm:$0xf0]  ;;  %v5155_v2 = vpop.eup %5154 }
 0x2ca   : > { %2068 = vmatpush.bf16.msrb.mxu1 %v4076_v62  ;;  %2030 = vmatpush.bf16.msrb.mxu2 %v4000_v30  ;;  %v4224_v62 = vor.u32 %v4907_v44, %v4223_v58  ;;  %v4215_v30 = vld [vmem:[#allocation6 + $0x3e0] sm:$0xf]  ;;  %v857_v24 = vmul.f32 %v5155_v2, %v849_v5  ;;  %v4193_v44 = vld [vmem:[#allocation6 + $0x3b8] sm:$0xf0] }
 0x2cb   : > { %2043 = vmatpush.bf16.msrb.mxu3 %v4064_v55  ;;  %2056 = vmatpush.bf16.msrb.mxu0 %v4004_v45  ;;  %v4228_v55 = vor.u32 %v4906_v48, %v4225_v27  ;;  %v4152_v45 = vor.u32 %v4889_v7, %v4151_v43  ;;  %v4216_v41 = vor.u32 %v4905_v11, %v4215_v30  ;;  %v4897_v48 = vld [vmem:[#allocation6 + $0x3a4] sm:$0xf0]  ;;  %v4880_v27 = vld [vmem:[#allocation6 + $0x324] sm:$0xf]  ;;  %v4185_v7 = vld [vmem:[#allocation6 + $0x3a8] sm:$0xf0] }
 0x2cc   : > { %v4896_v43 = vld [vmem:[#allocation6 + $0x3a4] sm:$0xf]  ;;  %v4879_v11 = vld [vmem:[#allocation6 + $0x314] sm:$0xf0] }
 0x2cd   : > { %v4188_v30 = vor.u32 %v4896_v43, %v4185_v7 }
 0x2ce   : > { %943 = vperm.xlu2 %5109, %v5655_v59   ;;  %2069 = vmatpush.bf16.msrb.mxu1 %v4068_v14  ;;  %v3977_v59 = vld [vmem:[#allocation6 + $0x208] sm:$0xf0]  ;;  %v4207_v14 = vld [vmem:[#allocation6 + $0x3d0] sm:$0xf] }
 0x2cf   : > { %2031 = vmatpush.bf16.msrb.mxu2 %v3992_v35  ;;  %2044 = vmatpush.bf16.msrb.mxu3 %v4056_v37  ;;  %v3980_v26 = vor.u32 %v4844_v33, %v3977_v59  ;;  %v4220_v35 = vor.u32 %v4904_v56, %v4217_v57  ;;  %v4144_v37 = vor.u32 %v4887_v15, %v4143_v61  ;;  %v4899_v33 = vld [vmem:[#allocation6 + $0x3b4] sm:$0xf0]  ;;  %v4882_v59 = vld [vmem:[#allocation6 + $0x334] sm:$0xf]  ;;  %v4113_v57 = vld [vmem:[#allocation6 + $0x318] sm:$0xf0] }
 0x2d0   : > { %v882_v36 = vpop.xlane.xlu0 %881  ;;  %2057 = vmatpush.bf16.msrb.mxu0 %v3996_v8  ;;  %v4208_v8 = vor.u32 %v4903_v17, %v4207_v14  ;;  %v4878_v56 = vld [vmem:[#allocation6 + $0x314] sm:$0xf]  ;;  %v4177_v15 = vld [vmem:[#allocation6 + $0x398] sm:$0xf0] }
 0x2d1   : > { %v890_v34 = vadd.f32 %v882_v36, %v858_v20  ;;  %v4136_v20 = vor.u32 %v4885_v63, %v4135_v9  ;;  %v4127_v36 = vld [vmem:[#allocation6 + $0x330] sm:$0xf]  ;;  %v4894_v61 = vld [vmem:[#allocation6 + $0x394] sm:$0xf]  ;;  %v4169_v9 = vld [vmem:[#allocation6 + $0x388] sm:$0xf0] }
 0x2d2   : > { %2070 = vmatpush.bf16.msrb.mxu1 %v4060_v0  ;;  %v4901_v0 = vld [vmem:[#allocation6 + $0x3c4] sm:$0xf0]  ;;  %v4180_v17 = vor.u32 %v4894_v61, %v4177_v15 }
 0x2d3   : > { %899 = vst.msk [vmem:[#allocation3 + $0x38] sm:$0xff] %vm447_vm1, %v890_v34  ;;  %2032 = vmatpush.bf16.msrb.mxu2 %v3984_v19  ;;  %2045 = vmatpush.bf16.msrb.mxu3 %v4048_v22  ;;  %v4900_v19 = vld [vmem:[#allocation6 + $0x3c4] sm:$0xf]  ;;  %v4201_v22 = vld [vmem:[#allocation6 + $0x3c8] sm:$0xf0]  ;;  %v4200_v28 = vor.u32 %v4901_v0, %v4199_v10 }
 0x2d4   : > { %2058 = vmatpush.bf16.msrb.mxu0 %v3988_v39  ;;  %v4883_v39 = vld [vmem:[#allocation6 + $0x334] sm:$0xf0]  ;;  %v4129_v34 = vld [vmem:[#allocation6 + $0x338] sm:$0xf0]  ;;  %v4204_v31 = vor.u32 %v4900_v19, %v4201_v22 }
 0x2d5   : > { %v4128_v58 = vor.u32 %v4883_v39, %v4127_v36  ;;  %v4132_v51 = vor.u32 %v4882_v59, %v4129_v34  ;;  %v929_v59 = vpop.permute.xlu2 %928 }
 0x2d6   : > { %948 = vperm.xlu2 %5109, %v5155_v2   ;;  %2071 = vmatpush.bf16.msrb.mxu1 %v4052_v42  ;;  %v4898_v42 = vld [vmem:[#allocation6 + $0x3b4] sm:$0xf]  ;;  %v4121_v2 = vld [vmem:[#allocation6 + $0x328] sm:$0xf0] }
 0x2d7   : > { %2033 = vmatpush.bf16.msrb.mxu2 %v3976_v52  ;;  %2046 = vmatpush.bf16.msrb.mxu3 %v4040_v21  ;;  %v4196_v21 = vor.u32 %v4898_v42, %v4193_v44  ;;  %v960_v42 = vmul.f32 0.0, %v929_v59 }
 0x2d8   : > { %2059 = vmatpush.bf16.msrb.mxu0 %v3980_v26  ;;  %v4183_v26 = vld [vmem:[#allocation6 + $0x3a0] sm:$0xf] }
 0x2da   : > { %2072 = vmatpush.bf16.msrb.mxu1 %v4044_v3  ;;  %v5733_v52 = vld [vmem:[#allocation3 + $0x38] sm:$0xff]  ;;  %v4111_v3 = vld [vmem:[#allocation6 + $0x310] sm:$0xf] }
 0x2db   : > { %2280 = vmatpush.bf16.msra.mxu2 %v4160_v47  ;;  %2293 = vmatpush.bf16.msra.mxu3 %v4224_v62  ;;  %v4120_v47 = vor.u32 %v4881_v25, %v4119_v23  ;;  %5156 = vrcp.f32 %v5733_v52  ;;  %v4184_v62 = vor.u32 %v4897_v48, %v4183_v26  ;;  %vm1240_vm15 = vweird.f32 %v5733_v52  ;;  %v4287_v48 = vld [vmem:[#allocation6 + $0x470] sm:$0xf] }
 0x2dc   : > { %2306 = vmatpush.bf16.msra.mxu0 %v4164_v29  ;;  %v4124_v29 = vor.u32 %v4880_v27, %v4121_v2  ;;  %v1244_v34 = vand.u32 2147483647, %v5733_v52  ;;  %v4923_v27 = vld [vmem:[#allocation6 + $0x474] sm:$0xf0]  ;;  %v4351_v2 = vld [vmem:[#allocation6 + $0x4f0] sm:$0xf] }
 0x2de   : > { %2319 = vmatpush.bf16.msra.mxu1 %v4228_v55  ;;  %953 = vperm.xlu2 %5109, %v5726_v6   ;;  %v4191_v6 = vld [vmem:[#allocation6 + $0x3b0] sm:$0xf]  ;;  %v4112_v55 = vor.u32 %v4879_v11, %v4111_v3  ;;  %vm1245_vm2 = vcmp.eq.f32.partialorder %v1244_v34, 8.507059e+37  ;;  %v4289_v3 = vld [vmem:[#allocation6 + $0x478] sm:$0xf0] }
 0x2df   : > { %2281 = vmatpush.bf16.msra.mxu2 %v4152_v45  ;;  %2294 = vmatpush.bf16.msra.mxu3 %v4216_v41  ;;  %v4192_v49 = vor.u32 %v4899_v33, %v4191_v6  ;;  %v4895_v45 = vld [vmem:[#allocation6 + $0x394] sm:$0xf0]  ;;  %v1246_v33 = vand.u32 2147483648, %v5733_v52  ;;  %v4938_v11 = vld [vmem:[#allocation6 + $0x4f4] sm:$0xf] }
 0x2e0   : > { %2307 = vmatpush.bf16.msra.mxu0 %v4156_v60  ;;  %v4176_v41 = vor.u32 %v4895_v45, %v4175_v13  ;;  %v4116_v60 = vor.u32 %v4878_v56, %v4113_v57  ;;  %v4353_v13 = vld [vmem:[#allocation6 + $0x4f8] sm:$0xf0]  ;;  %v4288_v45 = vor.u32 %v4923_v27, %v4287_v48  ;;  %v4279_v57 = vld [vmem:[#allocation6 + $0x460] sm:$0xf]  ;;  %v4915_v48 = vld [vmem:[#allocation6 + $0x434] sm:$0xf0] }
 0x2e1   : > { %v5157_v14 = vpop.eup %5156  ;;  %v1247_v44 = vor.u32 1.1754944e-38, %v1246_v33  ;;  %v4356_v15 = vor.u32 %v4938_v11, %v4353_v13  ;;  %v4327_v34 = vld [vmem:[#allocation6 + $0x4c0] sm:$0xf]  ;;  %v4321_v11 = vld [vmem:[#allocation6 + $0x4b8] sm:$0xf0] }
 0x2e2   : > { %2320 = vmatpush.bf16.msra.mxu1 %v4220_v35  ;;  %v879_v40 = vpop.xlane.xlu1 %878  ;;  %v4104_v35 = vor.u32 %v4877_v1, %v4103_v18  ;;  %v1236_v63 = vmul.f32 %v5157_v14, %v5733_v52  ;;  %vm1241_vm14 = vweird.f32 %v5157_v14  ;;  %v4922_v52 = vld [vmem:[#allocation6 + $0x474] sm:$0xf]  ;;  %v4920_v18 = vld [vmem:[#allocation6 + $0x464] sm:$0xf]  ;;  %v4281_v1 = vld [vmem:[#allocation6 + $0x468] sm:$0xf0] }
 0x2e3   : > { %2282 = vmatpush.bf16.msra.mxu2 %v4144_v37  ;;  %2295 = vmatpush.bf16.msra.mxu3 %v4208_v8  ;;  %v889_v54 = vadd.f32 %v879_v40, %v857_v24  ;;  %v4167_v37 = vld [vmem:[#allocation6 + $0x380] sm:$0xf]  ;;  %v4105_v8 = vld [vmem:[#allocation6 + $0x308] sm:$0xf0]  ;;  %vm1242_vm0 = vmor %vm1240_vm15, %vm1241_vm14  ;;  %v4292_v61 = vor.u32 %v4922_v52, %v4289_v3 }
 0x2e4   : > { %2308 = vmatpush.bf16.msra.mxu0 %v4148_v46  ;;  %v4168_v5 = vor.u32 %v4893_v38, %v4167_v37  ;;  %v4892_v46 = vld [vmem:[#allocation6 + $0x384] sm:$0xf]  ;;  %v4108_v10 = vor.u32 %v4876_v4, %v4105_v8  ;;  %v4345_v37 = vld [vmem:[#allocation6 + $0x4e8] sm:$0xf0]  ;;  %v4271_v8 = vld [vmem:[#allocation6 + $0x450] sm:$0xf] }
 0x2e5   : > { %898 = vst.msk [vmem:[#allocation3 + $0x30] sm:$0xff] %vm447_vm1, %v889_v54  ;;  %v4172_v0 = vor.u32 %v4892_v46, %v4169_v9  ;;  %v4919_v46 = vld [vmem:[#allocation6 + $0x454] sm:$0xf0]  ;;  %v4284_v9 = vor.u32 %v4920_v18, %v4281_v1  ;;  %v4930_v3 = vld [vmem:[#allocation6 + $0x4b4] sm:$0xf] }
 0x2e6   : > { %2321 = vmatpush.bf16.msra.mxu1 %v4212_v50  ;;  %v4931_v52 = vld [vmem:[#allocation6 + $0x4b4] sm:$0xf0] }
 0x2e7   : > { %2283 = vmatpush.bf16.msra.mxu2 %v4136_v20  ;;  %2296 = vmatpush.bf16.msra.mxu3 %v4200_v28  ;;  %v1237_v20 = vsub.f32 1.0, %v1236_v63 }
 0x2e8   : > { %2309 = vmatpush.bf16.msra.mxu0 %v4140_v32 }
 0x2e9   : > { %v1238_v32 = vmul.f32 %v5157_v14, %v1237_v20  ;;  %v4337_v20 = vld [vmem:[#allocation6 + $0x4d8] sm:$0xf0] }
 0x2ea   : > { %2322 = vmatpush.bf16.msra.mxu1 %v4204_v31  ;;  %v1026_v31 = vpop.f32.mrf.mxu2 }
 0x2eb   : > { %2284 = vmatpush.bf16.msra.mxu2 %v4128_v58  ;;  %2297 = vmatpush.bf16.msra.mxu3 %v4192_v49  ;;  %v1239_v40 = vadd.f32 %v5157_v14, %v1238_v32  ;;  %v1055_v58 = vpop.f32.mrf.mxu3 }
 0x2ec   : > { %2310 = vmatpush.bf16.msra.mxu0 %v4132_v51  ;;  %v1135_v53 = vld [vmem:[#allocation3 + $0x30] sm:$0xff]  ;;  %v1074_v51 = vadd.f32 %v1026_v31, %v960_v42  ;;  %v4916_v31 = vld [vmem:[#allocation6 + $0x444] sm:$0xf] }
 0x2ed   : > { %5158 = vrcp.f32 %v1135_v53  ;;  %v1232_v19 = vand.u32 2147483648, %v1135_v53  ;;  %v1230_v24 = vand.u32 2147483647, %v1135_v53  ;;  %vm1226_vm11 = vweird.f32 %v1135_v53 }
 0x2ee   : > { %2323 = vmatpush.bf16.msra.mxu1 %v4196_v21  ;;  %v1243_v54 = vsel %vm1242_vm0, %v5157_v14, %v1239_v40  ;;  %v1075_v21 = vadd.f32 %v1055_v58, %v960_v42  ;;  %v4343_v14 = vld [vmem:[#allocation6 + $0x4e0] sm:$0xf] }
 0x2ef   : > { %2285 = vmatpush.bf16.msra.mxu2 %v4120_v47  ;;  %2298 = vmatpush.bf16.msra.mxu3 %v4184_v62  ;;  %v1233_v36 = vor.u32 1.1754944e-38, %v1232_v19  ;;  %vm1231_vm13 = vcmp.eq.f32.partialorder %v1230_v24, 8.507059e+37  ;;  %v1248_v49 = vsel %vm1245_vm2, %v1247_v44, %v1243_v54  ;;  %v4939_v62 = vld [vmem:[#allocation6 + $0x4f4] sm:$0xf0]  ;;  %v4272_v19 = vor.u32 %v4919_v46, %v4271_v8  ;;  %v4933_v54 = vld [vmem:[#allocation6 + $0x4c4] sm:$0xf0] }
 0x2f0   : > { %2311 = vmatpush.bf16.msra.mxu0 %v4124_v29  ;;  %v4352_v56 = vor.u32 %v4939_v62, %v4351_v2  ;;  %v4265_v44 = vld [vmem:[#allocation6 + $0x448] sm:$0xf0]  ;;  %v4319_v62 = vld [vmem:[#allocation6 + $0x4b0] sm:$0xf] }
 0x2f1   : > { %v4268_v27 = vor.u32 %v4916_v31, %v4265_v44  ;;  %v4908_v31 = vld [vmem:[#allocation6 + $0x404] sm:$0xf] }
 0x2f2   : > { %2324 = vmatpush.bf16.msra.mxu1 %v4188_v30  ;;  %v1028_v29 = vpop.f32.mrf.mxu2 }
 0x2f3   : > { %2286 = vmatpush.bf16.msra.mxu2 %v4112_v55  ;;  %2299 = vmatpush.bf16.msra.mxu3 %v4176_v41  ;;  %v5159_v50 = vpop.eup %5158  ;;  %v1057_v43 = vpop.f32.mrf.mxu3  ;;  %v4921_v41 = vld [vmem:[#allocation6 + $0x464] sm:$0xf0] }
 0x2f4   : > { %2312 = vmatpush.bf16.msra.mxu0 %v4116_v60  ;;  %v1222_v12 = vmul.f32 %v5159_v50, %v1135_v53  ;;  %vm1227_vm1 = vweird.f32 %v5159_v50  ;;  %v4280_v4 = vor.u32 %v4921_v41, %v4279_v57  ;;  %v4247_v57 = vld [vmem:[#allocation6 + $0x420] sm:$0xf]  ;;  %v4913_v41 = vld [vmem:[#allocation6 + $0x424] sm:$0xf0] }
 0x2f5   : > { %vm1228_vm12 = vmor %vm1226_vm11, %vm1227_vm1  ;;  %v4248_v46 = vor.u32 %v4913_v41, %v4247_v57  ;;  %v4471_v57 = vld [vmem:[#allocation6 + $0x5e0] sm:$0xf]  ;;  %v4969_v41 = vld [vmem:[#allocation6 + $0x5e4] sm:$0xf0] }
 0x2f6   : > { %2325 = vmatpush.bf16.msra.mxu1 %v4180_v17  ;;  %v1223_v16 = vsub.f32 1.0, %v1222_v12  ;;  %v4937_v17 = vld [vmem:[#allocation6 + $0x4e4] sm:$0xf0]  ;;  %v4273_v12 = vld [vmem:[#allocation6 + $0x458] sm:$0xf0] }
 0x2f7   : > { %2287 = vmatpush.bf16.msra.mxu2 %v4104_v35  ;;  %2300 = vmatpush.bf16.msra.mxu3 %v4168_v5  ;;  %v4936_v35 = vld [vmem:[#allocation6 + $0x4e4] sm:$0xf]  ;;  %v4344_v5 = vor.u32 %v4937_v17, %v4343_v14  ;;  %v4929_v14 = vld [vmem:[#allocation6 + $0x4a4] sm:$0xf0] }
 0x2f8   : > { %2313 = vmatpush.bf16.msra.mxu0 %v4108_v10  ;;  %v1224_v22 = vmul.f32 %v5159_v50, %v1223_v16  ;;  %v4348_v63 = vor.u32 %v4936_v35, %v4345_v37  ;;  %v4335_v10 = vld [vmem:[#allocation6 + $0x4d0] sm:$0xf]  ;;  %v4934_v16 = vld [vmem:[#allocation6 + $0x4d4] sm:$0xf]  ;;  %v4912_v17 = vld [vmem:[#allocation6 + $0x424] sm:$0xf] }
 0x2f9   : > { %v4340_v59 = vor.u32 %v4934_v16, %v4337_v20  ;;  %v4249_v35 = vld [vmem:[#allocation6 + $0x428] sm:$0xf0]  ;;  %v4928_v37 = vld [vmem:[#allocation6 + $0x4a4] sm:$0xf]  ;;  %v4927_v16 = vld [vmem:[#allocation6 + $0x494] sm:$0xf0] }
 0x2fa   : > { %2326 = vmatpush.bf16.msra.mxu1 %v4172_v0  ;;  %v1225_v28 = vadd.f32 %v5159_v50, %v1224_v22  ;;  %v4918_v0 = vld [vmem:[#allocation6 + $0x454] sm:$0xf]  ;;  %v5740_v22 = vpop.f32.mrf.mxu2 }
 0x2fb   : > { %v5742_v24 = vpop.f32.mrf.mxu3  ;;  %v4276_v33 = vor.u32 %v4918_v0, %v4273_v12  ;;  %v4303_v12 = vld [vmem:[#allocation6 + $0x490] sm:$0xf]  ;;  %v4910_v20 = vld [vmem:[#allocation6 + $0x414] sm:$0xf] }
 0x2fc   : > { %v1229_v39 = vsel %vm1228_vm12, %v5159_v50, %v1225_v28  ;;  %v4935_v50 = vld [vmem:[#allocation6 + $0x4d4] sm:$0xf0] }
 0x2fd   : > { %v1234_v6 = vsel %vm1231_vm13, %v1233_v36, %v1229_v39  ;;  %v4336_v36 = vor.u32 %v4935_v50, %v4335_v10  ;;  %v4263_v39 = vld [vmem:[#allocation6 + $0x440] sm:$0xf]  ;;  %v4911_v10 = vld [vmem:[#allocation6 + $0x414] sm:$0xf0]  ;;  %v4252_v50 = vor.u32 %v4912_v17, %v4249_v35 }
 0x2fe   : > { %1281 = vperm.xlu0 %5110, %v1234_v6   ;;  %v4917_v6 = vld [vmem:[#allocation6 + $0x444] sm:$0xf0] }
 0x302   : > { %v5744_v18 = vpop.f32.mrf.mxu2 }
 0x303   : > { %v5746_v1 = vpop.f32.mrf.mxu3 }
 0x306   : > { %1286 = vperm.xlu0 %5110, %v1248_v49   ;;  %v4932_v49 = vld [vmem:[#allocation6 + $0x4c4] sm:$0xf] }
 0x308   : > { %v1262_v23 = vpop.permute.xlu2 %1261 }
 0x309   : > { %v1293_v25 = vmul.f32 %v1262_v23, %v1074_v51  ;;  %v1294_v26 = vmul.f32 %v1262_v23, %v1075_v21  ;;  %v4329_v51 = vld [vmem:[#allocation6 + $0x4c8] sm:$0xf0]  ;;  %v939_v21 = vpop.permute.xlu0 %938 }
 0x30a   : > { %v4332_v2 = vor.u32 %v4932_v49, %v4329_v51  ;;  %v964_v13 = vmul.f32 0.0, %v939_v21  ;;  %v5750_v44 = vpop.f32.mrf.mxu2  ;;  %v4297_v21 = vld [vmem:[#allocation6 + $0x488] sm:$0xf0] }
 0x30b   : > { %v1307_v47 = vpack.c.bf16 %v1294_v26, %v1293_v25  ;;  %v4264_v25 = vor.u32 %v4917_v6, %v4263_v39  ;;  %v4328_v26 = vor.u32 %v4933_v54, %v4327_v34  ;;  %v4231_v39 = vld [vmem:[#allocation6 + $0x400] sm:$0xf]  ;;  %v4304_v6 = vor.u32 %v4927_v16, %v4303_v12  ;;  %v5752_v49 = vpop.f32.mrf.mxu3  ;;  %v4401_v12 = vld [vmem:[#allocation6 + $0x558] sm:$0xf0]  ;;  %v4966_v16 = vld [vmem:[#allocation6 + $0x5d4] sm:$0xf] }
 0x30c   : > { %v1079_v8 = vadd.f32 %v5742_v24, %v964_v13 }
 0x30d   : > { %v1860_v7 = vunpack.c.l.b16 %v1307_v47  ;;  %v1861_v30 = vunpack.c.h.b16 %v1307_v47  ;;  %v4255_v47 = vld [vmem:[#allocation6 + $0x430] sm:$0xf] }
 0x30f   : > { %v1862_v53 = vpack.c.b16 %v1860_v7, %v1860_v7  ;;  %v1863_v55 = vpack.c.b16 %v1861_v30, %v1861_v30  ;;  %v4257_v30 = vld [vmem:[#allocation6 + $0x438] sm:$0xf0] }
 0x310   : > { %v934_v60 = vpop.permute.xlu2 %933 }
 0x311   : > { %2034 = vmatmul.bf16.vlgmr.msrb.gmra.mxu2 %v1862_v53  ;;  %2047 = vmatmul.bf16.vlgmr.msrb.gmra.mxu3 %v1863_v55  ;;  %v962_v38 = vmul.f32 0.0, %v934_v60 }
 0x312   : > { %2060 = vmatmul.bf16.vlgmr.msrb.gmra.mxu0 %v1862_v53  ;;  %2073 = vmatmul.bf16.vlgmr.msrb.gmra.mxu1 %v1863_v55  ;;  %v4256_v53 = vor.u32 %v4915_v48, %v4255_v47  ;;  %v4971_v47 = vld [vmem:[#allocation6 + $0x5f4] sm:$0xf0]  ;;  %v4954_v48 = vld [vmem:[#allocation6 + $0x574] sm:$0xf] }
 0x313   : > { %2534 = vmatpush.bf16.msrb.mxu2 %v4288_v45  ;;  %2547 = vmatpush.bf16.msrb.mxu3 %v4352_v56  ;;  %v1076_v28 = vadd.f32 %v1028_v29, %v962_v38  ;;  %v1077_v32 = vadd.f32 %v1057_v43, %v962_v38  ;;  %v4914_v29 = vld [vmem:[#allocation6 + $0x434] sm:$0xf]  ;;  %v4320_v56 = vor.u32 %v4931_v52, %v4319_v62  ;;  %v4313_v38 = vld [vmem:[#allocation6 + $0x4a8] sm:$0xf0]  ;;  %v4417_v62 = vld [vmem:[#allocation6 + $0x578] sm:$0xf0] }
 0x314   : > { %2560 = vmatpush.bf16.msrb.mxu0 %v4292_v61  ;;  %2573 = vmatpush.bf16.msrb.mxu1 %v4356_v15  ;;  %v4260_v60 = vor.u32 %v4914_v29, %v4257_v30  ;;  %v4324_v61 = vor.u32 %v4930_v3, %v4321_v11  ;;  %v4311_v15 = vld [vmem:[#allocation6 + $0x4a0] sm:$0xf]  ;;  %v4316_v0 = vor.u32 %v4928_v37, %v4313_v38  ;;  %v4970_v52 = vld [vmem:[#allocation6 + $0x5f4] sm:$0xf]  ;;  %v4481_v29 = vld [vmem:[#allocation6 + $0x5f8] sm:$0xf0] }
 0x315   : > { %v4472_v38 = vor.u32 %v4969_v41, %v4471_v57  ;;  %v4439_v57 = vld [vmem:[#allocation6 + $0x5a0] sm:$0xf] }
 0x317   : > { %2535 = vmatpush.bf16.msrb.mxu2 %v4280_v4  ;;  %2548 = vmatpush.bf16.msrb.mxu3 %v4344_v5  ;;  %v1078_v4 = vadd.f32 %v5740_v22, %v964_v13 }
 0x318   : > { %2561 = vmatpush.bf16.msrb.mxu0 %v4284_v9  ;;  %2574 = vmatpush.bf16.msrb.mxu1 %v4348_v63  ;;  %v1267_v40 = vpop.permute.xlu2 %1266  ;;  %v4312_v9 = vor.u32 %v4929_v14, %v4311_v15  ;;  %v4239_v63 = vld [vmem:[#allocation6 + $0x410] sm:$0xf]  ;;  %v4968_v15 = vld [vmem:[#allocation6 + $0x5e4] sm:$0xf]  ;;  %v4473_v14 = vld [vmem:[#allocation6 + $0x5e8] sm:$0xf0] }
 0x319   : > { %v1295_v58 = vmul.f32 %v1267_v40, %v1076_v28  ;;  %v1296_v42 = vmul.f32 %v1267_v40, %v1077_v32  ;;  %v4241_v28 = vld [vmem:[#allocation6 + $0x418] sm:$0xf0]  ;;  %v4926_v32 = vld [vmem:[#allocation6 + $0x494] sm:$0xf]  ;;  %v4240_v24 = vor.u32 %v4911_v10, %v4239_v63  ;;  %v4909_v40 = vld [vmem:[#allocation6 + $0x404] sm:$0xf0] }
 0x31a   : > { %v4244_v34 = vor.u32 %v4910_v20, %v4241_v28  ;;  %v4967_v63 = vld [vmem:[#allocation6 + $0x5d4] sm:$0xf0]  ;;  %v4950_v10 = vld [vmem:[#allocation6 + $0x554] sm:$0xf]  ;;  %v4465_v20 = vld [vmem:[#allocation6 + $0x5d8] sm:$0xf0] }
 0x31b   : > { %v1308_v23 = vpack.c.bf16 %v1296_v42, %v1295_v58  ;;  %2536 = vmatpush.bf16.msrb.mxu2 %v4272_v19  ;;  %2549 = vmatpush.bf16.msrb.mxu3 %v4336_v36  ;;  %v4305_v36 = vld [vmem:[#allocation6 + $0x498] sm:$0xf0]  ;;  %v4233_v58 = vld [vmem:[#allocation6 + $0x408] sm:$0xf0]  ;;  %v4924_v42 = vld [vmem:[#allocation6 + $0x484] sm:$0xf] }
 0x31c   : > { %2562 = vmatpush.bf16.msrb.mxu0 %v4276_v33  ;;  %2575 = vmatpush.bf16.msrb.mxu1 %v4340_v59  ;;  %v4295_v33 = vld [vmem:[#allocation6 + $0x480] sm:$0xf]  ;;  %v4925_v59 = vld [vmem:[#allocation6 + $0x484] sm:$0xf0]  ;;  %v4308_v54 = vor.u32 %v4926_v32, %v4305_v36 }
 0x31d   : > { %v2114_v43 = vunpack.c.l.b16 %v1308_v23  ;;  %v2115_v7 = vunpack.c.h.b16 %v1308_v23  ;;  %v4415_v23 = vld [vmem:[#allocation6 + $0x570] sm:$0xf]  ;;  %v4391_v28 = vld [vmem:[#allocation6 + $0x540] sm:$0xf]  ;;  %v4949_v32 = vld [vmem:[#allocation6 + $0x544] sm:$0xf0] }
 0x31f   : > { %v2116_v55 = vpack.c.b16 %v2114_v43, %v2114_v43  ;;  %v2117_v45 = vpack.c.b16 %v2115_v7, %v2115_v7  ;;  %2537 = vmatpush.bf16.msrb.mxu2 %v4264_v25  ;;  %2550 = vmatpush.bf16.msrb.mxu3 %v4328_v26  ;;  %v4955_v25 = vld [vmem:[#allocation6 + $0x574] sm:$0xf0]  ;;  %v4479_v26 = vld [vmem:[#allocation6 + $0x5f0] sm:$0xf]  ;;  %v4236_v43 = vor.u32 %v4908_v31, %v4233_v58  ;;  %v4393_v31 = vld [vmem:[#allocation6 + $0x548] sm:$0xf0] }
 0x320   : > { %2563 = vmatpush.bf16.msrb.mxu0 %v4268_v27  ;;  %2576 = vmatpush.bf16.msrb.mxu1 %v4332_v2  ;;  %v1272_v5 = vpop.permute.xlu2 %1271  ;;  %v4232_v27 = vor.u32 %v4909_v40, %v4231_v39  ;;  %v4296_v2 = vor.u32 %v4925_v59, %v4295_v33  ;;  %v4300_v7 = vor.u32 %v4924_v42, %v4297_v21  ;;  %v4455_v40 = vld [vmem:[#allocation6 + $0x5c0] sm:$0xf]  ;;  %v4965_v33 = vld [vmem:[#allocation6 + $0x5c4] sm:$0xf0]  ;;  %v4948_v59 = vld [vmem:[#allocation6 + $0x544] sm:$0xf] }
 0x321   : > { %2288 = vmatmul.bf16.vlgmr.msra.gmra.mxu2 %v2116_v55  ;;  %2301 = vmatmul.bf16.vlgmr.msra.gmra.mxu3 %v2117_v45  ;;  %v1297_v19 = vmul.f32 %v1272_v5, %v1078_v4  ;;  %v1298_v22 = vmul.f32 %v1272_v5, %v1079_v8  ;;  %v4416_v11 = vor.u32 %v4955_v25, %v4415_v23  ;;  %v4399_v4 = vld [vmem:[#allocation6 + $0x550] sm:$0xf]  ;;  %v4951_v5 = vld [vmem:[#allocation6 + $0x554] sm:$0xf0]  ;;  %v4964_v58 = vld [vmem:[#allocation6 + $0x5c4] sm:$0xf] }
 0x322   : > { %2314 = vmatmul.bf16.vlgmr.msra.gmra.mxu0 %v2116_v55  ;;  %2327 = vmatmul.bf16.vlgmr.msra.gmra.mxu1 %v2117_v45  ;;  %v4480_v13 = vor.u32 %v4971_v47, %v4479_v26  ;;  %v4953_v55 = vld [vmem:[#allocation6 + $0x564] sm:$0xf0]  ;;  %v4420_v45 = vor.u32 %v4954_v48, %v4417_v62  ;;  %v4457_v42 = vld [vmem:[#allocation6 + $0x5c8] sm:$0xf0]  ;;  %v4392_v21 = vor.u32 %v4949_v32, %v4391_v28  ;;  %v4947_v25 = vld [vmem:[#allocation6 + $0x534] sm:$0xf0] }
 0x323   : > { %2538 = vmatpush.bf16.msrb.mxu2 %v4256_v53  ;;  %2551 = vmatpush.bf16.msrb.mxu3 %v4320_v56  ;;  %v1309_v51 = vpack.c.bf16 %v1298_v22, %v1297_v19  ;;  %v4407_v53 = vld [vmem:[#allocation6 + $0x560] sm:$0xf]  ;;  %v4484_v56 = vor.u32 %v4970_v52, %v4481_v29  ;;  %v4400_v19 = vor.u32 %v4951_v5, %v4399_v4  ;;  %v4447_v26 = vld [vmem:[#allocation6 + $0x5b0] sm:$0xf]  ;;  %v4963_v47 = vld [vmem:[#allocation6 + $0x5b4] sm:$0xf0]  ;;  %v1277_v5 = vpop.permute.xlu1 %1276 }
 0x324   : > { %2564 = vmatpush.bf16.msrb.mxu0 %v4260_v60  ;;  %2577 = vmatpush.bf16.msrb.mxu1 %v4324_v61  ;;  %v4952_v60 = vld [vmem:[#allocation6 + $0x564] sm:$0xf]  ;;  %v4409_v61 = vld [vmem:[#allocation6 + $0x568] sm:$0xf0]  ;;  %v4408_v17 = vor.u32 %v4953_v55, %v4407_v53  ;;  %v4456_v23 = vor.u32 %v4965_v33, %v4455_v40  ;;  %v4946_v62 = vld [vmem:[#allocation6 + $0x534] sm:$0xf]  ;;  %v4448_v53 = vor.u32 %v4963_v47, %v4447_v26 }
 0x325   : > { %v2368_v30 = vunpack.c.l.b16 %v1309_v51  ;;  %v2369_v3 = vunpack.c.h.b16 %v1309_v51  ;;  %v4412_v8 = vor.u32 %v4952_v60, %v4409_v61  ;;  %v4383_v51 = vld [vmem:[#allocation6 + $0x530] sm:$0xf]  ;;  %v4385_v52 = vld [vmem:[#allocation6 + $0x538] sm:$0xf0]  ;;  %v4441_v4 = vld [vmem:[#allocation6 + $0x5a8] sm:$0xf0] }
 0x326   : > { %v4388_v55 = vor.u32 %v4946_v62, %v4385_v52  ;;  %v4940_v26 = vld [vmem:[#allocation6 + $0x504] sm:$0xf]  ;;  %v4361_v47 = vld [vmem:[#allocation6 + $0x508] sm:$0xf0]  ;;  %v4543_v52 = vld [vmem:[#allocation6 + $0x670] sm:$0xf] }
 0x327   : > { %2539 = vmatpush.bf16.msrb.mxu2 %v4248_v46  ;;  %2552 = vmatpush.bf16.msrb.mxu3 %v4312_v9  ;;  %v2370_v35 = vpack.c.b16 %v2368_v30, %v2368_v30  ;;  %v2371_v37 = vpack.c.b16 %v2369_v3, %v2369_v3  ;;  %v4476_v46 = vor.u32 %v4968_v15, %v4473_v14  ;;  %v4463_v9 = vld [vmem:[#allocation6 + $0x5d0] sm:$0xf]  ;;  %v4449_v30 = vld [vmem:[#allocation6 + $0x5b8] sm:$0xf0]  ;;  %v4425_v62 = vld [vmem:[#allocation6 + $0x588] sm:$0xf0] }
 0x328   : > { %2565 = vmatpush.bf16.msrb.mxu0 %v4252_v50  ;;  %2578 = vmatpush.bf16.msrb.mxu1 %v4316_v0  ;;  %v5754_v50 = vpop.f32.mrf.mxu2  ;;  %v5756_v0 = vpop.f32.mrf.mxu3  ;;  %v4464_v22 = vor.u32 %v4967_v63, %v4463_v9  ;;  %v5763_v3 = vld [vmem:[%s5837_s5] ss:$4 sm:$0x3]  ;;  %v4367_v63 = vld [vmem:[#allocation6 + $0x510] sm:$0xf] }
 0x32b   : > { %2540 = vmatpush.bf16.msrb.mxu2 %v4240_v24  ;;  %2553 = vmatpush.bf16.msrb.mxu3 %v4304_v6  ;;  %v4404_v24 = vor.u32 %v4950_v10, %v4401_v12  ;;  %v4468_v6 = vor.u32 %v4966_v16, %v4465_v20  ;;  %v4431_v20 = vld [vmem:[#allocation6 + $0x590] sm:$0xf] }
 0x32c   : > { %2566 = vmatpush.bf16.msrb.mxu0 %v4244_v34  ;;  %2579 = vmatpush.bf16.msrb.mxu1 %v4308_v54  ;;  %v944_v34 = vpop.permute.xlu2 %943 }
 0x32d   : > { %v966_v48 = vmul.f32 0.0, %v944_v34  ;;  %v4941_v34 = vld [vmem:[#allocation6 + $0x504] sm:$0xf0] }
 0x32f   : > { %2541 = vmatpush.bf16.msrb.mxu2 %v4232_v27  ;;  %2554 = vmatpush.bf16.msrb.mxu3 %v4296_v2  ;;  %v4396_v27 = vor.u32 %v4948_v59, %v4393_v31  ;;  %v4460_v2 = vor.u32 %v4964_v58, %v4457_v42  ;;  %v1080_v41 = vadd.f32 %v5744_v18, %v966_v48  ;;  %v4359_v59 = vld [vmem:[#allocation6 + $0x500] sm:$0xf] }
 0x330   : > { %2567 = vmatpush.bf16.msrb.mxu0 %v4236_v43  ;;  %2580 = vmatpush.bf16.msrb.mxu1 %v4300_v7  ;;  %v4962_v7 = vld [vmem:[#allocation6 + $0x5b4] sm:$0xf]  ;;  %v1081_v60 = vadd.f32 %v5746_v1, %v966_v48  ;;  %v4943_v1 = vld [vmem:[#allocation6 + $0x514] sm:$0xf0]  ;;  %v4423_v31 = vld [vmem:[#allocation6 + $0x580] sm:$0xf] }
 0x331   : > { %v4452_v14 = vor.u32 %v4962_v7, %v4449_v30  ;;  %v1299_v10 = vmul.f32 %v1277_v5, %v1080_v41  ;;  %v4368_v40 = vor.u32 %v4943_v1, %v4367_v63  ;;  %v5003_v7 = vld [vmem:[#allocation6 + $0x6f4] sm:$0xf0]  ;;  %v5002_v41 = vld [vmem:[#allocation6 + $0x6f4] sm:$0xf] }
 0x332   : > { %2542 = vmatmul.bf16.vlgmr.msrb.gmra.mxu2 %v2370_v35  ;;  %2555 = vmatmul.bf16.vlgmr.msrb.gmra.mxu3 %v2371_v37  ;;  %v1300_v12 = vmul.f32 %v1277_v5, %v1081_v60  ;;  %v4609_v60 = vld [vmem:[#allocation6 + $0x6f8] sm:$0xf0]  ;;  %v4599_v5 = vld [vmem:[#allocation6 + $0x6e0] sm:$0xf] }
 0x333   : > { %2788 = vmatpush.bf16.msra.mxu2 %v4416_v11  ;;  %2801 = vmatpush.bf16.msra.mxu3 %v4480_v13  ;;  %v4384_v13 = vor.u32 %v4947_v25, %v4383_v51  ;;  %v4957_v25 = vld [vmem:[#allocation6 + $0x584] sm:$0xf0] }
 0x334   : > { %2814 = vmatpush.bf16.msra.mxu0 %v4420_v45  ;;  %2827 = vmatpush.bf16.msra.mxu1 %v4484_v56  ;;  %v4375_v45 = vld [vmem:[#allocation6 + $0x520] sm:$0xf]  ;;  %v4945_v56 = vld [vmem:[#allocation6 + $0x524] sm:$0xf0]  ;;  %v1310_v58 = vpack.c.bf16 %v1300_v12, %v1299_v10 }
 0x335   : > { %2568 = vmatmul.bf16.vlgmr.msrb.gmra.mxu0 %v2370_v35  ;;  %2581 = vmatmul.bf16.vlgmr.msrb.gmra.mxu1 %v2371_v37  ;;  %v4944_v35 = vld [vmem:[#allocation6 + $0x524] sm:$0xf]  ;;  %v4377_v37 = vld [vmem:[#allocation6 + $0x528] sm:$0xf0] }
 0x336   : > { %v1548_v36 = vpop.f32.mrf.mxu0  ;;  %v1561_v39 = vpop.f32.mrf.mxu1  ;;  %v4380_v18 = vor.u32 %v4944_v35, %v4377_v37  ;;  %v4535_v35 = vld [vmem:[#allocation6 + $0x660] sm:$0xf] }
 0x337   : > { %2789 = vmatpush.bf16.msra.mxu2 %v4408_v17  ;;  %2802 = vmatpush.bf16.msra.mxu3 %v4472_v38  ;;  %v5758_v54 = vadd.f32 %v1561_v39, %v1548_v36  ;;  %v4961_v17 = vld [vmem:[#allocation6 + $0x5a4] sm:$0xf0]  ;;  %v4960_v38 = vld [vmem:[#allocation6 + $0x5a4] sm:$0xf]  ;;  %v4369_v36 = vld [vmem:[#allocation6 + $0x518] sm:$0xf0] }
 0x338   : > { %2815 = vmatpush.bf16.msra.mxu0 %v4412_v8  ;;  %2828 = vmatpush.bf16.msra.mxu1 %v4476_v46  ;;  %v1567_v8 = vperm.slane %v5763_v3, 1  ;;  %v4376_v46 = vor.u32 %v4945_v56, %v4375_v45  ;;  %v4440_v9 = vor.u32 %v4961_v17, %v4439_v57  ;;  %v4444_v16 = vor.u32 %v4960_v38, %v4441_v4  ;;  %v4958_v39 = vld [vmem:[#allocation6 + $0x594] sm:$0xf]  ;;  %v4545_v57 = vld [vmem:[#allocation6 + $0x678] sm:$0xf0] }
 0x339   : > { %v2622_v56 = vunpack.c.l.b16 %v1310_v58  ;;  %v4985_v4 = vld [vmem:[#allocation6 + $0x664] sm:$0xf0] }
 0x33a   : > { %v1571_v48 = vadd.f32 %v1567_v8, %v5758_v54  ;;  %v2623_v54 = vunpack.c.h.b16 %v1310_v58  ;;  %v5001_v8 = vld [vmem:[#allocation6 + $0x6e4] sm:$0xf0] }
 0x33b   : > { %2790 = vmatpush.bf16.msra.mxu2 %v4400_v19  ;;  %2803 = vmatpush.bf16.msra.mxu3 %v4464_v22  ;;  %v1522_v29 = vpop.f32.mrf.mxu2  ;;  %v1535_v43 = vpop.f32.mrf.mxu3  ;;  %v4959_v19 = vld [vmem:[#allocation6 + $0x594] sm:$0xf0]  ;;  %v4942_v22 = vld [vmem:[#allocation6 + $0x514] sm:$0xf]  ;;  %v2624_v10 = vpack.c.b16 %v2622_v56, %v2622_v56 }
 0x33c   : > { %2816 = vmatpush.bf16.msra.mxu0 %v4404_v24  ;;  %2829 = vmatpush.bf16.msra.mxu1 %v4468_v6  ;;  %v5765_v11 = vadd.f32 %v1535_v43, %v1522_v29  ;;  %v4433_v24 = vld [vmem:[#allocation6 + $0x598] sm:$0xf0]  ;;  %v1566_v6 = vperm.slane %v5763_v3, 0  ;;  %v4432_v33 = vor.u32 %v4959_v19, %v4431_v20  ;;  %v4987_v29 = vld [vmem:[#allocation6 + $0x674] sm:$0xf0]  ;;  %v4360_v3 = vor.u32 %v4941_v34, %v4359_v59 }
 0x33d   : > { %v4607_v43 = vld [vmem:[#allocation6 + $0x6f0] sm:$0xf]  ;;  %v2625_v12 = vpack.c.b16 %v2623_v54, %v2623_v54  ;;  %v4537_v20 = vld [vmem:[#allocation6 + $0x668] sm:$0xf0]  ;;  %v4600_v19 = vor.u32 %v5001_v8, %v4599_v5  ;;  %v4529_v59 = vld [vmem:[#allocation6 + $0x658] sm:$0xf0] }
 0x33e   : > { %v1550_v61 = vpop.f32.mrf.mxu0  ;;  %v1563_v15 = vpop.f32.mrf.mxu1  ;;  %v4608_v17 = vor.u32 %v5003_v7, %v4607_v43  ;;  %v1570_v37 = vadd.f32 %v1566_v6, %v5765_v11  ;;  %v4536_v11 = vor.u32 %v4985_v4, %v4535_v35  ;;  %v4996_v43 = vld [vmem:[#allocation6 + $0x6c4] sm:$0xf]  ;;  %v4585_v7 = vld [vmem:[#allocation6 + $0x6c8] sm:$0xf0]  ;;  %v4978_v54 = vld [vmem:[#allocation6 + $0x634] sm:$0xf] }
 0x33f   : > { %2791 = vmatpush.bf16.msra.mxu2 %v4392_v21  ;;  %2804 = vmatpush.bf16.msra.mxu3 %v4456_v23  ;;  %v4372_v21 = vor.u32 %v4942_v22, %v4369_v36  ;;  %v4436_v23 = vor.u32 %v4958_v39, %v4433_v24  ;;  %v5000_v22 = vld [vmem:[#allocation6 + $0x6e4] sm:$0xf]  ;;  %v4983_v36 = vld [vmem:[#allocation6 + $0x654] sm:$0xf0]  ;;  %v4591_v39 = vld [vmem:[#allocation6 + $0x6d0] sm:$0xf]  ;;  %v4588_v56 = vor.u32 %v4996_v43, %v4585_v7 }
 0x340   : > { %2817 = vmatpush.bf16.msra.mxu0 %v4396_v27  ;;  %2830 = vmatpush.bf16.msra.mxu1 %v4460_v2  ;;  %v4956_v2 = vld [vmem:[#allocation6 + $0x584] sm:$0xf]  ;;  %v4999_v24 = vld [vmem:[#allocation6 + $0x6d4] sm:$0xf0]  ;;  %v4567_v35 = vld [vmem:[#allocation6 + $0x6a0] sm:$0xf] }
 0x341   : > { %v4428_v45 = vor.u32 %v4956_v2, %v4425_v62  ;;  %v4980_v2 = vld [vmem:[#allocation6 + $0x644] sm:$0xf]  ;;  %v4521_v62 = vld [vmem:[#allocation6 + $0x648] sm:$0xf0]  ;;  %v5034_v7 = vld [vmem:[#allocation6 + $0x7f4] sm:$0xf] }
 0x342   : > { %v4976_v5 = vld [vmem:[#allocation6 + $0x624] sm:$0xf]  ;;  %v4505_v8 = vld [vmem:[#allocation6 + $0x628] sm:$0xf0] }
 0x343   : > { %2792 = vmatpush.bf16.msra.mxu2 %v4384_v13  ;;  %2805 = vmatpush.bf16.msra.mxu3 %v4448_v53  ;;  %v1524_v28 = vpop.f32.mrf.mxu2  ;;  %v1537_v32 = vpop.f32.mrf.mxu3  ;;  %v4424_v13 = vor.u32 %v4957_v25, %v4423_v31  ;;  %v4986_v53 = vld [vmem:[#allocation6 + $0x674] sm:$0xf]  ;;  %v4981_v25 = vld [vmem:[#allocation6 + $0x644] sm:$0xf0] }
 0x344   : > { %2818 = vmatpush.bf16.msra.mxu0 %v4388_v55  ;;  %2831 = vmatpush.bf16.msra.mxu1 %v4452_v14  ;;  %v4364_v55 = vor.u32 %v4940_v26, %v4361_v47  ;;  %v4544_v14 = vor.u32 %v4987_v29, %v4543_v52  ;;  %v4601_v28 = vld [vmem:[#allocation6 + $0x6e8] sm:$0xf0]  ;;  %v4527_v32 = vld [vmem:[#allocation6 + $0x650] sm:$0xf]  ;;  %v4583_v26 = vld [vmem:[#allocation6 + $0x6c0] sm:$0xf] }
 0x345   : > { %v4528_v58 = vor.u32 %v4983_v36, %v4527_v32  ;;  %v4997_v47 = vld [vmem:[#allocation6 + $0x6c4] sm:$0xf0]  ;;  %v4990_v32 = vld [vmem:[#allocation6 + $0x694] sm:$0xf] }
 0x346   : > { %v1807_v42 = vpop.f32.mrf.mxu0  ;;  %v1820_v51 = vpop.f32.mrf.mxu1  ;;  %v4584_v29 = vor.u32 %v4997_v47, %v4583_v26  ;;  %v4489_v26 = vld [vmem:[#allocation6 + $0x608] sm:$0xf0]  ;;  %v4988_v47 = vld [vmem:[#allocation6 + $0x684] sm:$0xf] }
 0x347   : > { %2793 = vmatpush.bf16.msra.mxu2 %v4376_v46  ;;  %2806 = vmatpush.bf16.msra.mxu3 %v4440_v9  ;;  %v1821_v27 = vadd.f32 %v1820_v51, %v1807_v42  ;;  %v4548_v46 = vor.u32 %v4986_v53, %v4545_v57  ;;  %v4612_v9 = vor.u32 %v5002_v41, %v4609_v60  ;;  %v4998_v51 = vld [vmem:[#allocation6 + $0x6d4] sm:$0xf]  ;;  %v4575_v53 = vld [vmem:[#allocation6 + $0x6b0] sm:$0xf]  ;;  %v4513_v57 = vld [vmem:[#allocation6 + $0x638] sm:$0xf0] }
 0x348   : > { %2819 = vmatpush.bf16.msra.mxu0 %v4380_v18  ;;  %2832 = vmatpush.bf16.msra.mxu1 %v4444_v16  ;;  %v4984_v16 = vld [vmem:[#allocation6 + $0x664] sm:$0xf]  ;;  %v4592_v42 = vor.u32 %v4999_v24, %v4591_v39  ;;  %v4561_v24 = vld [vmem:[#allocation6 + $0x698] sm:$0xf0] }
 0x349   : > { %v5772_v30 = vadd.f32 %v1821_v27, %v1571_v48  ;;  %v4540_v6 = vor.u32 %v4984_v16, %v4537_v20  ;;  %v4559_v16 = vld [vmem:[#allocation6 + $0x690] sm:$0xf]  ;;  %v4991_v20 = vld [vmem:[#allocation6 + $0x694] sm:$0xf0] }
 0x34a   : > { %v4560_v39 = vor.u32 %v4991_v20, %v4559_v16  ;;  %v4657_v16 = vld [vmem:[#allocation6 + $0x758] sm:$0xf0] }
 0x34b   : > { %2794 = vmatpush.bf16.msra.mxu2 %v4368_v40  ;;  %2807 = vmatpush.bf16.msra.mxu3 %v4432_v33  ;;  %v1781_v61 = vpop.f32.mrf.mxu2  ;;  %v1794_v15 = vpop.f32.mrf.mxu3  ;;  %v4604_v40 = vor.u32 %v5000_v22, %v4601_v28  ;;  %v4982_v33 = vld [vmem:[#allocation6 + $0x654] sm:$0xf]  ;;  %v4497_v28 = vld [vmem:[#allocation6 + $0x618] sm:$0xf0] }
 0x34c   : > { %2820 = vmatpush.bf16.msra.mxu0 %v4372_v21  ;;  %2833 = vmatpush.bf16.msra.mxu1 %v4436_v23  ;;  %v1795_v38 = vadd.f32 %v1794_v15, %v1781_v61  ;;  %v4593_v21 = vld [vmem:[#allocation6 + $0x6d8] sm:$0xf0]  ;;  %v4519_v23 = vld [vmem:[#allocation6 + $0x640] sm:$0xf]  ;;  %v4532_v48 = vor.u32 %v4982_v33, %v4529_v59  ;;  %v4994_v61 = vld [vmem:[#allocation6 + $0x6b4] sm:$0xf] }
 0x34d   : > { %v4596_v27 = vor.u32 %v4998_v51, %v4593_v21  ;;  %v4520_v52 = vor.u32 %v4981_v25, %v4519_v23  ;;  %v4577_v15 = vld [vmem:[#allocation6 + $0x6b8] sm:$0xf0]  ;;  %v4974_v22 = vld [vmem:[#allocation6 + $0x614] sm:$0xf]  ;;  %v4551_v33 = vld [vmem:[#allocation6 + $0x680] sm:$0xf]  ;;  %v4564_v23 = vor.u32 %v4990_v32, %v4561_v24 }
 0x34e   : > { %v5775_v18 = vadd.f32 %v1795_v38, %v1570_v37  ;;  %v1809_v63 = vpop.f32.mrf.mxu0  ;;  %v1822_v1 = vpop.f32.mrf.mxu1  ;;  %v4993_v37 = vld [vmem:[#allocation6 + $0x6a4] sm:$0xf0]  ;;  %v4516_v38 = vor.u32 %v4978_v54, %v4513_v57  ;;  %v4580_v4 = vor.u32 %v4994_v61, %v4577_v15  ;;  %v5035_v51 = vld [vmem:[#allocation6 + $0x7f4] sm:$0xf0]  ;;  %v4500_v21 = vor.u32 %v4974_v22, %v4497_v28  ;;  %v4972_v25 = vld [vmem:[#allocation6 + $0x604] sm:$0xf] }
 0x34f   : > { %2795 = vmatpush.bf16.msra.mxu2 %v4360_v3  ;;  %2808 = vmatpush.bf16.msra.mxu3 %v4424_v13  ;;  %v4511_v3 = vld [vmem:[#allocation6 + $0x630] sm:$0xf]  ;;  %v4979_v13 = vld [vmem:[#allocation6 + $0x634] sm:$0xf0]  ;;  %v4992_v63 = vld [vmem:[#allocation6 + $0x6a4] sm:$0xf]  ;;  %v4492_v54 = vor.u32 %v4972_v25, %v4489_v26 }
 0x350   : > { %2821 = vmatpush.bf16.msra.mxu0 %v4364_v55  ;;  %2834 = vmatpush.bf16.msra.mxu1 %v4428_v45  ;;  %v4995_v55 = vld [vmem:[#allocation6 + $0x6b4] sm:$0xf0]  ;;  %v4524_v45 = vor.u32 %v4980_v2, %v4521_v62  ;;  %v4512_v41 = vor.u32 %v4979_v13, %v4511_v3  ;;  %v4569_v1 = vld [vmem:[#allocation6 + $0x6a8] sm:$0xf0]  ;;  %v4989_v59 = vld [vmem:[#allocation6 + $0x684] sm:$0xf0] }
 0x351   : > { %v4576_v60 = vor.u32 %v4995_v55, %v4575_v53  ;;  %v4553_v2 = vld [vmem:[#allocation6 + $0x688] sm:$0xf0]  ;;  %v5018_v62 = vld [vmem:[#allocation6 + $0x774] sm:$0xf]  ;;  %v4737_v3 = vld [vmem:[#allocation6 + $0x7f8] sm:$0xf0] }
 0x352   : > { %2796 = vmatmul.bf16.vlgmr.msra.gmra.mxu2 %v2624_v10  ;;  %2809 = vmatmul.bf16.vlgmr.msra.gmra.mxu3 %v2625_v12  ;;  %v4663_v13 = vld [vmem:[#allocation6 + $0x760] sm:$0xf]  ;;  %v5017_v53 = vld [vmem:[#allocation6 + $0x764] sm:$0xf0]  ;;  %v4556_v57 = vor.u32 %v4988_v47, %v4553_v2  ;;  %v5016_v61 = vld [vmem:[#allocation6 + $0x764] sm:$0xf] }
 0x353   : > { %3042 = vmatpush.bf16.msrb.mxu2 %v4544_v14  ;;  %3055 = vmatpush.bf16.msrb.mxu3 %v4608_v17  ;;  %v1783_v34 = vpop.f32.mrf.mxu2  ;;  %v1796_v31 = vpop.f32.mrf.mxu3  ;;  %v4503_v14 = vld [vmem:[#allocation6 + $0x620] sm:$0xf]  ;;  %v4977_v17 = vld [vmem:[#allocation6 + $0x624] sm:$0xf0]  ;;  %v4665_v15 = vld [vmem:[#allocation6 + $0x768] sm:$0xf0] }
 0x354   : > { %2822 = vmatmul.bf16.vlgmr.msra.gmra.mxu0 %v2624_v10  ;;  %2835 = vmatmul.bf16.vlgmr.msra.gmra.mxu1 %v2625_v12  ;;  %v4495_v10 = vld [vmem:[#allocation6 + $0x610] sm:$0xf]  ;;  %v4975_v12 = vld [vmem:[#allocation6 + $0x614] sm:$0xf0]  ;;  %v949_v31 = vpop.permute.xlu2 %948  ;;  %v4727_v55 = vld [vmem:[#allocation6 + $0x7e0] sm:$0xf] }
 0x355   : > { %3068 = vmatpush.bf16.msrb.mxu0 %v4548_v46  ;;  %3081 = vmatpush.bf16.msrb.mxu1 %v4612_v9  ;;  %v4504_v46 = vor.u32 %v4977_v17, %v4503_v14  ;;  %v4568_v9 = vor.u32 %v4993_v37, %v4567_v35  ;;  %v4496_v36 = vor.u32 %v4975_v12, %v4495_v10  ;;  %v4671_v34 = vld [vmem:[#allocation6 + $0x770] sm:$0xf]  ;;  %v5032_v35 = vld [vmem:[#allocation6 + $0x7e4] sm:$0xf]  ;;  %v4729_v37 = vld [vmem:[#allocation6 + $0x7e8] sm:$0xf0] }
 0x356   : > { %v4664_v14 = vor.u32 %v5017_v53, %v4663_v13  ;;  %v4732_v10 = vor.u32 %v5032_v35, %v4729_v37  ;;  %v5014_v12 = vld [vmem:[#allocation6 + $0x754] sm:$0xf]  ;;  %v4721_v28 = vld [vmem:[#allocation6 + $0x7d8] sm:$0xf0]  ;;  %v4647_v32 = vld [vmem:[#allocation6 + $0x740] sm:$0xf] }
 0x357   : > { %3043 = vmatpush.bf16.msrb.mxu2 %v4536_v11  ;;  %3056 = vmatpush.bf16.msrb.mxu3 %v4600_v19  ;;  %v4508_v11 = vor.u32 %v4976_v5, %v4505_v8  ;;  %v4572_v19 = vor.u32 %v4992_v63, %v4569_v1  ;;  %v4719_v5 = vld [vmem:[#allocation6 + $0x7d0] sm:$0xf]  ;;  %v5031_v8 = vld [vmem:[#allocation6 + $0x7d4] sm:$0xf0]  ;;  %v4668_v1 = vor.u32 %v5016_v61, %v4665_v15  ;;  %v5030_v22 = vld [vmem:[#allocation6 + $0x7d4] sm:$0xf] }
 0x358   : > { %v4711_v24 = vld [vmem:[#allocation6 + $0x7c0] sm:$0xf]  ;;  %v5011_v47 = vld [vmem:[#allocation6 + $0x734] sm:$0xf0]  ;;  %v4641_v13 = vld [vmem:[#allocation6 + $0x738] sm:$0xf0] }
 0x359   : > { %3069 = vmatpush.bf16.msrb.mxu0 %v4540_v6  ;;  %3082 = vmatpush.bf16.msrb.mxu1 %v4604_v40  ;;  %v4487_v6 = vld [vmem:[#allocation6 + $0x600] sm:$0xf]  ;;  %v4973_v40 = vld [vmem:[#allocation6 + $0x604] sm:$0xf0]  ;;  %v5008_v35 = vld [vmem:[#allocation6 + $0x724] sm:$0xf] }
 0x35a   : > { %v5025_v61 = vld [vmem:[#allocation6 + $0x7a4] sm:$0xf0]  ;;  %v4633_v37 = vld [vmem:[#allocation6 + $0x728] sm:$0xf0] }
 0x35b   : > { %3044 = vmatpush.bf16.msrb.mxu2 %v4528_v58  ;;  %3057 = vmatpush.bf16.msrb.mxu3 %v4592_v42  ;;  %v5019_v58 = vld [vmem:[#allocation6 + $0x774] sm:$0xf0]  ;;  %v4735_v42 = vld [vmem:[#allocation6 + $0x7f0] sm:$0xf] }
 0x35c   : > { %v4736_v43 = vor.u32 %v5035_v51, %v4735_v42  ;;  %v954_v63 = vpop.permute.xlu2 %953  ;;  %v5028_v51 = vld [vmem:[#allocation6 + $0x7c4] sm:$0xf] }
 0x35d   : > { %3070 = vmatpush.bf16.msrb.mxu0 %v4532_v48  ;;  %3083 = vmatpush.bf16.msrb.mxu1 %v4596_v27  ;;  %v4488_v48 = vor.u32 %v4973_v40, %v4487_v6  ;;  %v4552_v27 = vor.u32 %v4989_v59, %v4551_v33  ;;  %v970_v6 = vmul.f32 0.0, %v954_v63  ;;  %v4660_v33 = vor.u32 %v5014_v12, %v4657_v16  ;;  %v4687_v63 = vld [vmem:[#allocation6 + $0x790] sm:$0xf]  ;;  %v5006_v16 = vld [vmem:[#allocation6 + $0x714] sm:$0xf] }
 0x35e   : > { %v4724_v59 = vor.u32 %v5030_v22, %v4721_v28  ;;  %v5022_v22 = vld [vmem:[#allocation6 + $0x794] sm:$0xf]  ;;  %v4689_v28 = vld [vmem:[#allocation6 + $0x798] sm:$0xf0] }
 0x35f   : > { %3045 = vmatpush.bf16.msrb.mxu2 %v4520_v52  ;;  %3058 = vmatpush.bf16.msrb.mxu3 %v4584_v29  ;;  %v4673_v52 = vld [vmem:[#allocation6 + $0x778] sm:$0xf0]  ;;  %v4672_v29 = vor.u32 %v5019_v58, %v4671_v34  ;;  %v5012_v34 = vld [vmem:[#allocation6 + $0x744] sm:$0xf]  ;;  %v1084_v2 = vadd.f32 %v5754_v50, %v970_v6 }
 0x361   : > { %3071 = vmatpush.bf16.msrb.mxu0 %v4524_v45  ;;  %3084 = vmatpush.bf16.msrb.mxu1 %v4588_v56  ;;  %v5033_v45 = vld [vmem:[#allocation6 + $0x7e4] sm:$0xf0]  ;;  %v968_v56 = vmul.f32 0.0, %v949_v31  ;;  %v4649_v31 = vld [vmem:[#allocation6 + $0x748] sm:$0xf0] }
 0x362   : > { %v4728_v17 = vor.u32 %v5033_v45, %v4727_v55 }
 0x363   : > { %3046 = vmatpush.bf16.msrb.mxu2 %v4512_v41  ;;  %3059 = vmatpush.bf16.msrb.mxu3 %v4576_v60  ;;  %v4676_v41 = vor.u32 %v5018_v62, %v4673_v52  ;;  %v4740_v60 = vor.u32 %v5034_v7, %v4737_v3  ;;  %v1085_v62 = vadd.f32 %v5756_v0, %v970_v6  ;;  %v5010_v3 = vld [vmem:[#allocation6 + $0x734] sm:$0xf]  ;;  %v5009_v0 = vld [vmem:[#allocation6 + $0x724] sm:$0xf0]  ;;  %v5004_v6 = vld [vmem:[#allocation6 + $0x704] sm:$0xf] }
 0x364   : > { %v4652_v52 = vor.u32 %v5012_v34, %v4649_v31  ;;  %v5020_v34 = vld [vmem:[#allocation6 + $0x784] sm:$0xf]  ;;  %v4681_v31 = vld [vmem:[#allocation6 + $0x788] sm:$0xf0] }
 0x365   : > { %3072 = vmatpush.bf16.msrb.mxu0 %v4516_v38  ;;  %3085 = vmatpush.bf16.msrb.mxu1 %v4580_v4  ;;  %v4655_v38 = vld [vmem:[#allocation6 + $0x750] sm:$0xf]  ;;  %v5015_v4 = vld [vmem:[#allocation6 + $0x754] sm:$0xf0] }
 0x367   : > { %3047 = vmatpush.bf16.msrb.mxu2 %v4504_v46  ;;  %3060 = vmatpush.bf16.msrb.mxu3 %v4568_v9  ;;  %v1082_v46 = vadd.f32 %v5750_v44, %v968_v56  ;;  %v1083_v9 = vadd.f32 %v5752_v49, %v968_v56  ;;  %v5029_v49 = vld [vmem:[#allocation6 + $0x7c4] sm:$0xf0]  ;;  %v5026_v56 = vld [vmem:[#allocation6 + $0x7b4] sm:$0xf] }
 0x368   : > { %v4712_v42 = vor.u32 %v5029_v49, %v4711_v24  ;;  %v4692_v49 = vor.u32 %v5022_v22, %v4689_v28 }
 0x369   : > { %3073 = vmatpush.bf16.msrb.mxu0 %v4508_v11  ;;  %3086 = vmatpush.bf16.msrb.mxu1 %v4572_v19  ;;  %v4656_v11 = vor.u32 %v5015_v4, %v4655_v38  ;;  %v4720_v19 = vor.u32 %v5031_v8, %v4719_v5  ;;  %v5024_v5 = vld [vmem:[#allocation6 + $0x7a4] sm:$0xf]  ;;  %v4697_v8 = vld [vmem:[#allocation6 + $0x7a8] sm:$0xf0] }
 0x36a   : > { %v4700_v12 = vor.u32 %v5024_v5, %v4697_v8 }
 0x36b   : > { %3048 = vmatpush.bf16.msrb.mxu2 %v4496_v36  ;;  %3061 = vmatpush.bf16.msrb.mxu3 %v4560_v39  ;;  %v5013_v39 = vld [vmem:[#allocation6 + $0x744] sm:$0xf0] }
 0x36c   : > { %v4648_v58 = vor.u32 %v5013_v39, %v4647_v32  ;;  %v4615_v32 = vld [vmem:[#allocation6 + $0x700] sm:$0xf]  ;;  %v5021_v39 = vld [vmem:[#allocation6 + $0x784] sm:$0xf0] }
 0x36d   : > { %3074 = vmatpush.bf16.msrb.mxu0 %v4500_v21  ;;  %3087 = vmatpush.bf16.msrb.mxu1 %v4564_v23  ;;  %v4713_v21 = vld [vmem:[#allocation6 + $0x7c8] sm:$0xf0]  ;;  %v4639_v23 = vld [vmem:[#allocation6 + $0x730] sm:$0xf] }
 0x36e   : > { %v4716_v7 = vor.u32 %v5028_v51, %v4713_v21  ;;  %v4640_v55 = vor.u32 %v5011_v47, %v4639_v23  ;;  %v4684_v21 = vor.u32 %v5020_v34, %v4681_v31 }
 0x36f   : > { %3049 = vmatpush.bf16.msrb.mxu2 %v4488_v48  ;;  %3062 = vmatpush.bf16.msrb.mxu3 %v4552_v27  ;;  %v4703_v48 = vld [vmem:[#allocation6 + $0x7b0] sm:$0xf]  ;;  %v5027_v27 = vld [vmem:[#allocation6 + $0x7b4] sm:$0xf0] }
 0x370   : > { %v1282_v20 = vpop.permute.xlu0 %1281  ;;  %v4704_v45 = vor.u32 %v5027_v27, %v4703_v48 }
 0x371   : > { %3075 = vmatpush.bf16.msrb.mxu0 %v4492_v54  ;;  %3088 = vmatpush.bf16.msrb.mxu1 %v4556_v57  ;;  %v1301_v44 = vmul.f32 %v1282_v20, %v1082_v46  ;;  %v1302_v36 = vmul.f32 %v1282_v20, %v1083_v9  ;;  %v4705_v54 = vld [vmem:[#allocation6 + $0x7b8] sm:$0xf0]  ;;  %v4631_v57 = vld [vmem:[#allocation6 + $0x720] sm:$0xf]  ;;  %v4623_v46 = vld [vmem:[#allocation6 + $0x710] sm:$0xf] }
 0x372   : > { %v4632_v38 = vor.u32 %v5009_v0, %v4631_v57  ;;  %v5007_v9 = vld [vmem:[#allocation6 + $0x714] sm:$0xf0]  ;;  %v4625_v20 = vld [vmem:[#allocation6 + $0x718] sm:$0xf0] }
 0x373   : > { %3296 = vmatpush.bf16.msra.mxu2 %v4672_v29  ;;  %3309 = vmatpush.bf16.msra.mxu3 %v4736_v43  ;;  %v1311_v40 = vpack.c.bf16 %v1302_v36, %v1301_v44  ;;  %v5005_v44 = vld [vmem:[#allocation6 + $0x704] sm:$0xf0]  ;;  %v4679_v36 = vld [vmem:[#allocation6 + $0x780] sm:$0xf]  ;;  %v4628_v24 = vor.u32 %v5006_v16, %v4625_v20 }
 0x375   : > { %3322 = vmatpush.bf16.msra.mxu0 %v4676_v41  ;;  %3335 = vmatpush.bf16.msra.mxu1 %v4740_v60  ;;  %v2876_v25 = vunpack.c.l.b16 %v1311_v40  ;;  %v2877_v26 = vunpack.c.h.b16 %v1311_v40  ;;  %v4695_v60 = vld [vmem:[#allocation6 + $0x7a0] sm:$0xf]  ;;  %v4616_v40 = vor.u32 %v5005_v44, %v4615_v32 }
 0x376   : > { %v4696_v4 = vor.u32 %v5025_v61, %v4695_v60 }
 0x377   : > { %3297 = vmatpush.bf16.msra.mxu2 %v4664_v14  ;;  %3310 = vmatpush.bf16.msra.mxu3 %v4728_v17  ;;  %v2878_v29 = vpack.c.b16 %v2876_v25, %v2876_v25  ;;  %v2879_v43 = vpack.c.b16 %v2877_v26, %v2877_v26  ;;  %v4644_v14 = vor.u32 %v5010_v3, %v4641_v13 }
 0x378   : > { %v1287_v53 = vpop.permute.xlu0 %1286  ;;  %v4708_v17 = vor.u32 %v5026_v56, %v4705_v54 }
 0x379   : > { %3323 = vmatpush.bf16.msra.mxu0 %v4668_v1  ;;  %3336 = vmatpush.bf16.msra.mxu1 %v4732_v10  ;;  %v1303_v41 = vmul.f32 %v1287_v53, %v1084_v2  ;;  %v1304_v50 = vmul.f32 %v1287_v53, %v1085_v62  ;;  %v5023_v1 = vld [vmem:[#allocation6 + $0x794] sm:$0xf0]  ;;  %v4636_v10 = vor.u32 %v5008_v35, %v4633_v37 }
 0x37a   : > { %3050 = vmatmul.bf16.vlgmr.msrb.gmra.mxu2 %v2878_v29  ;;  %3063 = vmatmul.bf16.vlgmr.msrb.gmra.mxu3 %v2879_v43 }
 0x37b   : > { %3298 = vmatpush.bf16.msra.mxu2 %v4656_v11  ;;  %3311 = vmatpush.bf16.msra.mxu3 %v4720_v19  ;;  %v1312_v15 = vpack.c.bf16 %v1304_v50, %v1303_v41  ;;  %v4624_v11 = vor.u32 %v5007_v9, %v4623_v46  ;;  %v4688_v19 = vor.u32 %v5023_v1, %v4687_v63 }
 0x37c   : > { %3076 = vmatmul.bf16.vlgmr.msrb.gmra.mxu0 %v2878_v29  ;;  %3089 = vmatmul.bf16.vlgmr.msrb.gmra.mxu1 %v2879_v43 }
 0x37d   : > { %3324 = vmatpush.bf16.msra.mxu0 %v4660_v33  ;;  %3337 = vmatpush.bf16.msra.mxu1 %v4724_v59  ;;  %v4680_v33 = vor.u32 %v5021_v39, %v4679_v36  ;;  %v4617_v59 = vld [vmem:[#allocation6 + $0x708] sm:$0xf0] }
 0x37e   : > { %v4620_v51 = vor.u32 %v5004_v6, %v4617_v59 }
 0x37f   : > { %3299 = vmatpush.bf16.msra.mxu2 %v4648_v58  ;;  %3312 = vmatpush.bf16.msra.mxu3 %v4712_v42  ;;  %v3130_v58 = vunpack.c.l.b16 %v1312_v15  ;;  %v3131_v42 = vunpack.c.h.b16 %v1312_v15 }
 0x381   : > { %3325 = vmatpush.bf16.msra.mxu0 %v4652_v52  ;;  %3338 = vmatpush.bf16.msra.mxu1 %v4716_v7  ;;  %v3132_v23 = vpack.c.b16 %v3130_v58, %v3130_v58  ;;  %v3133_v25 = vpack.c.b16 %v3131_v42, %v3131_v42 }
 0x383   : > { %3300 = vmatpush.bf16.msra.mxu2 %v4640_v55  ;;  %3313 = vmatpush.bf16.msra.mxu3 %v4704_v45 }
 0x385   : > { %3326 = vmatpush.bf16.msra.mxu0 %v4644_v14  ;;  %3339 = vmatpush.bf16.msra.mxu1 %v4708_v17 }
 0x387   : > { %3301 = vmatpush.bf16.msra.mxu2 %v4632_v38  ;;  %3314 = vmatpush.bf16.msra.mxu3 %v4696_v4 }
 0x389   : > { %3327 = vmatpush.bf16.msra.mxu0 %v4636_v10  ;;  %3340 = vmatpush.bf16.msra.mxu1 %v4700_v12 }
 0x38b   : > { %3302 = vmatpush.bf16.msra.mxu2 %v4624_v11  ;;  %3315 = vmatpush.bf16.msra.mxu3 %v4688_v19 }
 0x38d   : > { %3328 = vmatpush.bf16.msra.mxu0 %v4628_v24  ;;  %3341 = vmatpush.bf16.msra.mxu1 %v4692_v49 }
 0x38f   : > { %3303 = vmatpush.bf16.msra.mxu2 %v4616_v40  ;;  %3316 = vmatpush.bf16.msra.mxu3 %v4680_v33  ;;  %v2061_v26 = vpop.f32.mrf.mxu0  ;;  %v2074_v47 = vpop.f32.mrf.mxu1 }
 0x390   : > { %v2075_v48 = vadd.f32 %v2074_v47, %v2061_v26 }
 0x391   : > { %3329 = vmatpush.bf16.msra.mxu0 %v4620_v51  ;;  %3342 = vmatpush.bf16.msra.mxu1 %v4684_v21 }
 0x392   : > { %3304 = vmatmul.bf16.vlgmr.msra.gmra.mxu2 %v3132_v23  ;;  %3317 = vmatmul.bf16.vlgmr.msra.gmra.mxu3 %v3133_v25  ;;  %v2079_v27 = vadd.f32 %v2075_v48, %v5772_v30 }
 0x394   : > { %3330 = vmatmul.bf16.vlgmr.msra.gmra.mxu0 %v3132_v23  ;;  %3343 = vmatmul.bf16.vlgmr.msra.gmra.mxu1 %v3133_v25  ;;  %v2035_v2 = vpop.f32.mrf.mxu2  ;;  %v2048_v62 = vpop.f32.mrf.mxu3 }
 0x395   : > { %v2049_v52 = vadd.f32 %v2048_v62, %v2035_v2  ;;  %v3351_v2 = vld [vmem:[%s431_s20 + $0x8] sm:$0xff] }
 0x397   : > { %v2078_v29 = vadd.f32 %v2049_v52, %v5775_v18  ;;  %v2063_v43 = vpop.f32.mrf.mxu0  ;;  %v2076_v7 = vpop.f32.mrf.mxu1 }
 0x39c   : > { %v2037_v3 = vpop.f32.mrf.mxu2  ;;  %v2050_v13 = vpop.f32.mrf.mxu3 }
 0x39f   : > { %v2315_v53 = vpop.f32.mrf.mxu0  ;;  %v2328_v55 = vpop.f32.mrf.mxu1 }
 0x3a0   : > { %v2329_v45 = vadd.f32 %v2328_v55, %v2315_v53  ;;  %v5284_v55 = vmov 256.0  }
 0x3a1   : > { %5160 = vrcp.f32 %v5284_v55 }
 0x3a2   : > { %v2333_v56 = vadd.f32 %v2329_v45, %v2079_v27  ;;  %v3350_v27 = vld [vmem:[%s431_s20] sm:$0xff]  ;;  %s5208_s20 = sshra.s32 %s3425_s18, 4  ;;  %s5209_s20 = int_to_ptr.hbm [resolvable:$true] %s5208_s20 }
 0x3a3   : > { %s5210_s19 = scalar_lea.hbm %s5209_s20, 16  ;;  %p5215_p8 = scmp.lt.s32.totalorder %s5209_s20, %s5838_s6 }
 0x3a4   : > { %v2289_v54 = vpop.f32.mrf.mxu2  ;;  %v2302_v57 = vpop.f32.mrf.mxu3  ;;  %p5211_p4 = scmp.ne.s32.totalorder %s5209_s20, %s5210_s19  ;;  %p5216_p9 = scmp.lt.s32.totalorder %s5214_s28, %s5210_s19 }
 0x3a5   : > { %v2303_v41 = vadd.f32 %v2302_v57, %v2289_v54 }
 0x3a6   : > { %p5212_p6 = pnand %p5211_p4, %p5363_p5  ;;  %p5217_p10 = por %p5216_p9, %p5215_p8 }
 0x3a7   : > { %v2332_v50 = vadd.f32 %v2303_v41, %v2078_v29  ;;  %v2317_v0 = vpop.f32.mrf.mxu0  ;;  %v2330_v60 = vpop.f32.mrf.mxu1 }
 0x3a8   : > { %v5161_v45 = vpop.eup %5160  ;;  %p5213_p7 = pneg %p5212_p6 }
 0x3a9   : > { %vm3362_vm3 = vweird.f32 %v5161_v45 }
 0x3aa   : > { %p5218_p12 = pnand %p5217_p10, %p5213_p7 }
 0x3ac   : > { %v2291_v30 = vpop.f32.mrf.mxu2  ;;  %v2304_v61 = vpop.f32.mrf.mxu3 }
 0x3b2   : > { %v2569_v15 = vpop.f32.mrf.mxu0  ;;  %v2582_v14 = vpop.f32.mrf.mxu1 }
 0x3b3   : > { %v2583_v17 = vadd.f32 %v2582_v14, %v2569_v15 }
 0x3b5   : > { %v2587_v18 = vadd.f32 %v2583_v17, %v2333_v56  ;;  %v2543_v35 = vpop.f32.mrf.mxu2  ;;  %v2556_v37 = vpop.f32.mrf.mxu3  ;;  %v3358_v56 = vmul.f32 256.0, %v5161_v45 }
 0x3b6   : > { %v2557_v38 = vadd.f32 %v2556_v37, %v2543_v35 }
 0x3b7   : > { %v3359_v54 = vsub.f32 1.0, %v3358_v56 }
 0x3b8   : > { %v2586_v4 = vadd.f32 %v2557_v38, %v2332_v50 }
 0x3b9   : > { %v3360_v57 = vmul.f32 %v5161_v45, %v3359_v54 }
 0x3ba   : > { %v2571_v5 = vpop.f32.mrf.mxu0  ;;  %v2584_v8 = vpop.f32.mrf.mxu1 }
 0x3bb   : > { %v3361_v41 = vadd.f32 %v5161_v45, %v3360_v57 }
 0x3bd   : > { %v2545_v46 = vpop.f32.mrf.mxu2  ;;  %v2558_v9 = vpop.f32.mrf.mxu3  ;;  %v3363_v50 = vsel %vm3362_vm3, %v5161_v45, %v3361_v41 }
 0x3be   : > { %v4741_v46 = vld [vmem:[%s5837_s5 + $0x1] ss:$4 sm:$0x3] }
 0x3d1   : > { %v2823_v63 = vpop.f32.mrf.mxu0  ;;  %v2836_v1 = vpop.f32.mrf.mxu1 }
 0x3d2   : > { %v2837_v6 = vadd.f32 %v2836_v1, %v2823_v63  ;;  %v4742_v1 = vld [vmem:[%s5837_s5 + $0x2] ss:$4 sm:$0x3] }
 0x3d4   : > { %v2841_v31 = vadd.f32 %v2837_v6, %v2587_v18 }
 0x3d5   : > { %v2797_v10 = vpop.f32.mrf.mxu2  ;;  %v2810_v12 = vpop.f32.mrf.mxu3 }
 0x3d6   : > { %v2811_v40 = vadd.f32 %v2810_v12, %v2797_v10  ;;  %v3389_v10 = vperm.slane %v4741_v46, 0  ;;  %v3390_v12 = vperm.slane %v4741_v46, 1 }
 0x3d8   : > { %v2840_v51 = vadd.f32 %v2811_v40, %v2586_v4 }
 0x3d9   : > { %v2825_v16 = vpop.f32.mrf.mxu0  ;;  %v2838_v20 = vpop.f32.mrf.mxu1 }
 0x3dd   : > { %v2799_v11 = vpop.f32.mrf.mxu2  ;;  %v2812_v19 = vpop.f32.mrf.mxu3 }
 0x3de   : > { %v3398_v19 = vperm.slane %v4742_v1, 0 }
 0x3f9   : > { %v3077_v22 = vpop.f32.mrf.mxu0  ;;  %v3090_v28 = vpop.f32.mrf.mxu1 }
 0x3fa   : > { %v3091_v33 = vadd.f32 %v3090_v28, %v3077_v22  ;;  %v3399_v22 = vperm.slane %v4742_v1, 1 }
 0x3fc   : > { %v3095_v21 = vadd.f32 %v3091_v33, %v2841_v31 }
 0x3fd   : > { %v3051_v32 = vpop.f32.mrf.mxu2  ;;  %v3064_v44 = vpop.f32.mrf.mxu3 }
 0x3fe   : > { %v3065_v58 = vadd.f32 %v3064_v44, %v3051_v32 }
 0x400   : > { %v3094_v26 = vadd.f32 %v3065_v58, %v2840_v51 }
 0x401   : > { %v3079_v36 = vpop.f32.mrf.mxu0  ;;  %v3092_v39 = vpop.f32.mrf.mxu1 }
 0x405   : > { %v3053_v24 = vpop.f32.mrf.mxu2  ;;  %v3066_v49 = vpop.f32.mrf.mxu3 }
 0x411   : > { %v3331_v59 = vpop.f32.mrf.mxu0  ;;  %v3344_v34 = vpop.f32.mrf.mxu1 }
 0x412   : > { %v3345_v42 = vadd.f32 %v3344_v34, %v3331_v59 }
 0x414   : > { %v3349_v47 = vadd.f32 %v3345_v42, %v3095_v21 }
 0x415   : > { %v3305_v23 = vpop.f32.mrf.mxu2  ;;  %v3318_v25 = vpop.f32.mrf.mxu3 }
 0x416   : > { %v3319_v48 = vadd.f32 %v3318_v25, %v3305_v23  ;;  %v3353_v7 = vadd.f32 %v3351_v2, %v3349_v47 }
 0x418   : > { %v3348_v62 = vadd.f32 %v3319_v48, %v3094_v26 }
 0x419   : > { %v3333_v52 = vpop.f32.mrf.mxu0  ;;  %v3346_v29 = vpop.f32.mrf.mxu1 }
 0x41a   : > { %v3352_v43 = vadd.f32 %v3350_v27, %v3348_v62 }
 0x41c   : > { %v3354_v3 = vadd.f32 %v3353_v7, %v3352_v43 }
 0x41d   : > { %v3307_v13 = vpop.f32.mrf.mxu2  ;;  %v3320_v53 = vpop.f32.mrf.mxu3 }
 0x41e   : > { %3355 = vadd.xlane.f32.xlu2 %v3354_v3 }
 0x491   : > { %v3356_v0 = vpop.xlane.xlu2 %3355 }
 0x492   : > { %v3364_v60 = vmul.f32 %v3363_v50, %v3356_v0 }
 0x494   : > { %v3365_v30 = vsub.f32 %v3352_v43, %v3364_v60  ;;  %v3366_v61 = vsub.f32 %v3353_v7, %v3364_v60 }
 0x496   : > { %v3367_v15 = vmul.f32 %v3365_v30, %v3365_v30  ;;  %v3368_v14 = vmul.f32 %v3366_v61, %v3366_v61 }
 0x498   : > { %v3369_v17 = vadd.f32 %v3368_v14, %v3367_v15 }
 0x49a   : > { %3370 = vadd.xlane.f32.xlu0 %v3369_v17 }
 0x50d   : > { %v3371_v18 = vpop.xlane.xlu0 %3370 }
 0x50e   : > { %v3372_v35 = vmul.f32 %v3371_v18, %v3363_v50 }
 0x510   : > { %v3373_v37 = vadd.f32 1e-05, %v3372_v35 }
 0x512   : > { %5162 = vrsqrt.f32 %v3373_v37  ;;  %vm3380_vm5 = vweird.f32 %v3373_v37 }
 0x518   : > { %v5163_v38 = vpop.eup %5162 }
 0x519   : > { %v3375_v4 = vmul.f32 %v5163_v38, %v3373_v37  ;;  %vm3381_vm4 = vweird.f32 %v5163_v38 }
 0x51a   : > { %vm3382_vm6 = vmor %vm3380_vm5, %vm3381_vm4 }
 0x51b   : > { %v3376_v5 = vmul.f32 %v5163_v38, %v3375_v4 }
 0x51d   : > { %v3377_v8 = vmul.f32 0.5, %v3376_v5 }
 0x51f   : > { %v3378_v9 = vsub.f32 1.5, %v3377_v8 }
 0x521   : > { %v3379_v63 = vmul.f32 %v5163_v38, %v3378_v9 }
 0x523   : > { %v3383_v16 = vsel %vm3382_vm6, %v5163_v38, %v3379_v63 }
 0x524   : > { %v3384_v20 = vmul.f32 %v3383_v16, %v3365_v30  ;;  %v3385_v11 = vmul.f32 %v3383_v16, %v3366_v61 }
 0x526   : > { %v3393_v28 = vmul.f32 %v3389_v10, %v3384_v20  ;;  %v3394_v32 = vmul.f32 %v3390_v12, %v3385_v11 }
 0x528   : > { %v3402_v44 = vadd.f32 %v3398_v19, %v3393_v28  ;;  %v3403_v36 = vadd.f32 %v3399_v22, %v3394_v32 }
 0x52a   : > { %3404 = vst [vmem:[%s413_s24] sm:$0xff] %v3402_v44 }
 0x52b   : > { %3405 = vst [vmem:[%s413_s24 + $0x8] sm:$0xff] %v3403_v36 }
 0x52c   : > { %5221 = shalt.err (!%p5218_p12)
}
 0x52d   : > { %5041 = dma.vmem_to_hbm [thread:$0]  (%p5363_p5), %s3423_s17, 256, %s3425_s18, %s3407_s12  }
 0x52e PF: > { %s3436_s7 = sand.u32 1, %s5256_s21   ;;  %p5048_p13 = pnand %p3583_p2, %p5376_p11 }
 0x52f   : > { %s3437_s14 = scalar_lea.sflag [#allocation8], %s3436_s7 }
 0x530   : > { %p5049_p0 = pneg %p5048_p13 }
 0x532   : > { %5251 = dma.done.wait (%p5049_p0), %s3437_s14, 256  }
 0x533   : > { %5253 = vsyncadd (%p5049_p0), %s3437_s14, 4294967040  ;;  %s20_s26 = sadd.s32 1, %s5276_s26   ;;  %s5848_s21 = smov %s5260_s22 }
 0x534   : > { %p17_p1 = scmp.ge.s32.totalorder %s20_s26, 4   ;;  %s5849_s22 = smov %s5264_s23 }
 0x535   : > { %s5850_s23 = smov %s5374_s10  ;;  %s5851_s24 = smov %s5272_s25 }
 0x536   : > { %s5852_s25 = smov %s5854_s29  ;;  %19 = sbr.rel (!%p17_p1) target bundleno = 5 (0x5), region = 153 }
 0x53b   :  { %3443 = vsyncpa [#allocation7], 1 }
 0x53c   :  { %3445 = vsyncpa [#allocation7 + $0x1], 1 }
 0x53d   :  { %3446 = vsyncpa [#allocation8], 1 }
 0x53e   :  { %3448 = vsyncpa [#allocation8 + $0x1], 1 }

</bundles_post_ra>
